<compile_context>
chip_gen: v7x
topology: tpu7x:2x2x1
jax: 0.10.0
libtpu: 0.0.40
codegen_flags: <defaults>
</compile_context>

<pallas_src>
import math

import jax
import jax.numpy as jnp
from jax import lax
from jax.experimental import pallas as pl
from jax.experimental.pallas import tpu as pltpu

# ----------------------------- model config (small, synthetic) -----------------
HIDDEN = 32          # config.hidden_size
HEADS = 4            # config.num_attention_heads
HEAD = HIDDEN // HEADS
INTER = 64           # config.intermediate_size
NUM_X_LAYERS = 2     # config.num_x_layers
ANGLE_FEAT = 4       # config.angle_feat_size
POSF = ANGLE_FEAT + 3
MAX_STEPS = 10       # config.max_action_steps
LN_EPS = 1e-12
MASK_NEG = -10000.0

# Set to jnp.bfloat16 on v5e/v6e/v7x at production sizes (MXU bf16 path, halves
# weight VMEM / HBM bytes).  Element-wise math (LayerNorm / softmax / gelu) stays
# f32 either way (v5e VPU/EUP have no bf16 path).
MATMUL_DTYPE = jnp.float32
SQRT_2_OVER_PI = math.sqrt(2.0 / math.pi)


# ----------------------------- in-kernel helpers --------------------------------
def _mm(a, b):
    return jnp.dot(a.astype(MATMUL_DTYPE), b.astype(MATMUL_DTYPE),
                   preferred_element_type=jnp.float32)


def _layernorm(x, w, b, eps=LN_EPS):
    mu = jnp.mean(x, axis=-1, keepdims=True)
    var = jnp.mean(jnp.square(x - mu), axis=-1, keepdims=True)
    return (x - mu) * lax.rsqrt(var + eps) * w + b          # rsqrt -> EUP slot


def _gelu_tanh(x):
    # tanh-approximate gelu (EUP); deviates from the module's erf gelu by ~1e-3.
    return 0.5 * x * (1.0 + jnp.tanh(SQRT_2_OVER_PI * (x + 0.044715 * x * x * x)))


def _mha(x, ctx, mask_blk, w, b, ln, sel, nb, lq, lk):
    """Multi-head attention + BertSelfOutput over a flattened batch tile.

    x: (nb*lq, D) queries, ctx: (nb*lk, D) keys/values.
    mask_blk: (nb, 1 or lq, HEADS*lk) additive mask, already head-tiled (hoisted).
    w: (4, D, D) [q, k, v, o], b: (4, 1, D), ln: (2, 1, D).
    sel: (sel_k (D, H*lk), sel_v (H*lk, D)) block-diagonal 0/1 selectors.

    Heads stay fused in the MXU pushes via the block-diagonal layout (head_dim=8
    < 32 here); softmax normalization is per-head via XLU reductions over static
    head slices -- no seg matmul, no quadratic constants.  At production Lk
    prefer a (lq, H, lk) reshape+reduce; at production head dims prefer per-head
    batched einsums.
    """
    sel_k, sel_v = sel
    scale = 1.0 / math.sqrt(HEAD)
    q = _mm(x, w[0]) + b[0]            # (nb*lq, D)
    k = _mm(ctx, w[1]) + b[1]          # (nb*lk, D)
    v = _mm(ctx, w[2]) + b[2]
    ctx_rows = []
    for i in range(nb):                # static unroll over the batch tile
        qi = q[i * lq:(i + 1) * lq]
        ki = k[i * lk:(i + 1) * lk]
        vi = v[i * lk:(i + 1) * lk]
        k_blk = jnp.concatenate([ki.T] * HEADS, axis=1) * sel_k   # (D, H*lk)
        v_blk = jnp.concatenate([vi] * HEADS, axis=0) * sel_v     # (H*lk, D)
        s = _mm(qi, k_blk) * scale + mask_blk[i]                  # (lq, H*lk)
        probs = []
        for h in range(HEADS):         # per-head max/sum: VPU/XLU only, no MXU
            sh = s[:, h * lk:(h + 1) * lk]
            mh = jnp.max(sh, axis=-1, keepdims=True)              # per-head max
            ph = jnp.exp(sh - mh)
            dh = jnp.sum(ph, axis=-1, keepdims=True)
            probs.append(ph * pl.reciprocal(dh, approx=True))
        p = jnp.concatenate(probs, axis=1)                        # (lq, H*lk)
        ctx_rows.append(_mm(p, v_blk))                            # (lq, D)
    ctx_layer = ctx_rows[0] if nb == 1 else jnp.concatenate(ctx_rows, axis=0)
    dense = _mm(ctx_layer, w[3]) + b[3]
    return _layernorm(dense + x, ln[0], ln[1])


# ----------------------------- fused kernel --------------------------------------
def make_fused_kernel(nb, lg, lt, has_sprels):
    def kernel(*refs):
        acc_ref = refs[-1]            # (nb*lg, D) running activation (persists over layers)
        out_ref = refs[-2]
        ins = refs[:-2]
        img_ref, step_ref, posf_ref, txt_ref, tmask_ref, imask_ref = ins[:6]
        idx = 6
        sprel_ref = None
        if has_sprels:
            sprel_ref = ins[idx]
            idx += 1
        (selk_t_ref, selv_t_ref, selk_g_ref, selv_g_ref,
         posw_ref, posb_ref, posln_ref) = ins[idx:idx + 7]
        idx += 7
        (xw_ref, xb_ref, xln_ref, sw_ref, sb_ref, sln_ref,
         f1w_ref, f1b_ref, f2w_ref, f2b_ref, fln_ref) = ins[idx:]

        layer = pl.program_id(1)
        n_layers = pl.num_programs(1)

        txt = txt_ref[...]                                   # (nb*lt, D)
        sel_t = (selk_t_ref[...], selv_t_ref[...])
        sel_g = (selk_g_ref[...], selv_g_ref[...])

        # Hoisted mask head-tiling: once per grid step, not once per attention.
        tmask_blk = jnp.concatenate([tmask_ref[...]] * HEADS, axis=2)  # (nb,1,H*lt)
        if has_sprels:
            smask = imask_ref[...] + sprel_ref[...]           # (nb, lg, lg)
        else:
            smask = imask_ref[...]                            # (nb, 1, lg)
        smask_blk = jnp.concatenate([smask] * HEADS, axis=2)

        # gmap input embedding: img_fts + step_emb + LN(Linear(pos_fts)).
        # Cheap; recomputed every step so the matmul stays out of pl.when, but
        # only stored into the running activation at layer == 0.
        posln = posln_ref[...]
        proj = _mm(posf_ref[...], posw_ref[...]) + posb_ref[...]
        init = img_ref[...] + step_ref[...] + _layernorm(proj, posln[0], posln[1])

        @pl.when(layer == 0)
        def _():
            acc_ref[...] = init

        x = acc_ref[...]                                     # (nb*lg, D)

        # cross-modal attention: queries = gmap, keys/values = text
        x = _mha(x, txt, tmask_blk, xw_ref[0], xb_ref[0], xln_ref[0],
                 sel_t, nb, lg, lt)
        # gmap self-attention (mask + optional sprels, broadcast over heads)
        x = _mha(x, x, smask_blk, sw_ref[0], sb_ref[0], sln_ref[0],
                 sel_g, nb, lg, lg)
        # FFN: BertIntermediate + BertOutput
        h = _gelu_tanh(_mm(x, f1w_ref[0]) + f1b_ref[0])
        o = _mm(h, f2w_ref[0]) + f2b_ref[0]
        fln = fln_ref[0]
        x = _layernorm(o + x, fln[0], fln[1])

        acc_ref[...] = x

        @pl.when(layer == n_layers - 1)
        def _():
            out_ref[...] = x.astype(out_ref.dtype)           # single HBM writeback
    return kernel


# ----------------------------- host-side helpers ----------------------------------
def _head_selectors(lk):
    """0/1 constants for the block-diagonal fused-head layout (no quadratic seg)."""
    cols = HEADS * lk
    d_h = jnp.arange(HIDDEN)[:, None] // HEAD
    c_h = jnp.arange(cols)[None, :] // lk
    sel_k = (d_h == c_h).astype(jnp.float32)                 # (D, H*lk)
    r_h = jnp.arange(cols)[:, None] // lk
    sel_v = (r_h == jnp.arange(HIDDEN)[None, :] // HEAD).astype(jnp.float32)  # (H*lk, D)
    return sel_k, sel_v


def _pick_batch_tile(n, lg, max_rows=1024):
    # Whole batch in one block when small (block == full array, always legal);
    # otherwise the largest divisor of n whose row count stays sublane-aligned.
    if n * lg <= max_rows:
        return n
    for nb in range(n, 0, -1):
        if n % nb == 0 and nb * lg <= max_rows and (nb * lg) % 8 == 0:
            return nb
    return n


def _cost_estimate(n, nl, lg, lt, d, p):
    proj_rows = 6 * lg + 2 * lt                              # q/k/v/o rows, both attentions
    per_layer = (2 * proj_rows * d * d
                 + 4 * lg * d * HEADS * (lt + lg)            # block-diag scores + context
                 + 4 * lg * d * INTER)                       # FFN
    flops = n * (nl * per_layer + 2 * lg * p * d)
    transc = n * nl * (lg * HEADS * (lt + lg) + lg * INTER)
    bytes_accessed = 4 * (n * lg * (3 * d + p + lg + 1) + n * lt * (d + 1)
                          + nl * (8 * d * d + 2 * d * INTER + 14 * d + 2 * INTER))
    return pl.CostEstimate(flops=int(flops), transcendentals=int(transc),
                           bytes_accessed=int(bytes_accessed))


def fused_gmap_encoder(img, step, posf, txt, tmask, imask, sprels, params,
                       batch_tile=None):
    n, lg, d = img.shape
    lt = txt.shape[1]
    p = posf.shape[-1]
    nl = params['x_w'].shape[0]
    has_sprels = sprels is not None

    nb = _pick_batch_tile(n, lg) if batch_tile is None else batch_tile
    assert n % nb == 0, (n, nb)
    n_blocks = n // nb

    selk_t, selv_t = _head_selectors(lt)
    selk_g, selv_g = _head_selectors(lg)

    # Host-side flattening is free and lets every projection / FFN matmul run
    # over nb*L rows (filled sublanes) instead of per-example (L, D) slivers.
    img2 = img.reshape(n * lg, d)
    step2 = step.reshape(n * lg, d)
    posf2 = posf.reshape(n * lg, p)
    txt2 = txt.reshape(n * lt, d)

    def rows_spec(rows, cols):
        return pl.BlockSpec((rows, cols), lambda b, l: (b, 0))

    def batch3_spec(d1, d2):
        return pl.BlockSpec((nb, d1, d2), lambda b, l: (b, 0, 0))

    def const_spec(arr):
        nd = arr.ndim
        return pl.BlockSpec(arr.shape, lambda b, l, nd=nd: (0,) * nd)

    def layer_spec(arr):
        nd = arr.ndim
        return pl.BlockSpec((1,) + arr.shape[1:],
                            lambda b, l, nd=nd: (l,) + (0,) * (nd - 1))

    act_inputs = [img2, step2, posf2, txt2, tmask, imask]
    act_specs = [rows_spec(nb * lg, d), rows_spec(nb * lg, d),
                 rows_spec(nb * lg, p), rows_spec(nb * lt, d),
                 batch3_spec(1, lt), batch3_spec(1, lg)]
    if has_sprels:
        act_inputs.append(sprels)
        act_specs.append(batch3_spec(lg, lg))

    const_inputs = [selk_t, selv_t, selk_g, selv_g,
                    params['pos_w'], params['pos_b'], params['pos_ln']]
    const_specs = [const_spec(a) for a in const_inputs]

    # Per-layer weight stacks: streamed / double-buffered along the layer axis.
    layer_inputs = [params['x_w'], params['x_b'], params['x_ln'],
                    params['s_w'], params['s_b'], params['s_ln'],
                    params['f_w1'], params['f_b1'], params['f_w2'],
                    params['f_b2'], params['f_ln']]
    layer_specs = [layer_spec(a) for a in layer_inputs]

    out2 = pl.pallas_call(
        make_fused_kernel(nb, lg, lt, has_sprels),
        out_shape=jax.ShapeDtypeStruct((n * lg, d), jnp.float32),
        grid=(n_blocks, nl),
        in_specs=act_specs + const_specs + layer_specs,
        out_specs=pl.BlockSpec((nb * lg, d), lambda b, l: (b, 0)),
        scratch_shapes=[pltpu.VMEM((nb * lg, d), jnp.float32)],
        compiler_params=pltpu.CompilerParams(
            # batch tiles split across TensorCores; layer axis streams weights
            dimension_semantics=("parallel", "arbitrary"),
            vmem_limit_bytes=32 * 1024 * 1024),
        cost_estimate=_cost_estimate(n, nl, lg, lt, d, p),
    )(*act_inputs, *const_inputs, *layer_inputs)
    return out2.reshape(n, lg, d)


# ----------------------------- host glue (matches the PyTorch module) -------------
def gen_seq_masks(seq_lens, max_len=None):
    seq_lens = jnp.asarray(seq_lens)
    if max_len is None:
        max_len = int(max(int(l) for l in seq_lens))
    return jnp.arange(max_len)[None, :] < seq_lens[:, None]


def extend_neg_masks(masks):
    # (N, L) bool -> (N, L) additive float; head/query dims broadcast in-kernel.
    return (1.0 - masks.astype(jnp.float32)) * MASK_NEG


# TODO(synk): _aggregate_gmap_features is python string/dict bookkeeping with no
# Pallas equivalent; it stays host-side glue (matches the PyTorch module).
def aggregate_gmap_features(split_traj_embeds, split_traj_vp_lens,
                            traj_vpids, traj_cand_vpids, gmap_vpids):
    batch_size = len(split_traj_embeds)
    batch_gmap_img_fts = []
    for i in range(batch_size):
        visited_vp_fts, unvisited_vp_fts = {}, {}
        vp_lens = split_traj_vp_lens[i]
        max_vp_len = max(vp_lens)
        vp_masks = gen_seq_masks(vp_lens, max_vp_len).astype(jnp.float32)
        i_traj_embeds = split_traj_embeds[i][:, :max_vp_len] * vp_masks[..., None]
        for t in range(len(split_traj_embeds[i])):
            visited_vp_fts[traj_vpids[i][t]] = (
                jnp.sum(i_traj_embeds[t], 0) / vp_lens[t])
            for j, vp in enumerate(traj_cand_vpids[i][t]):
                if vp not in visited_vp_fts:
                    unvisited_vp_fts.setdefault(vp, [])
                    unvisited_vp_fts[vp].append(i_traj_embeds[t][j])
        gmap_img_fts = []
        for vp in gmap_vpids[i][1:]:
            if vp in visited_vp_fts:
                gmap_img_fts.append(visited_vp_fts[vp])
            else:
                gmap_img_fts.append(jnp.mean(jnp.stack(unvisited_vp_fts[vp], 0), 0))
        batch_gmap_img_fts.append(jnp.stack(gmap_img_fts, 0))
    max_len = max(x.shape[0] for x in batch_gmap_img_fts)
    d = batch_gmap_img_fts[0].shape[1]
    padded = jnp.stack(
        [jnp.pad(x, ((0, max_len - x.shape[0]), (0, 0))) for x in batch_gmap_img_fts], 0)
    return jnp.concatenate(
        [jnp.zeros((batch_size, 1, d), jnp.float32), padded], axis=1)


def prepare_gmap_inputs(params, txt_masks, split_traj_embeds, split_traj_vp_lens,
                        traj_vpids, traj_cand_vpids, gmap_vpids,
                        gmap_step_ids, gmap_lens, graph_sprels):
    gmap_img_fts = aggregate_gmap_features(
        split_traj_embeds, split_traj_vp_lens, traj_vpids, traj_cand_vpids,
        gmap_vpids)
    step_emb = params['step_emb'][gmap_step_ids]         # embedding gather (glue)
    lg = gmap_img_fts.shape[1]
    gmap_masks = gen_seq_masks(gmap_lens, lg)
    ext_txt = extend_neg_masks(txt_masks)[:, None, :]    # (N, 1, Lt) additive
    ext_img = extend_neg_masks(gmap_masks)[:, None, :]   # (N, 1, Lg) additive
    if graph_sprels is not None:                         # guard matches PyTorch
        # sprel_linear: nn.Linear(1,1) == scalar affine; head broadcast in-kernel
        sprels = (params['sprel_w'] * graph_sprels + params['sprel_b']
                  ).astype(jnp.float32)
    else:
        sprels = None
    return gmap_img_fts, step_emb, ext_txt, ext_img, sprels


def global_map_encoder_forward(params, txt_embeds, txt_masks,
                               split_traj_embeds, split_traj_vp_lens,
                               traj_vpids, traj_cand_vpids, gmap_vpids,
                               gmap_step_ids, gmap_pos_fts, gmap_lens,
                               graph_sprels=None):
    img, step, ext_txt, ext_img, sprels = prepare_gmap_inputs(
        params, txt_masks, split_traj_embeds, split_traj_vp_lens,
        traj_vpids, traj_cand_vpids, gmap_vpids, gmap_step_ids, gmap_lens,
        graph_sprels)
    return fused_gmap_encoder(
        img.astype(jnp.float32), step.astype(jnp.float32),
        gmap_pos_fts.astype(jnp.float32), txt_embeds.astype(jnp.float32),
        ext_txt, ext_img, sprels, params)


# ----------------------------- parameters ------------------------------------------
def init_params(key):
    d, nl, it = HIDDEN, NUM_X_LAYERS, INTER
    ks = jax.random.split(key, 16)

    def nrm(k, shape):
        return jax.random.normal(k, shape, jnp.float32) * 0.02

    ln_stack = jnp.stack([jnp.ones((nl, 1, d), jnp.float32),
                          jnp.zeros((nl, 1, d), jnp.float32)], axis=1)  # (nl,2,1,d)
    return {
        'pos_w': nrm(ks[0], (POSF, d)),
        'pos_b': nrm(ks[1], (1, d)),
        'pos_ln': jnp.stack([jnp.ones((1, d), jnp.float32),
                             jnp.zeros((1, d), jnp.float32)], axis=0),  # (2,1,d)
        'step_emb': nrm(ks[2], (MAX_STEPS, d)),
        'sprel_w': jnp.float32(0.5),          # nn.Linear(1, 1) weight
        'sprel_b': jnp.float32(0.1),          # nn.Linear(1, 1) bias
        # per-layer weights stacked: [:, 0..3] = q, k, v, o
        'x_w': nrm(ks[3], (nl, 4, d, d)),
        'x_b': nrm(ks[4], (nl, 4, 1, d)),
        'x_ln': ln_stack,
        's_w': nrm(ks[5], (nl, 4, d, d)),
        's_b': nrm(ks[6], (nl, 4, 1, d)),
        's_ln': ln_stack,
        'f_w1': nrm(ks[7], (nl, d, it)),
        'f_b1': nrm(ks[8], (nl, 1, it)),
        'f_w2': nrm(ks[9], (nl, it, d)),
        'f_b2': nrm(ks[10], (nl, 1, d)),
        'f_ln': ln_stack,
    }


# ----------------------------- pure-JAX reference (validation) ----------------------
def reference_forward(params, img, step, posf, txt, tmask_add, imask_add, sprels):
    """Exact erf-gelu / exact-softmax reference for a numerical sanity check."""
    hi = lax.Precision.HIGHEST

    def ln(x, w, b):
        mu = x.mean(-1, keepdims=True)
        var = jnp.square(x - mu).mean(-1, keepdims=True)
        return (x - mu) / jnp.sqrt(var + LN_EPS) * w + b

    def dense(x, w, b):
        return jnp.einsum('...d,de->...e', x, w, precision=hi) + b

    def mha(x, ctx, mask, w, b, lnp):
        n, lq, d = x.shape
        lk = ctx.shape[1]

        def split(t, ll):
            return t.reshape(n, ll, HEADS, HEAD).transpose(0, 2, 1, 3)

        q = split(dense(x, w[0], b[0]), lq)
        k = split(dense(ctx, w[1], b[1]), lk)
        v = split(dense(ctx, w[2], b[2]), lk)
        s = jnp.einsum('nhqd,nhkd->nhqk', q, k, precision=hi) / math.sqrt(HEAD)
        p = jax.nn.softmax(s + mask, axis=-1)
        c = jnp.einsum('nhqk,nhkd->nhqd', p, v, precision=hi)
        c = c.transpose(0, 2, 1, 3).reshape(n, lq, d)
        return ln(dense(c, w[3], b[3]) + x, lnp[0], lnp[1])

    x = img + step + ln(dense(posf, params['pos_w'], params['pos_b']),
                        params['pos_ln'][0], params['pos_ln'][1])
    tmask4 = tmask_add[:, None, :, :]
    if sprels is not None:
        imask4 = (imask_add + sprels)[:, None, :, :]
    else:
        imask4 = imask_add[:, None, :, :]
    for li in range(params['x_w'].shape[0]):
        x = mha(x, txt, tmask4, params['x_w'][li], params['x_b'][li],
                params['x_ln'][li])
        x = mha(x, x, imask4, params['s_w'][li], params['s_b'][li],
                params['s_ln'][li])
        h = dense(x, params['f_w1'][li], params['f_b1'][li])
        h = h * 0.5 * (1.0 + lax.erf(h / math.sqrt(2.0)))   # exact BERT gelu
        x = ln(dense(h, params['f_w2'][li], params['f_b2'][li]) + x,
               params['f_ln'][li][0], params['f_ln'][li][1])
    return x


# ----------------------------- demo / smoke test -------------------------------------
if __name__ == "__main__":
    key = jax.random.PRNGKey(0)
    kp, k1, k2, k3, k4, k5 = jax.random.split(key, 6)
    params = init_params(kp)

    N, Lt, D = 2, 8, HIDDEN
    Lg = 5

    # trajectory data (host-side structures, as the PyTorch module expects)
    split_traj_embeds = [
        jax.random.normal(k1, (2, 4, D), jnp.float32),   # batch 0: 2 steps, <=4 views
        jax.random.normal(k2, (1, 4, D), jnp.float32),   # batch 1: 1 step
    ]
    split_traj_vp_lens = [[3, 4], [3]]
    traj_vpids = [['a', 'b'], ['x']]
    traj_cand_vpids = [[['b', 'c'], ['a', 'c', 'd']], [['y', 'z']]]
    gmap_vpids = [['stop', 'a', 'b', 'c', 'd'], ['stop', 'x', 'y', 'z']]
    gmap_lens = [5, 4]

    gmap_step_ids = jnp.array([[0, 1, 2, 1, 2], [0, 1, 1, 1, 0]], jnp.int32)
    gmap_pos_fts = jax.random.normal(k3, (N, Lg, POSF), jnp.float32)
    graph_sprels = jax.random.normal(k4, (N, Lg, Lg), jnp.float32)

    txt_embeds = jax.random.normal(k5, (N, Lt, D), jnp.float32)
    txt_masks = gen_seq_masks([8, 6], Lt)

    for sprels_arg in (graph_sprels, None):            # exercise both mask paths
        out = global_map_encoder_forward(
            params, txt_embeds, txt_masks,
            split_traj_embeds, split_traj_vp_lens,
            traj_vpids, traj_cand_vpids, gmap_vpids,
            gmap_step_ids, gmap_pos_fts, gmap_lens,
            graph_sprels=sprels_arg)
        jax.block_until_ready(out)
        assert out.shape == (N, Lg, D)
        assert bool(jnp.all(jnp.isfinite(out)))

        img, step, ext_txt, ext_img, sp = prepare_gmap_inputs(
            params, txt_masks, split_traj_embeds, split_traj_vp_lens,
            traj_vpids, traj_cand_vpids, gmap_vpids, gmap_step_ids,
            gmap_lens, sprels_arg)
        ref = reference_forward(params, img, step, gmap_pos_fts,
                                txt_embeds.astype(jnp.float32),
                                ext_txt, ext_img, sp)
        # tanh-gelu + approx-reciprocal softmax give ~1e-3 level deviations
        assert bool(jnp.allclose(out, ref, atol=5e-2, rtol=5e-2)), \
            float(jnp.max(jnp.abs(out - ref)))

    print("KERNEL_OK")
</pallas_src>

<mosaic_0001>
module attributes {stable_mosaic.version = 11 : i64} {
  func.func @kernel(%arg0: i32, %arg1: i32, %arg2: memref<10x32xf32, #tpu.memory_space<vmem>>, %arg3: memref<10x32xf32, #tpu.memory_space<vmem>>, %arg4: memref<10x7xf32, #tpu.memory_space<vmem>>, %arg5: memref<16x32xf32, #tpu.memory_space<vmem>>, %arg6: memref<2x1x8xf32, #tpu.memory_space<vmem>>, %arg7: memref<2x1x5xf32, #tpu.memory_space<vmem>>, %arg8: memref<2x5x5xf32, #tpu.memory_space<vmem>>, %arg9: memref<32x32xf32, #tpu.memory_space<vmem>>, %arg10: memref<32x32xf32, #tpu.memory_space<vmem>>, %arg11: memref<32x20xf32, #tpu.memory_space<vmem>>, %arg12: memref<20x32xf32, #tpu.memory_space<vmem>>, %arg13: memref<7x32xf32, #tpu.memory_space<vmem>>, %arg14: memref<1x32xf32, #tpu.memory_space<vmem>>, %arg15: memref<2x1x32xf32, #tpu.memory_space<vmem>>, %arg16: memref<1x4x32x32xf32, #tpu.memory_space<vmem>>, %arg17: memref<1x4x1x32xf32, #tpu.memory_space<vmem>>, %arg18: memref<1x2x1x32xf32, #tpu.memory_space<vmem>>, %arg19: memref<1x4x32x32xf32, #tpu.memory_space<vmem>>, %arg20: memref<1x4x1x32xf32, #tpu.memory_space<vmem>>, %arg21: memref<1x2x1x32xf32, #tpu.memory_space<vmem>>, %arg22: memref<1x32x64xf32, #tpu.memory_space<vmem>>, %arg23: memref<1x1x64xf32, #tpu.memory_space<vmem>>, %arg24: memref<1x64x32xf32, #tpu.memory_space<vmem>>, %arg25: memref<1x1x32xf32, #tpu.memory_space<vmem>>, %arg26: memref<1x2x1x32xf32, #tpu.memory_space<vmem>>, %arg27: memref<10x32xf32, #tpu.memory_space<vmem>>, %arg28: memref<10x32xf32, #tpu.memory_space<vmem>>) attributes {dimension_semantics = [#tpu.dimension_semantics<parallel>, #tpu.dimension_semantics<arbitrary>], iteration_bounds = array<i64: 1, 2>, scalar_prefetch = 0 : i64, scratch_operands = 1 : i64, tpu.core_type = #tpu.core_type<tc>, window_params = [{transform_indices = @transform_0, window_bounds = array<i64: 10, 32>}, {transform_indices = @transform_1, window_bounds = array<i64: 10, 32>}, {transform_indices = @transform_2, window_bounds = array<i64: 10, 7>}, {transform_indices = @transform_3, window_bounds = array<i64: 16, 32>}, {transform_indices = @transform_4, window_bounds = array<i64: 2, 1, 8>}, {transform_indices = @transform_5, window_bounds = array<i64: 2, 1, 5>}, {transform_indices = @transform_6, window_bounds = array<i64: 2, 5, 5>}, {pipeline_mode = #tpu.pipeline_mode<synchronous>, transform_indices = @transform_7, window_bounds = array<i64: 32, 32>}, {pipeline_mode = #tpu.pipeline_mode<synchronous>, transform_indices = @transform_8, window_bounds = array<i64: 32, 32>}, {pipeline_mode = #tpu.pipeline_mode<synchronous>, transform_indices = @transform_9, window_bounds = array<i64: 32, 20>}, {pipeline_mode = #tpu.pipeline_mode<synchronous>, transform_indices = @transform_10, window_bounds = array<i64: 20, 32>}, {pipeline_mode = #tpu.pipeline_mode<synchronous>, transform_indices = @transform_11, window_bounds = array<i64: 7, 32>}, {pipeline_mode = #tpu.pipeline_mode<synchronous>, transform_indices = @transform_12, window_bounds = array<i64: 1, 32>}, {pipeline_mode = #tpu.pipeline_mode<synchronous>, transform_indices = @transform_13, window_bounds = array<i64: 2, 1, 32>}, {transform_indices = @transform_14, window_bounds = array<i64: 1, 4, 32, 32>}, {transform_indices = @transform_15, window_bounds = array<i64: 1, 4, 1, 32>}, {transform_indices = @transform_16, window_bounds = array<i64: 1, 2, 1, 32>}, {transform_indices = @transform_17, window_bounds = array<i64: 1, 4, 32, 32>}, {transform_indices = @transform_18, window_bounds = array<i64: 1, 4, 1, 32>}, {transform_indices = @transform_19, window_bounds = array<i64: 1, 2, 1, 32>}, {transform_indices = @transform_20, window_bounds = array<i64: 1, 32, 64>}, {transform_indices = @transform_21, window_bounds = array<i64: 1, 1, 64>}, {transform_indices = @transform_22, window_bounds = array<i64: 1, 64, 32>}, {transform_indices = @transform_23, window_bounds = array<i64: 1, 1, 32>}, {transform_indices = @transform_24, window_bounds = array<i64: 1, 2, 1, 32>}, {transform_indices = @transform_25, window_bounds = array<i64: 10, 32>}]} {
    %c0 = arith.constant 0 : index
    %c0_0 = arith.constant 0 : index
    %0 = vector.load %arg5[%c0, %c0_0] : memref<16x32xf32, #tpu.memory_space<vmem>>, vector<16x32xf32>
    %c0_1 = arith.constant 0 : index
    %c0_2 = arith.constant 0 : index
    %1 = vector.load %arg9[%c0_1, %c0_2] : memref<32x32xf32, #tpu.memory_space<vmem>>, vector<32x32xf32>
    %c0_3 = arith.constant 0 : index
    %c0_4 = arith.constant 0 : index
    %2 = vector.load %arg10[%c0_3, %c0_4] : memref<32x32xf32, #tpu.memory_space<vmem>>, vector<32x32xf32>
    %c0_5 = arith.constant 0 : index
    %c0_6 = arith.constant 0 : index
    %3 = vector.load %arg11[%c0_5, %c0_6] : memref<32x20xf32, #tpu.memory_space<vmem>>, vector<32x20xf32>
    %c0_7 = arith.constant 0 : index
    %c0_8 = arith.constant 0 : index
    %4 = vector.load %arg12[%c0_7, %c0_8] : memref<20x32xf32, #tpu.memory_space<vmem>>, vector<20x32xf32>
    %c0_9 = arith.constant 0 : index
    %c0_10 = arith.constant 0 : index
    %c0_11 = arith.constant 0 : index
    %5 = vector.load %arg6[%c0_9, %c0_10, %c0_11] : memref<2x1x8xf32, #tpu.memory_space<vmem>>, vector<2x1x8xf32>
    %6 = tpu.concatenate %5, %5, %5, %5 in 2 : vector<2x1x8xf32>, vector<2x1x8xf32>, vector<2x1x8xf32>, vector<2x1x8xf32> -> vector<2x1x32xf32>
    %c0_12 = arith.constant 0 : index
    %c0_13 = arith.constant 0 : index
    %c0_14 = arith.constant 0 : index
    %7 = vector.load %arg7[%c0_12, %c0_13, %c0_14] : memref<2x1x5xf32, #tpu.memory_space<vmem>>, vector<2x1x5xf32>
    %c0_15 = arith.constant 0 : index
    %c0_16 = arith.constant 0 : index
    %c0_17 = arith.constant 0 : index
    %8 = vector.load %arg8[%c0_15, %c0_16, %c0_17] : memref<2x5x5xf32, #tpu.memory_space<vmem>>, vector<2x5x5xf32>
    %9 = vector.broadcast %7 : vector<2x1x5xf32> to vector<2x5x5xf32>
    %10 = arith.addf %9, %8 : vector<2x5x5xf32>
    %11 = tpu.concatenate %10, %10, %10, %10 in 2 : vector<2x5x5xf32>, vector<2x5x5xf32>, vector<2x5x5xf32>, vector<2x5x5xf32> -> vector<2x5x20xf32>
    %c0_18 = arith.constant 0 : index
    %c0_19 = arith.constant 0 : index
    %c0_20 = arith.constant 0 : index
    %12 = vector.load %arg15[%c0_18, %c0_19, %c0_20] : memref<2x1x32xf32, #tpu.memory_space<vmem>>, vector<2x1x32xf32>
    %c0_21 = arith.constant 0 : index
    %c0_22 = arith.constant 0 : index
    %13 = vector.load %arg4[%c0_21, %c0_22] : memref<10x7xf32, #tpu.memory_space<vmem>>, vector<10x7xf32>
    %c0_23 = arith.constant 0 : index
    %c0_24 = arith.constant 0 : index
    %14 = vector.load %arg13[%c0_23, %c0_24] : memref<7x32xf32, #tpu.memory_space<vmem>>, vector<7x32xf32>
    %cst = arith.constant dense<0.000000e+00> : vector<10x32xf32>
    %15 = tpu.matmul %13, %14, %cst {dimension_numbers = #tpu.dot_dimension_numbers<[1], [0], [0], [1], [0, 0, 1, 1], [], []>} : vector<10x7xf32>, vector<7x32xf32>, vector<10x32xf32> -> vector<10x32xf32>
    %c0_25 = arith.constant 0 : index
    %c0_26 = arith.constant 0 : index
    %16 = vector.load %arg14[%c0_25, %c0_26] : memref<1x32xf32, #tpu.memory_space<vmem>>, vector<1x32xf32>
    %17 = vector.broadcast %16 : vector<1x32xf32> to vector<10x32xf32>
    %18 = arith.addf %15, %17 : vector<10x32xf32>
    %c0_27 = arith.constant 0 : index
    %c0_28 = arith.constant 0 : index
    %19 = vector.load %arg2[%c0_27, %c0_28] : memref<10x32xf32, #tpu.memory_space<vmem>>, vector<10x32xf32>
    %c0_29 = arith.constant 0 : index
    %c0_30 = arith.constant 0 : index
    %20 = vector.load %arg3[%c0_29, %c0_30] : memref<10x32xf32, #tpu.memory_space<vmem>>, vector<10x32xf32>
    %21 = arith.addf %19, %20 : vector<10x32xf32>
    %22 = vector.extract_strided_slice %12 {offsets = [0, 0, 0], sizes = [1, 1, 32], strides = [1, 1, 1]} : vector<2x1x32xf32> to vector<1x1x32xf32>
    %23 = vector.shape_cast %22 : vector<1x1x32xf32> to vector<1x32xf32>
    %24 = vector.extract_strided_slice %12 {offsets = [1, 0, 0], sizes = [1, 1, 32], strides = [1, 1, 1]} : vector<2x1x32xf32> to vector<1x1x32xf32>
    %25 = vector.shape_cast %24 : vector<1x1x32xf32> to vector<1x32xf32>
    %cst_31 = arith.constant dense<0.000000e+00> : vector<10xf32>
    %26 = vector.multi_reduction <add>, %18, %cst_31 [1] : vector<10x32xf32> to vector<10xf32>
    %27 = vector.shape_cast %26 : vector<10xf32> to vector<10x1xf32>
    %cst_32 = arith.constant 3.200000e+01 : f32
    %28 = vector.broadcast %cst_32 : f32 to vector<10x1xf32>
    %29 = arith.divf %27, %28 : vector<10x1xf32>
    %30 = vector.broadcast %29 : vector<10x1xf32> to vector<10x32xf32>
    %31 = arith.subf %18, %30 : vector<10x32xf32>
    %32 = arith.mulf %31, %31 : vector<10x32xf32>
    %cst_33 = arith.constant dense<0.000000e+00> : vector<10xf32>
    %33 = vector.multi_reduction <add>, %32, %cst_33 [1] : vector<10x32xf32> to vector<10xf32>
    %34 = vector.shape_cast %33 : vector<10xf32> to vector<10x1xf32>
    %cst_34 = arith.constant 3.200000e+01 : f32
    %35 = vector.broadcast %cst_34 : f32 to vector<10x1xf32>
    %36 = arith.divf %34, %35 : vector<10x1xf32>
    %37 = vector.broadcast %29 : vector<10x1xf32> to vector<10x32xf32>
    %38 = arith.subf %18, %37 : vector<10x32xf32>
    %cst_35 = arith.constant 9.99999996E-13 : f32
    %39 = vector.broadcast %cst_35 : f32 to vector<10x1xf32>
    %40 = arith.addf %36, %39 : vector<10x1xf32>
    %41 = math.rsqrt %40 : vector<10x1xf32>
    %42 = vector.broadcast %41 : vector<10x1xf32> to vector<10x32xf32>
    %43 = arith.mulf %38, %42 : vector<10x32xf32>
    %44 = vector.broadcast %23 : vector<1x32xf32> to vector<10x32xf32>
    %45 = arith.mulf %43, %44 : vector<10x32xf32>
    %46 = vector.broadcast %25 : vector<1x32xf32> to vector<10x32xf32>
    %47 = arith.addf %45, %46 : vector<10x32xf32>
    %48 = arith.addf %21, %47 : vector<10x32xf32>
    %c0_i32 = arith.constant 0 : i32
    %49 = arith.cmpi eq, %arg1, %c0_i32 : i32
    %50 = arith.extui %49 : i1 to i32
    %c0_i32_36 = arith.constant 0 : i32
    %51 = arith.cmpi ne, %50, %c0_i32_36 : i32
    scf.if %51 {
      %c0_155 = arith.constant 0 : index
      %c0_156 = arith.constant 0 : index
      %479 = vector.load %arg28[%c0_155, %c0_156] : memref<10x32xf32, #tpu.memory_space<vmem>>, vector<10x32xf32>
      tpu.vector_store %arg28[%c0_155, %c0_156], %48 {strides = array<i32>} : memref<10x32xf32, #tpu.memory_space<vmem>>, vector<10x32xf32>,
    } else {
    }
    %c0_37 = arith.constant 0 : index
    %c0_38 = arith.constant 0 : index
    %52 = vector.load %arg28[%c0_37, %c0_38] : memref<10x32xf32, #tpu.memory_space<vmem>>, vector<10x32xf32>
    %c0_39 = arith.constant 0 : index
    %c0_40 = arith.constant 0 : index
    %c0_41 = arith.constant 0 : index
    %c0_42 = arith.constant 0 : index
    %53 = vector.load %arg16[%c0_39, %c0_40, %c0_41, %c0_42] : memref<1x4x32x32xf32, #tpu.memory_space<vmem>>, vector<1x4x32x32xf32>
    %54 = vector.shape_cast %53 : vector<1x4x32x32xf32> to vector<4x32x32xf32>
    %c0_43 = arith.constant 0 : index
    %c0_44 = arith.constant 0 : index
    %c0_45 = arith.constant 0 : index
    %c0_46 = arith.constant 0 : index
    %55 = vector.load %arg17[%c0_43, %c0_44, %c0_45, %c0_46] : memref<1x4x1x32xf32, #tpu.memory_space<vmem>>, vector<1x4x1x32xf32>
    %56 = vector.shape_cast %55 : vector<1x4x1x32xf32> to vector<4x1x32xf32>
    %c0_47 = arith.constant 0 : index
    %c0_48 = arith.constant 0 : index
    %c0_49 = arith.constant 0 : index
    %c0_50 = arith.constant 0 : index
    %57 = vector.load %arg18[%c0_47, %c0_48, %c0_49, %c0_50] : memref<1x2x1x32xf32, #tpu.memory_space<vmem>>, vector<1x2x1x32xf32>
    %58 = vector.shape_cast %57 : vector<1x2x1x32xf32> to vector<2x1x32xf32>
    %59 = vector.extract_strided_slice %54 {offsets = [0, 0, 0], sizes = [1, 32, 32], strides = [1, 1, 1]} : vector<4x32x32xf32> to vector<1x32x32xf32>
    %60 = vector.shape_cast %59 : vector<1x32x32xf32> to vector<32x32xf32>
    %cst_51 = arith.constant dense<0.000000e+00> : vector<10x32xf32>
    %61 = tpu.matmul %52, %60, %cst_51 {dimension_numbers = #tpu.dot_dimension_numbers<[1], [0], [0], [1], [0, 0, 1, 1], [], []>} : vector<10x32xf32>, vector<32x32xf32>, vector<10x32xf32> -> vector<10x32xf32>
    %62 = vector.extract_strided_slice %56 {offsets = [0, 0, 0], sizes = [1, 1, 32], strides = [1, 1, 1]} : vector<4x1x32xf32> to vector<1x1x32xf32>
    %63 = vector.shape_cast %62 : vector<1x1x32xf32> to vector<1x32xf32>
    %64 = vector.broadcast %63 : vector<1x32xf32> to vector<10x32xf32>
    %65 = arith.addf %61, %64 : vector<10x32xf32>
    %66 = vector.extract_strided_slice %54 {offsets = [1, 0, 0], sizes = [1, 32, 32], strides = [1, 1, 1]} : vector<4x32x32xf32> to vector<1x32x32xf32>
    %67 = vector.shape_cast %66 : vector<1x32x32xf32> to vector<32x32xf32>
    %cst_52 = arith.constant dense<0.000000e+00> : vector<16x32xf32>
    %68 = tpu.matmul %0, %67, %cst_52 {dimension_numbers = #tpu.dot_dimension_numbers<[1], [0], [0], [1], [0, 0, 1, 1], [], []>} : vector<16x32xf32>, vector<32x32xf32>, vector<16x32xf32> -> vector<16x32xf32>
    %69 = vector.extract_strided_slice %56 {offsets = [1, 0, 0], sizes = [1, 1, 32], strides = [1, 1, 1]} : vector<4x1x32xf32> to vector<1x1x32xf32>
    %70 = vector.shape_cast %69 : vector<1x1x32xf32> to vector<1x32xf32>
    %71 = vector.broadcast %70 : vector<1x32xf32> to vector<16x32xf32>
    %72 = arith.addf %68, %71 : vector<16x32xf32>
    %73 = vector.extract_strided_slice %54 {offsets = [2, 0, 0], sizes = [1, 32, 32], strides = [1, 1, 1]} : vector<4x32x32xf32> to vector<1x32x32xf32>
    %74 = vector.shape_cast %73 : vector<1x32x32xf32> to vector<32x32xf32>
    %cst_53 = arith.constant dense<0.000000e+00> : vector<16x32xf32>
    %75 = tpu.matmul %0, %74, %cst_53 {dimension_numbers = #tpu.dot_dimension_numbers<[1], [0], [0], [1], [0, 0, 1, 1], [], []>} : vector<16x32xf32>, vector<32x32xf32>, vector<16x32xf32> -> vector<16x32xf32>
    %76 = vector.extract_strided_slice %56 {offsets = [2, 0, 0], sizes = [1, 1, 32], strides = [1, 1, 1]} : vector<4x1x32xf32> to vector<1x1x32xf32>
    %77 = vector.shape_cast %76 : vector<1x1x32xf32> to vector<1x32xf32>
    %78 = vector.broadcast %77 : vector<1x32xf32> to vector<16x32xf32>
    %79 = arith.addf %75, %78 : vector<16x32xf32>
    %80 = vector.extract_strided_slice %65 {offsets = [0, 0], sizes = [5, 32], strides = [1, 1]} : vector<10x32xf32> to vector<5x32xf32>
    %81 = vector.extract_strided_slice %72 {offsets = [0, 0], sizes = [8, 32], strides = [1, 1]} : vector<16x32xf32> to vector<8x32xf32>
    %82 = vector.extract_strided_slice %79 {offsets = [0, 0], sizes = [8, 32], strides = [1, 1]} : vector<16x32xf32> to vector<8x32xf32>
    %83 = tpu.transpose %81, [1, 0] : vector<8x32xf32> -> vector<32x8xf32>
    %84 = tpu.concatenate %83, %83, %83, %83 in 1 : vector<32x8xf32>, vector<32x8xf32>, vector<32x8xf32>, vector<32x8xf32> -> vector<32x32xf32>
    %85 = arith.mulf %84, %1 : vector<32x32xf32>
    %86 = tpu.concatenate %82, %82, %82, %82 in 0 : vector<8x32xf32>, vector<8x32xf32>, vector<8x32xf32>, vector<8x32xf32> -> vector<32x32xf32>
    %87 = arith.mulf %86, %2 : vector<32x32xf32>
    %cst_54 = arith.constant dense<0.000000e+00> : vector<5x32xf32>
    %88 = tpu.matmul %80, %85, %cst_54 {dimension_numbers = #tpu.dot_dimension_numbers<[1], [0], [0], [1], [0, 0, 1, 1], [], []>} : vector<5x32xf32>, vector<32x32xf32>, vector<5x32xf32> -> vector<5x32xf32>
    %cst_55 = arith.constant 0.353553385 : f32
    %89 = vector.broadcast %cst_55 : f32 to vector<5x32xf32>
    %90 = arith.mulf %88, %89 : vector<5x32xf32>
    %91 = vector.extract_strided_slice %6 {offsets = [0, 0, 0], sizes = [1, 1, 32], strides = [1, 1, 1]} : vector<2x1x32xf32> to vector<1x1x32xf32>
    %92 = vector.shape_cast %91 : vector<1x1x32xf32> to vector<1x32xf32>
    %93 = vector.broadcast %92 : vector<1x32xf32> to vector<5x32xf32>
    %94 = arith.addf %90, %93 : vector<5x32xf32>
    %95 = vector.extract_strided_slice %94 {offsets = [0, 0], sizes = [5, 8], strides = [1, 1]} : vector<5x32xf32> to vector<5x8xf32>
    %cst_56 = arith.constant dense<0xFF800000> : vector<5xf32>
    %96 = vector.multi_reduction <maximumf>, %95, %cst_56 [1] : vector<5x8xf32> to vector<5xf32>
    %97 = vector.shape_cast %96 : vector<5xf32> to vector<5x1xf32>
    %98 = vector.broadcast %97 : vector<5x1xf32> to vector<5x8xf32>
    %99 = arith.subf %95, %98 : vector<5x8xf32>
    %100 = math.exp %99 : vector<5x8xf32>
    %cst_57 = arith.constant dense<0.000000e+00> : vector<5xf32>
    %101 = vector.multi_reduction <add>, %100, %cst_57 [1] : vector<5x8xf32> to vector<5xf32>
    %102 = vector.shape_cast %101 : vector<5xf32> to vector<5x1xf32>
    %103 = tpu.reciprocal %102 {approx = true} : vector<5x1xf32> -> vector<5x1xf32>
    %104 = vector.broadcast %103 : vector<5x1xf32> to vector<5x8xf32>
    %105 = arith.mulf %100, %104 : vector<5x8xf32>
    %106 = vector.extract_strided_slice %94 {offsets = [0, 8], sizes = [5, 8], strides = [1, 1]} : vector<5x32xf32> to vector<5x8xf32>
    %cst_58 = arith.constant dense<0xFF800000> : vector<5xf32>
    %107 = vector.multi_reduction <maximumf>, %106, %cst_58 [1] : vector<5x8xf32> to vector<5xf32>
    %108 = vector.shape_cast %107 : vector<5xf32> to vector<5x1xf32>
    %109 = vector.broadcast %108 : vector<5x1xf32> to vector<5x8xf32>
    %110 = arith.subf %106, %109 : vector<5x8xf32>
    %111 = math.exp %110 : vector<5x8xf32>
    %cst_59 = arith.constant dense<0.000000e+00> : vector<5xf32>
    %112 = vector.multi_reduction <add>, %111, %cst_59 [1] : vector<5x8xf32> to vector<5xf32>
    %113 = vector.shape_cast %112 : vector<5xf32> to vector<5x1xf32>
    %114 = tpu.reciprocal %113 {approx = true} : vector<5x1xf32> -> vector<5x1xf32>
    %115 = vector.broadcast %114 : vector<5x1xf32> to vector<5x8xf32>
    %116 = arith.mulf %111, %115 : vector<5x8xf32>
    %117 = vector.extract_strided_slice %94 {offsets = [0, 16], sizes = [5, 8], strides = [1, 1]} : vector<5x32xf32> to vector<5x8xf32>
    %cst_60 = arith.constant dense<0xFF800000> : vector<5xf32>
    %118 = vector.multi_reduction <maximumf>, %117, %cst_60 [1] : vector<5x8xf32> to vector<5xf32>
    %119 = vector.shape_cast %118 : vector<5xf32> to vector<5x1xf32>
    %120 = vector.broadcast %119 : vector<5x1xf32> to vector<5x8xf32>
    %121 = arith.subf %117, %120 : vector<5x8xf32>
    %122 = math.exp %121 : vector<5x8xf32>
    %cst_61 = arith.constant dense<0.000000e+00> : vector<5xf32>
    %123 = vector.multi_reduction <add>, %122, %cst_61 [1] : vector<5x8xf32> to vector<5xf32>
    %124 = vector.shape_cast %123 : vector<5xf32> to vector<5x1xf32>
    %125 = tpu.reciprocal %124 {approx = true} : vector<5x1xf32> -> vector<5x1xf32>
    %126 = vector.broadcast %125 : vector<5x1xf32> to vector<5x8xf32>
    %127 = arith.mulf %122, %126 : vector<5x8xf32>
    %128 = vector.extract_strided_slice %94 {offsets = [0, 24], sizes = [5, 8], strides = [1, 1]} : vector<5x32xf32> to vector<5x8xf32>
    %cst_62 = arith.constant dense<0xFF800000> : vector<5xf32>
    %129 = vector.multi_reduction <maximumf>, %128, %cst_62 [1] : vector<5x8xf32> to vector<5xf32>
    %130 = vector.shape_cast %129 : vector<5xf32> to vector<5x1xf32>
    %131 = vector.broadcast %130 : vector<5x1xf32> to vector<5x8xf32>
    %132 = arith.subf %128, %131 : vector<5x8xf32>
    %133 = math.exp %132 : vector<5x8xf32>
    %cst_63 = arith.constant dense<0.000000e+00> : vector<5xf32>
    %134 = vector.multi_reduction <add>, %133, %cst_63 [1] : vector<5x8xf32> to vector<5xf32>
    %135 = vector.shape_cast %134 : vector<5xf32> to vector<5x1xf32>
    %136 = tpu.reciprocal %135 {approx = true} : vector<5x1xf32> -> vector<5x1xf32>
    %137 = vector.broadcast %136 : vector<5x1xf32> to vector<5x8xf32>
    %138 = arith.mulf %133, %137 : vector<5x8xf32>
    %139 = tpu.concatenate %105, %116, %127, %138 in 1 : vector<5x8xf32>, vector<5x8xf32>, vector<5x8xf32>, vector<5x8xf32> -> vector<5x32xf32>
    %cst_64 = arith.constant dense<0.000000e+00> : vector<5x32xf32>
    %140 = tpu.matmul %139, %87, %cst_64 {dimension_numbers = #tpu.dot_dimension_numbers<[1], [0], [0], [1], [0, 0, 1, 1], [], []>} : vector<5x32xf32>, vector<32x32xf32>, vector<5x32xf32> -> vector<5x32xf32>
    %141 = vector.extract_strided_slice %65 {offsets = [5, 0], sizes = [5, 32], strides = [1, 1]} : vector<10x32xf32> to vector<5x32xf32>
    %142 = vector.extract_strided_slice %72 {offsets = [8, 0], sizes = [8, 32], strides = [1, 1]} : vector<16x32xf32> to vector<8x32xf32>
    %143 = vector.extract_strided_slice %79 {offsets = [8, 0], sizes = [8, 32], strides = [1, 1]} : vector<16x32xf32> to vector<8x32xf32>
    %144 = tpu.transpose %142, [1, 0] : vector<8x32xf32> -> vector<32x8xf32>
    %145 = tpu.concatenate %144, %144, %144, %144 in 1 : vector<32x8xf32>, vector<32x8xf32>, vector<32x8xf32>, vector<32x8xf32> -> vector<32x32xf32>
    %146 = arith.mulf %145, %1 : vector<32x32xf32>
    %147 = tpu.concatenate %143, %143, %143, %143 in 0 : vector<8x32xf32>, vector<8x32xf32>, vector<8x32xf32>, vector<8x32xf32> -> vector<32x32xf32>
    %148 = arith.mulf %147, %2 : vector<32x32xf32>
    %cst_65 = arith.constant dense<0.000000e+00> : vector<5x32xf32>
    %149 = tpu.matmul %141, %146, %cst_65 {dimension_numbers = #tpu.dot_dimension_numbers<[1], [0], [0], [1], [0, 0, 1, 1], [], []>} : vector<5x32xf32>, vector<32x32xf32>, vector<5x32xf32> -> vector<5x32xf32>
    %cst_66 = arith.constant 0.353553385 : f32
    %150 = vector.broadcast %cst_66 : f32 to vector<5x32xf32>
    %151 = arith.mulf %149, %150 : vector<5x32xf32>
    %152 = vector.extract_strided_slice %6 {offsets = [1, 0, 0], sizes = [1, 1, 32], strides = [1, 1, 1]} : vector<2x1x32xf32> to vector<1x1x32xf32>
    %153 = vector.shape_cast %152 : vector<1x1x32xf32> to vector<1x32xf32>
    %154 = vector.broadcast %153 : vector<1x32xf32> to vector<5x32xf32>
    %155 = arith.addf %151, %154 : vector<5x32xf32>
    %156 = vector.extract_strided_slice %155 {offsets = [0, 0], sizes = [5, 8], strides = [1, 1]} : vector<5x32xf32> to vector<5x8xf32>
    %cst_67 = arith.constant dense<0xFF800000> : vector<5xf32>
    %157 = vector.multi_reduction <maximumf>, %156, %cst_67 [1] : vector<5x8xf32> to vector<5xf32>
    %158 = vector.shape_cast %157 : vector<5xf32> to vector<5x1xf32>
    %159 = vector.broadcast %158 : vector<5x1xf32> to vector<5x8xf32>
    %160 = arith.subf %156, %159 : vector<5x8xf32>
    %161 = math.exp %160 : vector<5x8xf32>
    %cst_68 = arith.constant dense<0.000000e+00> : vector<5xf32>
    %162 = vector.multi_reduction <add>, %161, %cst_68 [1] : vector<5x8xf32> to vector<5xf32>
    %163 = vector.shape_cast %162 : vector<5xf32> to vector<5x1xf32>
    %164 = tpu.reciprocal %163 {approx = true} : vector<5x1xf32> -> vector<5x1xf32>
    %165 = vector.broadcast %164 : vector<5x1xf32> to vector<5x8xf32>
    %166 = arith.mulf %161, %165 : vector<5x8xf32>
    %167 = vector.extract_strided_slice %155 {offsets = [0, 8], sizes = [5, 8], strides = [1, 1]} : vector<5x32xf32> to vector<5x8xf32>
    %cst_69 = arith.constant dense<0xFF800000> : vector<5xf32>
    %168 = vector.multi_reduction <maximumf>, %167, %cst_69 [1] : vector<5x8xf32> to vector<5xf32>
    %169 = vector.shape_cast %168 : vector<5xf32> to vector<5x1xf32>
    %170 = vector.broadcast %169 : vector<5x1xf32> to vector<5x8xf32>
    %171 = arith.subf %167, %170 : vector<5x8xf32>
    %172 = math.exp %171 : vector<5x8xf32>
    %cst_70 = arith.constant dense<0.000000e+00> : vector<5xf32>
    %173 = vector.multi_reduction <add>, %172, %cst_70 [1] : vector<5x8xf32> to vector<5xf32>
    %174 = vector.shape_cast %173 : vector<5xf32> to vector<5x1xf32>
    %175 = tpu.reciprocal %174 {approx = true} : vector<5x1xf32> -> vector<5x1xf32>
    %176 = vector.broadcast %175 : vector<5x1xf32> to vector<5x8xf32>
    %177 = arith.mulf %172, %176 : vector<5x8xf32>
    %178 = vector.extract_strided_slice %155 {offsets = [0, 16], sizes = [5, 8], strides = [1, 1]} : vector<5x32xf32> to vector<5x8xf32>
    %cst_71 = arith.constant dense<0xFF800000> : vector<5xf32>
    %179 = vector.multi_reduction <maximumf>, %178, %cst_71 [1] : vector<5x8xf32> to vector<5xf32>
    %180 = vector.shape_cast %179 : vector<5xf32> to vector<5x1xf32>
    %181 = vector.broadcast %180 : vector<5x1xf32> to vector<5x8xf32>
    %182 = arith.subf %178, %181 : vector<5x8xf32>
    %183 = math.exp %182 : vector<5x8xf32>
    %cst_72 = arith.constant dense<0.000000e+00> : vector<5xf32>
    %184 = vector.multi_reduction <add>, %183, %cst_72 [1] : vector<5x8xf32> to vector<5xf32>
    %185 = vector.shape_cast %184 : vector<5xf32> to vector<5x1xf32>
    %186 = tpu.reciprocal %185 {approx = true} : vector<5x1xf32> -> vector<5x1xf32>
    %187 = vector.broadcast %186 : vector<5x1xf32> to vector<5x8xf32>
    %188 = arith.mulf %183, %187 : vector<5x8xf32>
    %189 = vector.extract_strided_slice %155 {offsets = [0, 24], sizes = [5, 8], strides = [1, 1]} : vector<5x32xf32> to vector<5x8xf32>
    %cst_73 = arith.constant dense<0xFF800000> : vector<5xf32>
    %190 = vector.multi_reduction <maximumf>, %189, %cst_73 [1] : vector<5x8xf32> to vector<5xf32>
    %191 = vector.shape_cast %190 : vector<5xf32> to vector<5x1xf32>
    %192 = vector.broadcast %191 : vector<5x1xf32> to vector<5x8xf32>
    %193 = arith.subf %189, %192 : vector<5x8xf32>
    %194 = math.exp %193 : vector<5x8xf32>
    %cst_74 = arith.constant dense<0.000000e+00> : vector<5xf32>
    %195 = vector.multi_reduction <add>, %194, %cst_74 [1] : vector<5x8xf32> to vector<5xf32>
    %196 = vector.shape_cast %195 : vector<5xf32> to vector<5x1xf32>
    %197 = tpu.reciprocal %196 {approx = true} : vector<5x1xf32> -> vector<5x1xf32>
    %198 = vector.broadcast %197 : vector<5x1xf32> to vector<5x8xf32>
    %199 = arith.mulf %194, %198 : vector<5x8xf32>
    %200 = tpu.concatenate %166, %177, %188, %199 in 1 : vector<5x8xf32>, vector<5x8xf32>, vector<5x8xf32>, vector<5x8xf32> -> vector<5x32xf32>
    %cst_75 = arith.constant dense<0.000000e+00> : vector<5x32xf32>
    %201 = tpu.matmul %200, %148, %cst_75 {dimension_numbers = #tpu.dot_dimension_numbers<[1], [0], [0], [1], [0, 0, 1, 1], [], []>} : vector<5x32xf32>, vector<32x32xf32>, vector<5x32xf32> -> vector<5x32xf32>
    %202 = tpu.concatenate %140, %201 in 0 : vector<5x32xf32>, vector<5x32xf32> -> vector<10x32xf32>
    %203 = vector.extract_strided_slice %54 {offsets = [3, 0, 0], sizes = [1, 32, 32], strides = [1, 1, 1]} : vector<4x32x32xf32> to vector<1x32x32xf32>
    %204 = vector.shape_cast %203 : vector<1x32x32xf32> to vector<32x32xf32>
    %cst_76 = arith.constant dense<0.000000e+00> : vector<10x32xf32>
    %205 = tpu.matmul %202, %204, %cst_76 {dimension_numbers = #tpu.dot_dimension_numbers<[1], [0], [0], [1], [0, 0, 1, 1], [], []>} : vector<10x32xf32>, vector<32x32xf32>, vector<10x32xf32> -> vector<10x32xf32>
    %206 = vector.extract_strided_slice %56 {offsets = [3, 0, 0], sizes = [1, 1, 32], strides = [1, 1, 1]} : vector<4x1x32xf32> to vector<1x1x32xf32>
    %207 = vector.shape_cast %206 : vector<1x1x32xf32> to vector<1x32xf32>
    %208 = vector.broadcast %207 : vector<1x32xf32> to vector<10x32xf32>
    %209 = arith.addf %205, %208 : vector<10x32xf32>
    %210 = arith.addf %209, %52 : vector<10x32xf32>
    %211 = vector.extract_strided_slice %58 {offsets = [0, 0, 0], sizes = [1, 1, 32], strides = [1, 1, 1]} : vector<2x1x32xf32> to vector<1x1x32xf32>
    %212 = vector.shape_cast %211 : vector<1x1x32xf32> to vector<1x32xf32>
    %213 = vector.extract_strided_slice %58 {offsets = [1, 0, 0], sizes = [1, 1, 32], strides = [1, 1, 1]} : vector<2x1x32xf32> to vector<1x1x32xf32>
    %214 = vector.shape_cast %213 : vector<1x1x32xf32> to vector<1x32xf32>
    %cst_77 = arith.constant dense<0.000000e+00> : vector<10xf32>
    %215 = vector.multi_reduction <add>, %210, %cst_77 [1] : vector<10x32xf32> to vector<10xf32>
    %216 = vector.shape_cast %215 : vector<10xf32> to vector<10x1xf32>
    %cst_78 = arith.constant 3.200000e+01 : f32
    %217 = vector.broadcast %cst_78 : f32 to vector<10x1xf32>
    %218 = arith.divf %216, %217 : vector<10x1xf32>
    %219 = vector.broadcast %218 : vector<10x1xf32> to vector<10x32xf32>
    %220 = arith.subf %210, %219 : vector<10x32xf32>
    %221 = arith.mulf %220, %220 : vector<10x32xf32>
    %cst_79 = arith.constant dense<0.000000e+00> : vector<10xf32>
    %222 = vector.multi_reduction <add>, %221, %cst_79 [1] : vector<10x32xf32> to vector<10xf32>
    %223 = vector.shape_cast %222 : vector<10xf32> to vector<10x1xf32>
    %cst_80 = arith.constant 3.200000e+01 : f32
    %224 = vector.broadcast %cst_80 : f32 to vector<10x1xf32>
    %225 = arith.divf %223, %224 : vector<10x1xf32>
    %226 = vector.broadcast %218 : vector<10x1xf32> to vector<10x32xf32>
    %227 = arith.subf %210, %226 : vector<10x32xf32>
    %cst_81 = arith.constant 9.99999996E-13 : f32
    %228 = vector.broadcast %cst_81 : f32 to vector<10x1xf32>
    %229 = arith.addf %225, %228 : vector<10x1xf32>
    %230 = math.rsqrt %229 : vector<10x1xf32>
    %231 = vector.broadcast %230 : vector<10x1xf32> to vector<10x32xf32>
    %232 = arith.mulf %227, %231 : vector<10x32xf32>
    %233 = vector.broadcast %212 : vector<1x32xf32> to vector<10x32xf32>
    %234 = arith.mulf %232, %233 : vector<10x32xf32>
    %235 = vector.broadcast %214 : vector<1x32xf32> to vector<10x32xf32>
    %236 = arith.addf %234, %235 : vector<10x32xf32>
    %c0_82 = arith.constant 0 : index
    %c0_83 = arith.constant 0 : index
    %c0_84 = arith.constant 0 : index
    %c0_85 = arith.constant 0 : index
    %237 = vector.load %arg19[%c0_82, %c0_83, %c0_84, %c0_85] : memref<1x4x32x32xf32, #tpu.memory_space<vmem>>, vector<1x4x32x32xf32>
    %238 = vector.shape_cast %237 : vector<1x4x32x32xf32> to vector<4x32x32xf32>
    %c0_86 = arith.constant 0 : index
    %c0_87 = arith.constant 0 : index
    %c0_88 = arith.constant 0 : index
    %c0_89 = arith.constant 0 : index
    %239 = vector.load %arg20[%c0_86, %c0_87, %c0_88, %c0_89] : memref<1x4x1x32xf32, #tpu.memory_space<vmem>>, vector<1x4x1x32xf32>
    %240 = vector.shape_cast %239 : vector<1x4x1x32xf32> to vector<4x1x32xf32>
    %c0_90 = arith.constant 0 : index
    %c0_91 = arith.constant 0 : index
    %c0_92 = arith.constant 0 : index
    %c0_93 = arith.constant 0 : index
    %241 = vector.load %arg21[%c0_90, %c0_91, %c0_92, %c0_93] : memref<1x2x1x32xf32, #tpu.memory_space<vmem>>, vector<1x2x1x32xf32>
    %242 = vector.shape_cast %241 : vector<1x2x1x32xf32> to vector<2x1x32xf32>
    %243 = vector.extract_strided_slice %238 {offsets = [0, 0, 0], sizes = [1, 32, 32], strides = [1, 1, 1]} : vector<4x32x32xf32> to vector<1x32x32xf32>
    %244 = vector.shape_cast %243 : vector<1x32x32xf32> to vector<32x32xf32>
    %cst_94 = arith.constant dense<0.000000e+00> : vector<10x32xf32>
    %245 = tpu.matmul %236, %244, %cst_94 {dimension_numbers = #tpu.dot_dimension_numbers<[1], [0], [0], [1], [0, 0, 1, 1], [], []>} : vector<10x32xf32>, vector<32x32xf32>, vector<10x32xf32> -> vector<10x32xf32>
    %246 = vector.extract_strided_slice %240 {offsets = [0, 0, 0], sizes = [1, 1, 32], strides = [1, 1, 1]} : vector<4x1x32xf32> to vector<1x1x32xf32>
    %247 = vector.shape_cast %246 : vector<1x1x32xf32> to vector<1x32xf32>
    %248 = vector.broadcast %247 : vector<1x32xf32> to vector<10x32xf32>
    %249 = arith.addf %245, %248 : vector<10x32xf32>
    %250 = vector.extract_strided_slice %238 {offsets = [1, 0, 0], sizes = [1, 32, 32], strides = [1, 1, 1]} : vector<4x32x32xf32> to vector<1x32x32xf32>
    %251 = vector.shape_cast %250 : vector<1x32x32xf32> to vector<32x32xf32>
    %cst_95 = arith.constant dense<0.000000e+00> : vector<10x32xf32>
    %252 = tpu.matmul %236, %251, %cst_95 {dimension_numbers = #tpu.dot_dimension_numbers<[1], [0], [0], [1], [0, 0, 1, 1], [], []>} : vector<10x32xf32>, vector<32x32xf32>, vector<10x32xf32> -> vector<10x32xf32>
    %253 = vector.extract_strided_slice %240 {offsets = [1, 0, 0], sizes = [1, 1, 32], strides = [1, 1, 1]} : vector<4x1x32xf32> to vector<1x1x32xf32>
    %254 = vector.shape_cast %253 : vector<1x1x32xf32> to vector<1x32xf32>
    %255 = vector.broadcast %254 : vector<1x32xf32> to vector<10x32xf32>
    %256 = arith.addf %252, %255 : vector<10x32xf32>
    %257 = vector.extract_strided_slice %238 {offsets = [2, 0, 0], sizes = [1, 32, 32], strides = [1, 1, 1]} : vector<4x32x32xf32> to vector<1x32x32xf32>
    %258 = vector.shape_cast %257 : vector<1x32x32xf32> to vector<32x32xf32>
    %cst_96 = arith.constant dense<0.000000e+00> : vector<10x32xf32>
    %259 = tpu.matmul %236, %258, %cst_96 {dimension_numbers = #tpu.dot_dimension_numbers<[1], [0], [0], [1], [0, 0, 1, 1], [], []>} : vector<10x32xf32>, vector<32x32xf32>, vector<10x32xf32> -> vector<10x32xf32>
    %260 = vector.extract_strided_slice %240 {offsets = [2, 0, 0], sizes = [1, 1, 32], strides = [1, 1, 1]} : vector<4x1x32xf32> to vector<1x1x32xf32>
    %261 = vector.shape_cast %260 : vector<1x1x32xf32> to vector<1x32xf32>
    %262 = vector.broadcast %261 : vector<1x32xf32> to vector<10x32xf32>
    %263 = arith.addf %259, %262 : vector<10x32xf32>
    %264 = vector.extract_strided_slice %249 {offsets = [0, 0], sizes = [5, 32], strides = [1, 1]} : vector<10x32xf32> to vector<5x32xf32>
    %265 = vector.extract_strided_slice %256 {offsets = [0, 0], sizes = [5, 32], strides = [1, 1]} : vector<10x32xf32> to vector<5x32xf32>
    %266 = vector.extract_strided_slice %263 {offsets = [0, 0], sizes = [5, 32], strides = [1, 1]} : vector<10x32xf32> to vector<5x32xf32>
    %267 = tpu.transpose %265, [1, 0] : vector<5x32xf32> -> vector<32x5xf32>
    %268 = tpu.concatenate %267, %267, %267, %267 in 1 : vector<32x5xf32>, vector<32x5xf32>, vector<32x5xf32>, vector<32x5xf32> -> vector<32x20xf32>
    %269 = arith.mulf %268, %3 : vector<32x20xf32>
    %270 = tpu.concatenate %266, %266, %266, %266 in 0 : vector<5x32xf32>, vector<5x32xf32>, vector<5x32xf32>, vector<5x32xf32> -> vector<20x32xf32>
    %271 = arith.mulf %270, %4 : vector<20x32xf32>
    %cst_97 = arith.constant dense<0.000000e+00> : vector<5x20xf32>
    %272 = tpu.matmul %264, %269, %cst_97 {dimension_numbers = #tpu.dot_dimension_numbers<[1], [0], [0], [1], [0, 0, 1, 1], [], []>} : vector<5x32xf32>, vector<32x20xf32>, vector<5x20xf32> -> vector<5x20xf32>
    %cst_98 = arith.constant 0.353553385 : f32
    %273 = vector.broadcast %cst_98 : f32 to vector<5x20xf32>
    %274 = arith.mulf %272, %273 : vector<5x20xf32>
    %275 = vector.extract_strided_slice %11 {offsets = [0, 0, 0], sizes = [1, 5, 20], strides = [1, 1, 1]} : vector<2x5x20xf32> to vector<1x5x20xf32>
    %276 = vector.shape_cast %275 : vector<1x5x20xf32> to vector<5x20xf32>
    %277 = arith.addf %274, %276 : vector<5x20xf32>
    %278 = vector.extract_strided_slice %277 {offsets = [0, 0], sizes = [5, 5], strides = [1, 1]} : vector<5x20xf32> to vector<5x5xf32>
    %cst_99 = arith.constant dense<0xFF800000> : vector<5xf32>
    %279 = vector.multi_reduction <maximumf>, %278, %cst_99 [1] : vector<5x5xf32> to vector<5xf32>
    %280 = vector.shape_cast %279 : vector<5xf32> to vector<5x1xf32>
    %281 = vector.broadcast %280 : vector<5x1xf32> to vector<5x5xf32>
    %282 = arith.subf %278, %281 : vector<5x5xf32>
    %283 = math.exp %282 : vector<5x5xf32>
    %cst_100 = arith.constant dense<0.000000e+00> : vector<5xf32>
    %284 = vector.multi_reduction <add>, %283, %cst_100 [1] : vector<5x5xf32> to vector<5xf32>
    %285 = vector.shape_cast %284 : vector<5xf32> to vector<5x1xf32>
    %286 = tpu.reciprocal %285 {approx = true} : vector<5x1xf32> -> vector<5x1xf32>
    %287 = vector.broadcast %286 : vector<5x1xf32> to vector<5x5xf32>
    %288 = arith.mulf %283, %287 : vector<5x5xf32>
    %289 = vector.extract_strided_slice %277 {offsets = [0, 5], sizes = [5, 5], strides = [1, 1]} : vector<5x20xf32> to vector<5x5xf32>
    %cst_101 = arith.constant dense<0xFF800000> : vector<5xf32>
    %290 = vector.multi_reduction <maximumf>, %289, %cst_101 [1] : vector<5x5xf32> to vector<5xf32>
    %291 = vector.shape_cast %290 : vector<5xf32> to vector<5x1xf32>
    %292 = vector.broadcast %291 : vector<5x1xf32> to vector<5x5xf32>
    %293 = arith.subf %289, %292 : vector<5x5xf32>
    %294 = math.exp %293 : vector<5x5xf32>
    %cst_102 = arith.constant dense<0.000000e+00> : vector<5xf32>
    %295 = vector.multi_reduction <add>, %294, %cst_102 [1] : vector<5x5xf32> to vector<5xf32>
    %296 = vector.shape_cast %295 : vector<5xf32> to vector<5x1xf32>
    %297 = tpu.reciprocal %296 {approx = true} : vector<5x1xf32> -> vector<5x1xf32>
    %298 = vector.broadcast %297 : vector<5x1xf32> to vector<5x5xf32>
    %299 = arith.mulf %294, %298 : vector<5x5xf32>
    %300 = vector.extract_strided_slice %277 {offsets = [0, 10], sizes = [5, 5], strides = [1, 1]} : vector<5x20xf32> to vector<5x5xf32>
    %cst_103 = arith.constant dense<0xFF800000> : vector<5xf32>
    %301 = vector.multi_reduction <maximumf>, %300, %cst_103 [1] : vector<5x5xf32> to vector<5xf32>
    %302 = vector.shape_cast %301 : vector<5xf32> to vector<5x1xf32>
    %303 = vector.broadcast %302 : vector<5x1xf32> to vector<5x5xf32>
    %304 = arith.subf %300, %303 : vector<5x5xf32>
    %305 = math.exp %304 : vector<5x5xf32>
    %cst_104 = arith.constant dense<0.000000e+00> : vector<5xf32>
    %306 = vector.multi_reduction <add>, %305, %cst_104 [1] : vector<5x5xf32> to vector<5xf32>
    %307 = vector.shape_cast %306 : vector<5xf32> to vector<5x1xf32>
    %308 = tpu.reciprocal %307 {approx = true} : vector<5x1xf32> -> vector<5x1xf32>
    %309 = vector.broadcast %308 : vector<5x1xf32> to vector<5x5xf32>
    %310 = arith.mulf %305, %309 : vector<5x5xf32>
    %311 = vector.extract_strided_slice %277 {offsets = [0, 15], sizes = [5, 5], strides = [1, 1]} : vector<5x20xf32> to vector<5x5xf32>
    %cst_105 = arith.constant dense<0xFF800000> : vector<5xf32>
    %312 = vector.multi_reduction <maximumf>, %311, %cst_105 [1] : vector<5x5xf32> to vector<5xf32>
    %313 = vector.shape_cast %312 : vector<5xf32> to vector<5x1xf32>
    %314 = vector.broadcast %313 : vector<5x1xf32> to vector<5x5xf32>
    %315 = arith.subf %311, %314 : vector<5x5xf32>
    %316 = math.exp %315 : vector<5x5xf32>
    %cst_106 = arith.constant dense<0.000000e+00> : vector<5xf32>
    %317 = vector.multi_reduction <add>, %316, %cst_106 [1] : vector<5x5xf32> to vector<5xf32>
    %318 = vector.shape_cast %317 : vector<5xf32> to vector<5x1xf32>
    %319 = tpu.reciprocal %318 {approx = true} : vector<5x1xf32> -> vector<5x1xf32>
    %320 = vector.broadcast %319 : vector<5x1xf32> to vector<5x5xf32>
    %321 = arith.mulf %316, %320 : vector<5x5xf32>
    %322 = tpu.concatenate %288, %299, %310, %321 in 1 : vector<5x5xf32>, vector<5x5xf32>, vector<5x5xf32>, vector<5x5xf32> -> vector<5x20xf32>
    %cst_107 = arith.constant dense<0.000000e+00> : vector<5x32xf32>
    %323 = tpu.matmul %322, %271, %cst_107 {dimension_numbers = #tpu.dot_dimension_numbers<[1], [0], [0], [1], [0, 0, 1, 1], [], []>} : vector<5x20xf32>, vector<20x32xf32>, vector<5x32xf32> -> vector<5x32xf32>
    %324 = vector.extract_strided_slice %249 {offsets = [5, 0], sizes = [5, 32], strides = [1, 1]} : vector<10x32xf32> to vector<5x32xf32>
    %325 = vector.extract_strided_slice %256 {offsets = [5, 0], sizes = [5, 32], strides = [1, 1]} : vector<10x32xf32> to vector<5x32xf32>
    %326 = vector.extract_strided_slice %263 {offsets = [5, 0], sizes = [5, 32], strides = [1, 1]} : vector<10x32xf32> to vector<5x32xf32>
    %327 = tpu.transpose %325, [1, 0] : vector<5x32xf32> -> vector<32x5xf32>
    %328 = tpu.concatenate %327, %327, %327, %327 in 1 : vector<32x5xf32>, vector<32x5xf32>, vector<32x5xf32>, vector<32x5xf32> -> vector<32x20xf32>
    %329 = arith.mulf %328, %3 : vector<32x20xf32>
    %330 = tpu.concatenate %326, %326, %326, %326 in 0 : vector<5x32xf32>, vector<5x32xf32>, vector<5x32xf32>, vector<5x32xf32> -> vector<20x32xf32>
    %331 = arith.mulf %330, %4 : vector<20x32xf32>
    %cst_108 = arith.constant dense<0.000000e+00> : vector<5x20xf32>
    %332 = tpu.matmul %324, %329, %cst_108 {dimension_numbers = #tpu.dot_dimension_numbers<[1], [0], [0], [1], [0, 0, 1, 1], [], []>} : vector<5x32xf32>, vector<32x20xf32>, vector<5x20xf32> -> vector<5x20xf32>
    %cst_109 = arith.constant 0.353553385 : f32
    %333 = vector.broadcast %cst_109 : f32 to vector<5x20xf32>
    %334 = arith.mulf %332, %333 : vector<5x20xf32>
    %335 = vector.extract_strided_slice %11 {offsets = [1, 0, 0], sizes = [1, 5, 20], strides = [1, 1, 1]} : vector<2x5x20xf32> to vector<1x5x20xf32>
    %336 = vector.shape_cast %335 : vector<1x5x20xf32> to vector<5x20xf32>
    %337 = arith.addf %334, %336 : vector<5x20xf32>
    %338 = vector.extract_strided_slice %337 {offsets = [0, 0], sizes = [5, 5], strides = [1, 1]} : vector<5x20xf32> to vector<5x5xf32>
    %cst_110 = arith.constant dense<0xFF800000> : vector<5xf32>
    %339 = vector.multi_reduction <maximumf>, %338, %cst_110 [1] : vector<5x5xf32> to vector<5xf32>
    %340 = vector.shape_cast %339 : vector<5xf32> to vector<5x1xf32>
    %341 = vector.broadcast %340 : vector<5x1xf32> to vector<5x5xf32>
    %342 = arith.subf %338, %341 : vector<5x5xf32>
    %343 = math.exp %342 : vector<5x5xf32>
    %cst_111 = arith.constant dense<0.000000e+00> : vector<5xf32>
    %344 = vector.multi_reduction <add>, %343, %cst_111 [1] : vector<5x5xf32> to vector<5xf32>
    %345 = vector.shape_cast %344 : vector<5xf32> to vector<5x1xf32>
    %346 = tpu.reciprocal %345 {approx = true} : vector<5x1xf32> -> vector<5x1xf32>
    %347 = vector.broadcast %346 : vector<5x1xf32> to vector<5x5xf32>
    %348 = arith.mulf %343, %347 : vector<5x5xf32>
    %349 = vector.extract_strided_slice %337 {offsets = [0, 5], sizes = [5, 5], strides = [1, 1]} : vector<5x20xf32> to vector<5x5xf32>
    %cst_112 = arith.constant dense<0xFF800000> : vector<5xf32>
    %350 = vector.multi_reduction <maximumf>, %349, %cst_112 [1] : vector<5x5xf32> to vector<5xf32>
    %351 = vector.shape_cast %350 : vector<5xf32> to vector<5x1xf32>
    %352 = vector.broadcast %351 : vector<5x1xf32> to vector<5x5xf32>
    %353 = arith.subf %349, %352 : vector<5x5xf32>
    %354 = math.exp %353 : vector<5x5xf32>
    %cst_113 = arith.constant dense<0.000000e+00> : vector<5xf32>
    %355 = vector.multi_reduction <add>, %354, %cst_113 [1] : vector<5x5xf32> to vector<5xf32>
    %356 = vector.shape_cast %355 : vector<5xf32> to vector<5x1xf32>
    %357 = tpu.reciprocal %356 {approx = true} : vector<5x1xf32> -> vector<5x1xf32>
    %358 = vector.broadcast %357 : vector<5x1xf32> to vector<5x5xf32>
    %359 = arith.mulf %354, %358 : vector<5x5xf32>
    %360 = vector.extract_strided_slice %337 {offsets = [0, 10], sizes = [5, 5], strides = [1, 1]} : vector<5x20xf32> to vector<5x5xf32>
    %cst_114 = arith.constant dense<0xFF800000> : vector<5xf32>
    %361 = vector.multi_reduction <maximumf>, %360, %cst_114 [1] : vector<5x5xf32> to vector<5xf32>
    %362 = vector.shape_cast %361 : vector<5xf32> to vector<5x1xf32>
    %363 = vector.broadcast %362 : vector<5x1xf32> to vector<5x5xf32>
    %364 = arith.subf %360, %363 : vector<5x5xf32>
    %365 = math.exp %364 : vector<5x5xf32>
    %cst_115 = arith.constant dense<0.000000e+00> : vector<5xf32>
    %366 = vector.multi_reduction <add>, %365, %cst_115 [1] : vector<5x5xf32> to vector<5xf32>
    %367 = vector.shape_cast %366 : vector<5xf32> to vector<5x1xf32>
    %368 = tpu.reciprocal %367 {approx = true} : vector<5x1xf32> -> vector<5x1xf32>
    %369 = vector.broadcast %368 : vector<5x1xf32> to vector<5x5xf32>
    %370 = arith.mulf %365, %369 : vector<5x5xf32>
    %371 = vector.extract_strided_slice %337 {offsets = [0, 15], sizes = [5, 5], strides = [1, 1]} : vector<5x20xf32> to vector<5x5xf32>
    %cst_116 = arith.constant dense<0xFF800000> : vector<5xf32>
    %372 = vector.multi_reduction <maximumf>, %371, %cst_116 [1] : vector<5x5xf32> to vector<5xf32>
    %373 = vector.shape_cast %372 : vector<5xf32> to vector<5x1xf32>
    %374 = vector.broadcast %373 : vector<5x1xf32> to vector<5x5xf32>
    %375 = arith.subf %371, %374 : vector<5x5xf32>
    %376 = math.exp %375 : vector<5x5xf32>
    %cst_117 = arith.constant dense<0.000000e+00> : vector<5xf32>
    %377 = vector.multi_reduction <add>, %376, %cst_117 [1] : vector<5x5xf32> to vector<5xf32>
    %378 = vector.shape_cast %377 : vector<5xf32> to vector<5x1xf32>
    %379 = tpu.reciprocal %378 {approx = true} : vector<5x1xf32> -> vector<5x1xf32>
    %380 = vector.broadcast %379 : vector<5x1xf32> to vector<5x5xf32>
    %381 = arith.mulf %376, %380 : vector<5x5xf32>
    %382 = tpu.concatenate %348, %359, %370, %381 in 1 : vector<5x5xf32>, vector<5x5xf32>, vector<5x5xf32>, vector<5x5xf32> -> vector<5x20xf32>
    %cst_118 = arith.constant dense<0.000000e+00> : vector<5x32xf32>
    %383 = tpu.matmul %382, %331, %cst_118 {dimension_numbers = #tpu.dot_dimension_numbers<[1], [0], [0], [1], [0, 0, 1, 1], [], []>} : vector<5x20xf32>, vector<20x32xf32>, vector<5x32xf32> -> vector<5x32xf32>
    %384 = tpu.concatenate %323, %383 in 0 : vector<5x32xf32>, vector<5x32xf32> -> vector<10x32xf32>
    %385 = vector.extract_strided_slice %238 {offsets = [3, 0, 0], sizes = [1, 32, 32], strides = [1, 1, 1]} : vector<4x32x32xf32> to vector<1x32x32xf32>
    %386 = vector.shape_cast %385 : vector<1x32x32xf32> to vector<32x32xf32>
    %cst_119 = arith.constant dense<0.000000e+00> : vector<10x32xf32>
    %387 = tpu.matmul %384, %386, %cst_119 {dimension_numbers = #tpu.dot_dimension_numbers<[1], [0], [0], [1], [0, 0, 1, 1], [], []>} : vector<10x32xf32>, vector<32x32xf32>, vector<10x32xf32> -> vector<10x32xf32>
    %388 = vector.extract_strided_slice %240 {offsets = [3, 0, 0], sizes = [1, 1, 32], strides = [1, 1, 1]} : vector<4x1x32xf32> to vector<1x1x32xf32>
    %389 = vector.shape_cast %388 : vector<1x1x32xf32> to vector<1x32xf32>
    %390 = vector.broadcast %389 : vector<1x32xf32> to vector<10x32xf32>
    %391 = arith.addf %387, %390 : vector<10x32xf32>
    %392 = arith.addf %391, %236 : vector<10x32xf32>
    %393 = vector.extract_strided_slice %242 {offsets = [0, 0, 0], sizes = [1, 1, 32], strides = [1, 1, 1]} : vector<2x1x32xf32> to vector<1x1x32xf32>
    %394 = vector.shape_cast %393 : vector<1x1x32xf32> to vector<1x32xf32>
    %395 = vector.extract_strided_slice %242 {offsets = [1, 0, 0], sizes = [1, 1, 32], strides = [1, 1, 1]} : vector<2x1x32xf32> to vector<1x1x32xf32>
    %396 = vector.shape_cast %395 : vector<1x1x32xf32> to vector<1x32xf32>
    %cst_120 = arith.constant dense<0.000000e+00> : vector<10xf32>
    %397 = vector.multi_reduction <add>, %392, %cst_120 [1] : vector<10x32xf32> to vector<10xf32>
    %398 = vector.shape_cast %397 : vector<10xf32> to vector<10x1xf32>
    %cst_121 = arith.constant 3.200000e+01 : f32
    %399 = vector.broadcast %cst_121 : f32 to vector<10x1xf32>
    %400 = arith.divf %398, %399 : vector<10x1xf32>
    %401 = vector.broadcast %400 : vector<10x1xf32> to vector<10x32xf32>
    %402 = arith.subf %392, %401 : vector<10x32xf32>
    %403 = arith.mulf %402, %402 : vector<10x32xf32>
    %cst_122 = arith.constant dense<0.000000e+00> : vector<10xf32>
    %404 = vector.multi_reduction <add>, %403, %cst_122 [1] : vector<10x32xf32> to vector<10xf32>
    %405 = vector.shape_cast %404 : vector<10xf32> to vector<10x1xf32>
    %cst_123 = arith.constant 3.200000e+01 : f32
    %406 = vector.broadcast %cst_123 : f32 to vector<10x1xf32>
    %407 = arith.divf %405, %406 : vector<10x1xf32>
    %408 = vector.broadcast %400 : vector<10x1xf32> to vector<10x32xf32>
    %409 = arith.subf %392, %408 : vector<10x32xf32>
    %cst_124 = arith.constant 9.99999996E-13 : f32
    %410 = vector.broadcast %cst_124 : f32 to vector<10x1xf32>
    %411 = arith.addf %407, %410 : vector<10x1xf32>
    %412 = math.rsqrt %411 : vector<10x1xf32>
    %413 = vector.broadcast %412 : vector<10x1xf32> to vector<10x32xf32>
    %414 = arith.mulf %409, %413 : vector<10x32xf32>
    %415 = vector.broadcast %394 : vector<1x32xf32> to vector<10x32xf32>
    %416 = arith.mulf %414, %415 : vector<10x32xf32>
    %417 = vector.broadcast %396 : vector<1x32xf32> to vector<10x32xf32>
    %418 = arith.addf %416, %417 : vector<10x32xf32>
    %c0_125 = arith.constant 0 : index
    %c0_126 = arith.constant 0 : index
    %c0_127 = arith.constant 0 : index
    %419 = vector.load %arg22[%c0_125, %c0_126, %c0_127] : memref<1x32x64xf32, #tpu.memory_space<vmem>>, vector<1x32x64xf32>
    %420 = vector.shape_cast %419 : vector<1x32x64xf32> to vector<32x64xf32>
    %cst_128 = arith.constant dense<0.000000e+00> : vector<10x64xf32>
    %421 = tpu.matmul %418, %420, %cst_128 {dimension_numbers = #tpu.dot_dimension_numbers<[1], [0], [0], [1], [0, 0, 1, 1], [], []>} : vector<10x32xf32>, vector<32x64xf32>, vector<10x64xf32> -> vector<10x64xf32>
    %c0_129 = arith.constant 0 : index
    %c0_130 = arith.constant 0 : index
    %c0_131 = arith.constant 0 : index
    %422 = vector.load %arg23[%c0_129, %c0_130, %c0_131] : memref<1x1x64xf32, #tpu.memory_space<vmem>>, vector<1x1x64xf32>
    %423 = vector.shape_cast %422 : vector<1x1x64xf32> to vector<1x64xf32>
    %424 = vector.broadcast %423 : vector<1x64xf32> to vector<10x64xf32>
    %425 = arith.addf %421, %424 : vector<10x64xf32>
    %cst_132 = arith.constant 5.000000e-01 : f32
    %426 = vector.broadcast %cst_132 : f32 to vector<10x64xf32>
    %427 = arith.mulf %426, %425 : vector<10x64xf32>
    %cst_133 = arith.constant 4.471500e-02 : f32
    %428 = vector.broadcast %cst_133 : f32 to vector<10x64xf32>
    %429 = arith.mulf %428, %425 : vector<10x64xf32>
    %430 = arith.mulf %429, %425 : vector<10x64xf32>
    %431 = arith.mulf %430, %425 : vector<10x64xf32>
    %432 = arith.addf %425, %431 : vector<10x64xf32>
    %cst_134 = arith.constant 0.797884583 : f32
    %433 = vector.broadcast %cst_134 : f32 to vector<10x64xf32>
    %434 = arith.mulf %433, %432 : vector<10x64xf32>
    %435 = math.tanh %434 : vector<10x64xf32>
    %cst_135 = arith.constant 1.000000e+00 : f32
    %436 = vector.broadcast %cst_135 : f32 to vector<10x64xf32>
    %437 = arith.addf %436, %435 : vector<10x64xf32>
    %438 = arith.mulf %427, %437 : vector<10x64xf32>
    %c0_136 = arith.constant 0 : index
    %c0_137 = arith.constant 0 : index
    %c0_138 = arith.constant 0 : index
    %439 = vector.load %arg24[%c0_136, %c0_137, %c0_138] : memref<1x64x32xf32, #tpu.memory_space<vmem>>, vector<1x64x32xf32>
    %440 = vector.shape_cast %439 : vector<1x64x32xf32> to vector<64x32xf32>
    %cst_139 = arith.constant dense<0.000000e+00> : vector<10x32xf32>
    %441 = tpu.matmul %438, %440, %cst_139 {dimension_numbers = #tpu.dot_dimension_numbers<[1], [0], [0], [1], [0, 0, 1, 1], [], []>} : vector<10x64xf32>, vector<64x32xf32>, vector<10x32xf32> -> vector<10x32xf32>
    %c0_140 = arith.constant 0 : index
    %c0_141 = arith.constant 0 : index
    %c0_142 = arith.constant 0 : index
    %442 = vector.load %arg25[%c0_140, %c0_141, %c0_142] : memref<1x1x32xf32, #tpu.memory_space<vmem>>, vector<1x1x32xf32>
    %443 = vector.shape_cast %442 : vector<1x1x32xf32> to vector<1x32xf32>
    %444 = vector.broadcast %443 : vector<1x32xf32> to vector<10x32xf32>
    %445 = arith.addf %441, %444 : vector<10x32xf32>
    %c0_143 = arith.constant 0 : index
    %c0_144 = arith.constant 0 : index
    %c0_145 = arith.constant 0 : index
    %c0_146 = arith.constant 0 : index
    %446 = vector.load %arg26[%c0_143, %c0_144, %c0_145, %c0_146] : memref<1x2x1x32xf32, #tpu.memory_space<vmem>>, vector<1x2x1x32xf32>
    %447 = vector.shape_cast %446 : vector<1x2x1x32xf32> to vector<2x1x32xf32>
    %448 = arith.addf %445, %418 : vector<10x32xf32>
    %449 = vector.extract_strided_slice %447 {offsets = [0, 0, 0], sizes = [1, 1, 32], strides = [1, 1, 1]} : vector<2x1x32xf32> to vector<1x1x32xf32>
    %450 = vector.shape_cast %449 : vector<1x1x32xf32> to vector<1x32xf32>
    %451 = vector.extract_strided_slice %447 {offsets = [1, 0, 0], sizes = [1, 1, 32], strides = [1, 1, 1]} : vector<2x1x32xf32> to vector<1x1x32xf32>
    %452 = vector.shape_cast %451 : vector<1x1x32xf32> to vector<1x32xf32>
    %cst_147 = arith.constant dense<0.000000e+00> : vector<10xf32>
    %453 = vector.multi_reduction <add>, %448, %cst_147 [1] : vector<10x32xf32> to vector<10xf32>
    %454 = vector.shape_cast %453 : vector<10xf32> to vector<10x1xf32>
    %cst_148 = arith.constant 3.200000e+01 : f32
    %455 = vector.broadcast %cst_148 : f32 to vector<10x1xf32>
    %456 = arith.divf %454, %455 : vector<10x1xf32>
    %457 = vector.broadcast %456 : vector<10x1xf32> to vector<10x32xf32>
    %458 = arith.subf %448, %457 : vector<10x32xf32>
    %459 = arith.mulf %458, %458 : vector<10x32xf32>
    %cst_149 = arith.constant dense<0.000000e+00> : vector<10xf32>
    %460 = vector.multi_reduction <add>, %459, %cst_149 [1] : vector<10x32xf32> to vector<10xf32>
    %461 = vector.shape_cast %460 : vector<10xf32> to vector<10x1xf32>
    %cst_150 = arith.constant 3.200000e+01 : f32
    %462 = vector.broadcast %cst_150 : f32 to vector<10x1xf32>
    %463 = arith.divf %461, %462 : vector<10x1xf32>
    %464 = vector.broadcast %456 : vector<10x1xf32> to vector<10x32xf32>
    %465 = arith.subf %448, %464 : vector<10x32xf32>
    %cst_151 = arith.constant 9.99999996E-13 : f32
    %466 = vector.broadcast %cst_151 : f32 to vector<10x1xf32>
    %467 = arith.addf %463, %466 : vector<10x1xf32>
    %468 = math.rsqrt %467 : vector<10x1xf32>
    %469 = vector.broadcast %468 : vector<10x1xf32> to vector<10x32xf32>
    %470 = arith.mulf %465, %469 : vector<10x32xf32>
    %471 = vector.broadcast %450 : vector<1x32xf32> to vector<10x32xf32>
    %472 = arith.mulf %470, %471 : vector<10x32xf32>
    %473 = vector.broadcast %452 : vector<1x32xf32> to vector<10x32xf32>
    %474 = arith.addf %472, %473 : vector<10x32xf32>
    %c0_152 = arith.constant 0 : index
    %c0_153 = arith.constant 0 : index
    %475 = vector.load %arg28[%c0_152, %c0_153] : memref<10x32xf32, #tpu.memory_space<vmem>>, vector<10x32xf32>
    tpu.vector_store %arg28[%c0_152, %c0_153], %474 {strides = array<i32>} : memref<10x32xf32, #tpu.memory_space<vmem>>, vector<10x32xf32>,
    %c1_i32 = arith.constant 1 : i32
    %476 = arith.cmpi eq, %arg1, %c1_i32 : i32
    %477 = arith.extui %476 : i1 to i32
    %c0_i32_154 = arith.constant 0 : i32
    %478 = arith.cmpi ne, %477, %c0_i32_154 : i32
    scf.if %478 {
      %c0_155 = arith.constant 0 : index
      %c0_156 = arith.constant 0 : index
      %479 = vector.load %arg27[%c0_155, %c0_156] : memref<10x32xf32, #tpu.memory_space<vmem>>, vector<10x32xf32>
      tpu.vector_store %arg27[%c0_155, %c0_156], %474 {strides = array<i32>} : memref<10x32xf32, #tpu.memory_space<vmem>>, vector<10x32xf32>,
    } else {
    }
    return
  }
  func.func @transform_0(%arg0: i32, %arg1: i32) -> (i32, i32) {
    %c0_i32 = arith.constant 0 : i32
    %c0_i32_0 = arith.constant 0 : i32
    return %arg0, %c0_i32 : i32, i32
  }
  func.func @transform_1(%arg0: i32, %arg1: i32) -> (i32, i32) {
    %c0_i32 = arith.constant 0 : i32
    %c0_i32_0 = arith.constant 0 : i32
    return %arg0, %c0_i32 : i32, i32
  }
  func.func @transform_2(%arg0: i32, %arg1: i32) -> (i32, i32) {
    %c0_i32 = arith.constant 0 : i32
    %c0_i32_0 = arith.constant 0 : i32
    return %arg0, %c0_i32 : i32, i32
  }
  func.func @transform_3(%arg0: i32, %arg1: i32) -> (i32, i32) {
    %c0_i32 = arith.constant 0 : i32
    %c0_i32_0 = arith.constant 0 : i32
    return %arg0, %c0_i32 : i32, i32
  }
  func.func @transform_4(%arg0: i32, %arg1: i32) -> (i32, i32, i32) {
    %c0_i32 = arith.constant 0 : i32
    %c0_i32_0 = arith.constant 0 : i32
    %c0_i32_1 = arith.constant 0 : i32
    return %arg0, %c0_i32, %c0_i32_0 : i32, i32, i32
  }
  func.func @transform_5(%arg0: i32, %arg1: i32) -> (i32, i32, i32) {
    %c0_i32 = arith.constant 0 : i32
    %c0_i32_0 = arith.constant 0 : i32
    %c0_i32_1 = arith.constant 0 : i32
    return %arg0, %c0_i32, %c0_i32_0 : i32, i32, i32
  }
  func.func @transform_6(%arg0: i32, %arg1: i32) -> (i32, i32, i32) {
    %c0_i32 = arith.constant 0 : i32
    %c0_i32_0 = arith.constant 0 : i32
    %c0_i32_1 = arith.constant 0 : i32
    return %arg0, %c0_i32, %c0_i32_0 : i32, i32, i32
  }
  func.func @transform_7(%arg0: i32, %arg1: i32) -> (i32, i32) {
    %c0_i32 = arith.constant 0 : i32
    %c0_i32_0 = arith.constant 0 : i32
    %c0_i32_1 = arith.constant 0 : i32
    return %c0_i32, %c0_i32_0 : i32, i32
  }
  func.func @transform_8(%arg0: i32, %arg1: i32) -> (i32, i32) {
    %c0_i32 = arith.constant 0 : i32
    %c0_i32_0 = arith.constant 0 : i32
    %c0_i32_1 = arith.constant 0 : i32
    return %c0_i32, %c0_i32_0 : i32, i32
  }
  func.func @transform_9(%arg0: i32, %arg1: i32) -> (i32, i32) {
    %c0_i32 = arith.constant 0 : i32
    %c0_i32_0 = arith.constant 0 : i32
    %c0_i32_1 = arith.constant 0 : i32
    return %c0_i32, %c0_i32_0 : i32, i32
  }
  func.func @transform_10(%arg0: i32, %arg1: i32) -> (i32, i32) {
    %c0_i32 = arith.constant 0 : i32
    %c0_i32_0 = arith.constant 0 : i32
    %c0_i32_1 = arith.constant 0 : i32
    return %c0_i32, %c0_i32_0 : i32, i32
  }
  func.func @transform_11(%arg0: i32, %arg1: i32) -> (i32, i32) {
    %c0_i32 = arith.constant 0 : i32
    %c0_i32_0 = arith.constant 0 : i32
    %c0_i32_1 = arith.constant 0 : i32
    return %c0_i32, %c0_i32_0 : i32, i32
  }
  func.func @transform_12(%arg0: i32, %arg1: i32) -> (i32, i32) {
    %c0_i32 = arith.constant 0 : i32
    %c0_i32_0 = arith.constant 0 : i32
    %c0_i32_1 = arith.constant 0 : i32
    return %c0_i32, %c0_i32_0 : i32, i32
  }
  func.func @transform_13(%arg0: i32, %arg1: i32) -> (i32, i32, i32) {
    %c0_i32 = arith.constant 0 : i32
    %c0_i32_0 = arith.constant 0 : i32
    %c0_i32_1 = arith.constant 0 : i32
    %c0_i32_2 = arith.constant 0 : i32
    return %c0_i32, %c0_i32_0, %c0_i32_1 : i32, i32, i32
  }
  func.func @transform_14(%arg0: i32, %arg1: i32) -> (i32, i32, i32, i32) {
    %c0_i32 = arith.constant 0 : i32
    %c0_i32_0 = arith.constant 0 : i32
    %c0_i32_1 = arith.constant 0 : i32
    %c0_i32_2 = arith.constant 0 : i32
    return %arg1, %c0_i32, %c0_i32_0, %c0_i32_1 : i32, i32, i32, i32
  }
  func.func @transform_15(%arg0: i32, %arg1: i32) -> (i32, i32, i32, i32) {
    %c0_i32 = arith.constant 0 : i32
    %c0_i32_0 = arith.constant 0 : i32
    %c0_i32_1 = arith.constant 0 : i32
    %c0_i32_2 = arith.constant 0 : i32
    return %arg1, %c0_i32, %c0_i32_0, %c0_i32_1 : i32, i32, i32, i32
  }
  func.func @transform_16(%arg0: i32, %arg1: i32) -> (i32, i32, i32, i32) {
    %c0_i32 = arith.constant 0 : i32
    %c0_i32_0 = arith.constant 0 : i32
    %c0_i32_1 = arith.constant 0 : i32
    %c0_i32_2 = arith.constant 0 : i32
    return %arg1, %c0_i32, %c0_i32_0, %c0_i32_1 : i32, i32, i32, i32
  }
  func.func @transform_17(%arg0: i32, %arg1: i32) -> (i32, i32, i32, i32) {
    %c0_i32 = arith.constant 0 : i32
    %c0_i32_0 = arith.constant 0 : i32
    %c0_i32_1 = arith.constant 0 : i32
    %c0_i32_2 = arith.constant 0 : i32
    return %arg1, %c0_i32, %c0_i32_0, %c0_i32_1 : i32, i32, i32, i32
  }
  func.func @transform_18(%arg0: i32, %arg1: i32) -> (i32, i32, i32, i32) {
    %c0_i32 = arith.constant 0 : i32
    %c0_i32_0 = arith.constant 0 : i32
    %c0_i32_1 = arith.constant 0 : i32
    %c0_i32_2 = arith.constant 0 : i32
    return %arg1, %c0_i32, %c0_i32_0, %c0_i32_1 : i32, i32, i32, i32
  }
  func.func @transform_19(%arg0: i32, %arg1: i32) -> (i32, i32, i32, i32) {
    %c0_i32 = arith.constant 0 : i32
    %c0_i32_0 = arith.constant 0 : i32
    %c0_i32_1 = arith.constant 0 : i32
    %c0_i32_2 = arith.constant 0 : i32
    return %arg1, %c0_i32, %c0_i32_0, %c0_i32_1 : i32, i32, i32, i32
  }
  func.func @transform_20(%arg0: i32, %arg1: i32) -> (i32, i32, i32) {
    %c0_i32 = arith.constant 0 : i32
    %c0_i32_0 = arith.constant 0 : i32
    %c0_i32_1 = arith.constant 0 : i32
    return %arg1, %c0_i32, %c0_i32_0 : i32, i32, i32
  }
  func.func @transform_21(%arg0: i32, %arg1: i32) -> (i32, i32, i32) {
    %c0_i32 = arith.constant 0 : i32
    %c0_i32_0 = arith.constant 0 : i32
    %c0_i32_1 = arith.constant 0 : i32
    return %arg1, %c0_i32, %c0_i32_0 : i32, i32, i32
  }
  func.func @transform_22(%arg0: i32, %arg1: i32) -> (i32, i32, i32) {
    %c0_i32 = arith.constant 0 : i32
    %c0_i32_0 = arith.constant 0 : i32
    %c0_i32_1 = arith.constant 0 : i32
    return %arg1, %c0_i32, %c0_i32_0 : i32, i32, i32
  }
  func.func @transform_23(%arg0: i32, %arg1: i32) -> (i32, i32, i32) {
    %c0_i32 = arith.constant 0 : i32
    %c0_i32_0 = arith.constant 0 : i32
    %c0_i32_1 = arith.constant 0 : i32
    return %arg1, %c0_i32, %c0_i32_0 : i32, i32, i32
  }
  func.func @transform_24(%arg0: i32, %arg1: i32) -> (i32, i32, i32, i32) {
    %c0_i32 = arith.constant 0 : i32
    %c0_i32_0 = arith.constant 0 : i32
    %c0_i32_1 = arith.constant 0 : i32
    %c0_i32_2 = arith.constant 0 : i32
    return %arg1, %c0_i32, %c0_i32_0, %c0_i32_1 : i32, i32, i32, i32
  }
  func.func @transform_25(%arg0: i32, %arg1: i32) -> (i32, i32) {
    %c0_i32 = arith.constant 0 : i32
    %c0_i32_0 = arith.constant 0 : i32
    return %arg0, %c0_i32 : i32, i32
  }
}

</mosaic_0001>

<bundles_post_ra>
// kernel: tpu_custom_call.1
= control target key start
LH: loop header
LB: loop body
LE: loop exit
PB: predicated region body
PF: predicated region fallthrough
CT: control target
= control target key end

     0   :  { %s6871_s0 = inlined_call_operand.hbm [shape: f32[10,32], index: 0, kind: input, shape index: {}]   ;;  %s6872_s1 = inlined_call_operand.hbm [shape: f32[10,32], index: 1, kind: input, shape index: {}]   ;;  %s6873_s2 = inlined_call_operand.vmem [shape: f32[10,7], index: 2, kind: input, shape index: {}]   ;;  %s6874_s3 = inlined_call_operand.hbm [shape: f32[16,32], index: 3, kind: input, shape index: {}]   ;;  %s6875_s4 = inlined_call_operand.vmem [shape: f32[2,1,8], index: 4, kind: input, shape index: {}]   ;;  %s6876_s5 = inlined_call_operand.hbm [shape: f32[2,1,5], index: 5, kind: input, shape index: {}]   ;;  %s6877_s6 = inlined_call_operand.vmem [shape: f32[2,5,5], index: 6, kind: input, shape index: {}]   ;;  %s6878_s7 = inlined_call_operand.vmem [shape: f32[32,32], index: 7, kind: input, shape index: {}]   ;;  %s6879_s8 = inlined_call_operand.hbm [shape: f32[32,32], index: 8, kind: input, shape index: {}]   ;;  %s6880_s9 = inlined_call_operand.vmem [shape: f32[32,20], index: 9, kind: input, shape index: {}]   ;;  %s6881_s10 = inlined_call_operand.hbm [shape: f32[20,32], index: 10, kind: input, shape index: {}]   ;;  %s6882_s11 = inlined_call_operand.hbm [shape: f32[7,32], index: 11, kind: input, shape index: {}]   ;;  %s6883_s12 = inlined_call_operand.hbm [shape: f32[1,32], index: 12, kind: input, shape index: {}]   ;;  %s6884_s13 = inlined_call_operand.hbm [shape: f32[2,1,32], index: 13, kind: input, shape index: {}]   ;;  %s6885_s14 = inlined_call_operand.vmem [shape: f32[2,4,32,32], index: 14, kind: input, shape index: {}]   ;;  %s6886_s15 = inlined_call_operand.hbm [shape: f32[2,4,1,32], index: 15, kind: input, shape index: {}]   ;;  %s6887_s16 = inlined_call_operand.hbm [shape: f32[2,2,1,32], index: 16, kind: input, shape index: {}]   ;;  %s6888_s17 = inlined_call_operand.hbm [shape: f32[2,4,32,32], index: 17, kind: input, shape index: {}]   ;;  %s6889_s18 = inlined_call_operand.vmem [shape: f32[2,4,1,32], index: 18, kind: input, shape index: {}]   ;;  %s6890_s19 = inlined_call_operand.vmem [shape: f32[2,2,1,32], index: 19, kind: input, shape index: {}]   ;;  %s6891_s20 = inlined_call_operand.hbm [shape: f32[2,32,64], index: 20, kind: input, shape index: {}]   ;;  %s6892_s21 = inlined_call_operand.vmem [shape: f32[2,1,64], index: 21, kind: input, shape index: {}]   ;;  %s6893_s22 = inlined_call_operand.vmem [shape: f32[2,64,32], index: 22, kind: input, shape index: {}]   ;;  %s6894_s23 = inlined_call_operand.vmem [shape: f32[2,1,32], index: 23, kind: input, shape index: {}]   ;;  %s6895_s24 = inlined_call_operand.vmem [shape: f32[2,2,1,32], index: 24, kind: input, shape index: {}]   ;;  %s6896_s25 = inlined_call_operand.hbm [shape: f32[10,32], index: 25, kind: output, shape index: {}]  }
   0x1   :  { %6940 = sst [smem:[#allocation41_spill]] %s6871_s0 }
   0x2   :  { %6941 = sst [smem:[#allocation42_spill]] %s6872_s1 }
   0x3   :  { %6942 = sst [smem:[#allocation43_spill]] %s6873_s2 }
   0x4   :  { %6943 = sst [smem:[#allocation44_spill]] %s6874_s3 }
   0x5   :  { %6944 = sst [smem:[#allocation45_spill]] %s6875_s4 }
   0x6   :  { %6945 = sst [smem:[#allocation46_spill]] %s6876_s5 }
   0x7   :  { %6946 = sst [smem:[#allocation47_spill]] %s6877_s6 }
   0x8   :  { %6947 = sst [smem:[#allocation48_spill]] %s6878_s7 }
   0x9   :  { %6948 = sst [smem:[#allocation49_spill]] %s6879_s8 }
   0xa   :  { %6949 = sst [smem:[#allocation50_spill]] %s6880_s9 }
   0xb   :  { %6950 = sst [smem:[#allocation51_spill]] %s6881_s10 }
   0xc   :  { %6951 = sst [smem:[#allocation52_spill]] %s6883_s12 }
   0xd   :  { %6952 = sst [smem:[#allocation53_spill]] %s6885_s14 }
   0xe   :  { %6953 = sst [smem:[#allocation54_spill]] %s6886_s15 }
   0xf   :  { %6954 = sst [smem:[#allocation55_spill]] %s6888_s17 }
  0x10   :  { %6955 = sst [smem:[#allocation56_spill]] %s6889_s18 }
  0x11   :  { %6956 = sst [smem:[#allocation57_spill]] %s6890_s19 }
  0x12   :  { %6957 = sst [smem:[#allocation58_spill]] %s6891_s20 }
  0x13   :  { %6958 = sst [smem:[#allocation59_spill]] %s6892_s21 }
  0x14   :  { %6959 = sst [smem:[#allocation60_spill]] %s6893_s22 }
  0x15   :  { %6960 = sst [smem:[#allocation61_spill]] %s6894_s23 }
  0x16   :  { %6961 = sst [smem:[#allocation62_spill]] %s6895_s24 }
  0x17   :  { %6962 = sst [smem:[#allocation63_spill]] %s6896_s25 }
  0x18   :  { %30 = vsyncpa [#allocation4], 0 }
  0x19   :  { %31 = vsyncpa [#allocation7], 0 }
  0x1a   :  { %32 = vsyncpa [#allocation10], 0 }
  0x1b   :  { %33 = vsyncpa [#allocation13], 0 }
  0x1c   :  { %34 = vsyncpa [#allocation16], 0 }
  0x1d   :  { %35 = vsyncpa [#allocation19], 0 }
  0x1e   :  { %37 = vsyncpa [#allocation19 + $0x1], 0 }
  0x1f   :  { %38 = vsyncpa [#allocation22], 0 }
  0x20   :  { %40 = vsyncpa [#allocation22 + $0x1], 0 }
  0x21   :  { %41 = vsyncpa [#allocation5], 0  ;;  %s5666_s29 = smov 0   ;;  %s5668_s2 = smov 0  }
  0x22   :  { %s5670_s6 = smov 0   ;;  %s5672_s30 = smov 0  }
  0x23   :  { %s5674_s7 = smov 0   ;;  %s5676_s3 = smov 0  }
  0x24 LB: > { %6963 = sst [smem:[#allocation33_spill]] %s5484_s2  ;;  %s5697_s26 = sadd.s32 4294967295, %s5500_s3   ;;  %s5500_s3 = sphi %s5676_s3, %s47_s3   ;;  %s5496_s7 = sphi %s5674_s7, %s7042_s7   ;;  %s5492_s30 = sphi %s5672_s30, %s7041_s30   ;;  %s5488_s6 = sphi %s5670_s6, %s7039_s6   ;;  %s5484_s2 = sphi %s5668_s2, %s7038_s2   ;;  %s5480_s29 = sphi %s5666_s29, %s7037_s29  }
  0x25   : > { %6964 = sst [smem:[#allocation34_spill]] %s5488_s6  ;;  %p4197_p0 = scmp.ge.s32.totalorder %s5500_s3, 1 }
  0x26   : > { %6965 = sst [smem:[#allocation35_spill]] %s5492_s30  ;;  %p6913_p1 = scmp.eq.s32.totalorder %s5697_s26, 0 }
  0x27   : > { %6966 = sst [smem:[#allocation36_spill]] %s5500_s3  ;;  %p705_p2 = scmp.lt.s32.totalorder %s5500_s3, 3 }
  0x28   : > { %s5502_s8 = smov [#allocation6]   ;;  %s5503_s4 = smov [#allocation9]  }
  0x29   : > { %p5702_p3 = pnand %p4197_p0, %p705_p2  ;;  %s736_s27 = sshll.u32 %s5502_s8, 4  ;;  %s5706_s27 = int_to_ptr.vmem [resolvable:$true] %s736_s27 }
  0x2a   : > { %s785_s28 = sshll.u32 %s5503_s4, 4  ;;  %s5504_s5 = smov [#allocation12]   ;;  %s5716_s28 = int_to_ptr.vmem [resolvable:$true] %s785_s28 }
  0x2b   : > { %s6967_s1 = scalar_select %p5702_p3, 1, 0 }
  0x2c   : > { %p4800_p4 = pneg %p5702_p3  ;;  %s5718_s0 = sshll.u32 %s5504_s5, 4  ;;  %s827_s0 = int_to_ptr.vmem [resolvable:$true] %s5718_s0 }
  0x2d   : > { %6968 = sst [smem:[#allocation37_spill]] %s6967_s1  ;;  %s6970_s8 = sld [smem:[#allocation42_spill]] }
  0x2e   : > { %p5712_p5 = pnand %p4800_p4, %p6913_p1 }
  0x30   : > { %s6969_s9 = scalar_select %p5712_p5, 1, 0 }
  0x31   : > { %p5728_p7 = pneg %p5712_p5 }
  0x33   : > { %s5024_s23 = scalar_lea.hbm %s6970_s8, 256 }
  0x34   : > { %p5025_p6 = scmp.ne.s32.totalorder %s6970_s8, %s5024_s23  ;;  %p5031_p10 = scmp.lt.u32.totalorder %s5024_s23, %s6970_s8 }
  0x35   : > { %s6971_s4 = scalar_select %p5728_p7, 1, 0 }
  0x36   : > { %p5027_p8 = pnand %p5728_p7, %p5025_p6 }
  0x38   : > { %p5028_p9 = pneg %p5027_p8 }
  0x3a   : > { %p5033_p11 = pnand %p5031_p10, %p5028_p9 }
  0x3c   : > { %5036 = shalt.err (!%p5033_p11)
}
  0x3d   : > { %s5037_s19 = scalar_lea.vmem %s5706_s27, 256  ;;  %p5045_p2 = scmp.lt.s32.totalorder %s5706_s27, %s5706_s27 }
  0x3e   : > { %p5038_p12 = scmp.ne.s32.totalorder %s5706_s27, %s5037_s19  ;;  %p5046_p4 = scmp.lt.s32.totalorder %s5037_s19, %s5037_s19 }
  0x40   : > { %p5040_p13 = pnand %p5038_p12, %p5728_p7  ;;  %p5047_p6 = por %p5046_p4, %p5045_p2 }
  0x42   : > { %p5041_p0 = pneg %p5040_p13 }
  0x44   : > { %p5048_p8 = pnand %p5047_p6, %p5041_p0 }
  0x46   : > { %5051 = shalt.err (!%p5048_p8)
}
  0x47   : > { %s6911_s22 = smov 128   ;;  %s6919_s21 = smov 8  }
  0x48   : > { %4806 = dma.hbm_to_vmem [thread:$0]  (!%p5712_p5), %s6970_s8, 256, %s5706_s27, [#allocation7], %s6911_s22, %s6911_s22, %s6919_s21  }
  0x49   : > { %s6972_s18 = sld [smem:[#allocation46_spill]] }
  0x4f   : > { %s5052_s19 = scalar_lea.hbm %s6972_s18, 32 }
  0x50   : > { %p5053_p9 = scmp.ne.s32.totalorder %s6972_s18, %s5052_s19  ;;  %p5059_p12 = scmp.lt.u32.totalorder %s5052_s19, %s6972_s18 }
  0x52   : > { %p5055_p10 = pnand %p5053_p9, %p5728_p7 }
  0x54   : > { %p5056_p11 = pneg %p5055_p10 }
  0x56   : > { %p5061_p13 = pnand %p5059_p12, %p5056_p11 }
  0x58   : > { %5064 = shalt.err (!%p5061_p13)
}
  0x59   : > { %s5065_s27 = scalar_lea.vmem %s5716_s28, 32  ;;  %p5073_p6 = scmp.lt.s32.totalorder %s5716_s28, %s5716_s28 }
  0x5a   : > { %p5066_p0 = scmp.ne.s32.totalorder %s5716_s28, %s5065_s27  ;;  %p5074_p8 = scmp.lt.s32.totalorder %s5065_s27, %s5065_s27 }
  0x5c   : > { %p5068_p2 = pnand %p5066_p0, %p5728_p7  ;;  %p5075_p9 = por %p5074_p8, %p5073_p6 }
  0x5e   : > { %p5069_p4 = pneg %p5068_p2 }
  0x60   : > { %p5076_p10 = pnand %p5075_p9, %p5069_p4 }
  0x62   : > { %5079 = shalt.err (!%p5076_p10)
}
  0x63   : > { %s6915_s14 = smov 16   ;;  %s6917_s20 = smov 1  }
  0x64   : > { %4812 = dma.hbm_to_vmem [thread:$0]  (!%p5712_p5), %s6972_s18, 32, %s5716_s28, [#allocation10], %s6915_s14, %s6915_s14, %s6917_s20  }
  0x65   : > { %s6973_s10 = sld [smem:[#allocation51_spill]] }
  0x6b   : > { %s5080_s25 = scalar_lea.hbm %s6973_s10, 384 }
  0x6c   : > { %p5081_p11 = scmp.ne.s32.totalorder %s6973_s10, %s5080_s25  ;;  %p5087_p0 = scmp.lt.u32.totalorder %s5080_s25, %s6973_s10 }
  0x6e   : > { %p5083_p12 = pnand %p5081_p11, %p5728_p7 }
  0x70   : > { %p5084_p13 = pneg %p5083_p12 }
  0x72   : > { %p5089_p2 = pnand %p5087_p0, %p5084_p13 }
  0x74   : > { %5092 = shalt.err (!%p5089_p2)
}
  0x75   : > { %s5093_s30 = scalar_lea.vmem %s827_s0, 384  ;;  %p5101_p9 = scmp.lt.s32.totalorder %s827_s0, %s827_s0 }
  0x76   : > { %p5094_p4 = scmp.ne.s32.totalorder %s827_s0, %s5093_s30  ;;  %p5102_p10 = scmp.lt.s32.totalorder %s5093_s30, %s5093_s30 }
  0x78   : > { %p5096_p6 = pnand %p5094_p4, %p5728_p7  ;;  %p5103_p1 = por %p5102_p10, %p5101_p9 }
  0x7a   : > { %p5097_p8 = pneg %p5096_p6 }
  0x7c   : > { %p5104_p3 = pnand %p5103_p1, %p5097_p8 }
  0x7e   : > { %5107 = shalt.err (!%p5104_p3)
}
  0x7f   : > { %s6974_s28 = smov 128   ;;  %s5509_s23 = smov [#allocation15]  }
  0x80   : > { %4818 = dma.hbm_to_vmem [thread:$0]  (!%p5712_p5), %s6973_s10, 384, %s827_s0, [#allocation13], %s6974_s28, %s6974_s28, %s6919_s21  }
  0x81   : > { %s851_s24 = sshll.u32 %s5509_s23, 4  ;;  %s6975_s12 = sld [smem:[#allocation52_spill]]  ;;  %s852_s24 = int_to_ptr.vmem [resolvable:$true] %s851_s24 }
  0x87   : > { %s5108_s19 = scalar_lea.hbm %s6975_s12, 16 }
  0x88   : > { %p5109_p1 = scmp.ne.s32.totalorder %s6975_s12, %s5108_s19  ;;  %p5115_p12 = scmp.lt.u32.totalorder %s5108_s19, %s6975_s12 }
  0x8a   : > { %p5111_p3 = pnand %p5109_p1, %p5728_p7 }
  0x8c   : > { %p5112_p11 = pneg %p5111_p3 }
  0x8e   : > { %p5117_p13 = pnand %p5115_p12, %p5112_p11 }
  0x90   : > { %5120 = shalt.err (!%p5117_p13)
}
  0x91   : > { %s5121_s0 = scalar_lea.vmem %s852_s24, 16  ;;  %s5128_s22 = scalar_lea.vmem %s852_s24, 32 }
  0x92   : > { %p5122_p0 = scmp.ne.s32.totalorder %s852_s24, %s5121_s0  ;;  %p5129_p6 = scmp.lt.s32.totalorder %s852_s24, %s852_s24 }
  0x93   : > { %p5130_p8 = scmp.lt.s32.totalorder %s5128_s22, %s5121_s0 }
  0x94   : > { %p5124_p2 = pnand %p5122_p0, %p5728_p7 }
  0x95   : > { %p5131_p9 = por %p5130_p8, %p5129_p6 }
  0x96   : > { %p5125_p4 = pneg %p5124_p2 }
  0x98   : > { %p5132_p10 = pnand %p5131_p9, %p5125_p4 }
  0x9a   : > { %5135 = shalt.err (!%p5132_p10)
}
  0x9b   : > { %4824 = dma.hbm_to_vmem [thread:$0]  (!%p5712_p5), %s6975_s12, 16, %s852_s24, [#allocation16]  }
  0x9c   : > { %s56_s14 = sadd.s32 1, %s5496_s7  ;;  %s421_s20 = sadd.s32 1, %s5488_s6 }
  0x9d   : > { %p57_p1 = scmp.ge.s32.totalorder %s56_s14, 2  ;;  %p428_p3 = scmp.ne.s32.totalorder %s5488_s6, %s5484_s2 }
  0x9e   : > { %p429_p11 = scmp.eq.s32.totalorder %s5500_s3, 0  ;;  %p434_p12 = scmp.ne.s32.totalorder %s5484_s2, %s5480_s29 }
  0x9f   : > { %s7044_s14 = smov (%p57_p1, %s56_s14), 0  ;;  %p6978_p0 = scmp.eq.s32.totalorder %s5697_s26, 0 }
  0xa0   : > { %6976 = sst [smem:[#allocation38_spill]] %s7044_s14  ;;  %p5827_p13 = por %p429_p11, %p428_p3 }
  0xa1   : > { %p5833_p2 = por %p6978_p0, %p434_p12  ;;  %s418_s24 = ssub.s32 %s5496_s7, %s7044_s14 }
  0xa2   : > { %p4850_p4 = scmp.lt.s32.totalorder %s5500_s3, 2  ;;  %p419_p6 = scmp.eq.s32.totalorder %s418_s24, 0 }
  0xa3   : > { %s6979_s5 = scalar_select %p5833_p2, 1, 0 }
  0xa4   : > { %s5842_s27 = sand.u32 1, %s5488_s6   ;;  %s4304_s0 = sshll.u32 %s5496_s7, 6 }
  0xa5   : > { %6980 = sst [smem:[#allocation39_spill]] %s6979_s5  ;;  %s4211_s30 = sshll.u32 %s5842_s27, 2 }
  0xa6   : > { %s5845_s29 = scalar_select %p419_p6, %s5488_s6, %s421_s20  }
  0xa7   : > { %s6982_s15 = sld [smem:[#allocation54_spill]]  ;;  %s887_s21 = scalar_lea.vmem [#allocation18], %s4211_s30 }
  0xa8   : > { %6981 = sst [smem:[#allocation40_spill]] %s5845_s29  ;;  %s894_s24 = sshll.u32 %s887_s21, 4  ;;  %s5860_s24 = int_to_ptr.vmem [resolvable:$true] %s894_s24 }
  0xa9   : > { %p5856_p8 = pnand %p4850_p4, %p5827_p13  ;;  %s6984_s8 = sand.u32 1, %s5500_s3  }
  0xaa   : > { %s5865_s10 = scalar_lea.sflag [#allocation19], %s6984_s8 }
  0xab   : > { %s6983_s19 = scalar_select %p5856_p8, 1, 0 }
  0xac   : > { %p5871_p10 = pneg %p5856_p8 }
  0xad   : > { %s5852_s23 = scalar_lea.hbm %s6982_s15, %s4304_s0  ;;  %s5141_s30 = scalar_lea.hbm %s6982_s15, 128 }
  0xae   : > { %s5136_s0 = scalar_lea.hbm %s5852_s23, 64  ;;  %p5142_p11 = scmp.lt.u32.totalorder %s5852_s23, %s6982_s15 }
  0xaf   : > { %p5137_p9 = scmp.ne.s32.totalorder %s5852_s23, %s5136_s0  ;;  %p5143_p12 = scmp.lt.u32.totalorder %s5141_s30, %s5136_s0 }
  0xb0   : > { %s6985_s22 = scalar_select %p5871_p10, 1, 0 }
  0xb1   : > { %p5139_p1 = pnand %p5871_p10, %p5137_p9  ;;  %p5144_p13 = por %p5143_p12, %p5142_p11 }
  0xb2   : > { %p5145_p0 = scmp.lt.u32.totalorder %s5136_s0, %s5852_s23 }
  0xb3   : > { %p5140_p3 = pneg %p5139_p1 }
  0xb4   : > { %p5146_p4 = por %p5145_p0, %p5144_p13 }
  0xb6   : > { %p5147_p6 = pnand %p5146_p4, %p5140_p3 }
  0xb8   : > { %5150 = shalt.err (!%p5147_p6)
}
  0xb9   : > { %s5151_s8 = scalar_lea.vmem %s5860_s24, 64  ;;  %s5510_s21 = smov [#allocation18]  }
  0xba   : > { %p5152_p9 = scmp.ne.s32.totalorder %s5860_s24, %s5151_s8  ;;  %s5156_s25 = sshll.u32 %s5510_s21, 4  ;;  %s5157_s25 = int_to_ptr.vmem [resolvable:$false] %s5156_s25 }
  0xbb   : > { %s5158_s20 = scalar_lea.vmem %s5157_s25, 128  ;;  %p5159_p5 = scmp.lt.s32.totalorder %s5860_s24, %s5157_s25 }
  0xbc   : > { %p5154_p1 = pnand %p5152_p9, %p5871_p10  ;;  %p5160_p7 = scmp.lt.s32.totalorder %s5158_s20, %s5151_s8 }
  0xbe   : > { %p5155_p2 = pneg %p5154_p1  ;;  %p5161_p11 = por %p5160_p7, %p5159_p5 }
  0xc0   : > { %p5162_p12 = pnand %p5161_p11, %p5155_p2 }
  0xc2   : > { %5165 = shalt.err (!%p5162_p12)
}
  0xc3   : > { %s6986_s0 = smov 1   ;;  %s6987_s30 = smov 16  }
  0xc4   : > { %4831 = dma.hbm_to_vmem [thread:$0]  (!%p5856_p8), %s5852_s23, 64, %s5860_s24, %s5865_s10, %s6987_s30, %s6987_s30, %s6986_s0  }
  0xc5   : > { %s4306_s1 = sshll.u32 %s5496_s7, 11  ;;  %s6988_s17 = sld [smem:[#allocation55_spill]] }
  0xc6   : > { %s6989_s20 = sshll.u32 %s5842_s27, 7  ;;  %s6990_s18 = sand.u32 1, %s5500_s3  }
  0xc7   : > { %s929_s12 = scalar_lea.vmem [#allocation21], %s6989_s20  ;;  %s5910_s14 = scalar_lea.sflag [#allocation22], %s6990_s18 }
  0xc8   : > { %s936_s15 = sshll.u32 %s929_s12, 4  ;;  %s5906_s15 = int_to_ptr.vmem [resolvable:$true] %s936_s15 }
  0xcb   : > { %s5902_s8 = scalar_lea.hbm %s6988_s17, %s4306_s1  ;;  %s5171_s1 = scalar_lea.hbm %s6988_s17, 4096 }
  0xcc   : > { %s5166_s29 = scalar_lea.hbm %s5902_s8, 2048  ;;  %p5172_p3 = scmp.lt.u32.totalorder %s5902_s8, %s6988_s17 }
  0xcd   : > { %p5167_p5 = scmp.ne.s32.totalorder %s5902_s8, %s5166_s29  ;;  %p5173_p13 = scmp.lt.u32.totalorder %s5171_s1, %s5166_s29 }
  0xce   : > { %p5175_p4 = scmp.lt.u32.totalorder %s5166_s29, %s5902_s8 }
  0xcf   : > { %p5169_p7 = pnand %p5167_p5, %p5871_p10  ;;  %p5174_p0 = por %p5173_p13, %p5172_p3 }
  0xd1   : > { %p5170_p2 = pneg %p5169_p7  ;;  %p5176_p6 = por %p5175_p4, %p5174_p0 }
  0xd3   : > { %p5177_p9 = pnand %p5176_p6, %p5170_p2 }
  0xd5   : > { %5180 = shalt.err (!%p5177_p9)
}
  0xd6   : > { %s5181_s12 = scalar_lea.vmem %s5906_s15, 2048  ;;  %s5511_s18 = smov [#allocation21]  }
  0xd7   : > { %p5182_p1 = scmp.ne.s32.totalorder %s5906_s15, %s5181_s12  ;;  %s5186_s20 = sshll.u32 %s5511_s18, 4  ;;  %s5187_s20 = int_to_ptr.vmem [resolvable:$false] %s5186_s20 }
  0xd8   : > { %s5188_s23 = scalar_lea.vmem %s5187_s20, 4096  ;;  %p5189_p5 = scmp.lt.s32.totalorder %s5906_s15, %s5187_s20 }
  0xd9   : > { %p5184_p11 = pnand %p5182_p1, %p5871_p10  ;;  %p5190_p7 = scmp.lt.s32.totalorder %s5188_s23, %s5181_s12 }
  0xdb   : > { %p5185_p12 = pneg %p5184_p11  ;;  %p5191_p3 = por %p5190_p7, %p5189_p5 }
  0xdd   : > { %p5192_p13 = pnand %p5191_p3, %p5185_p12 }
  0xdf   : > { %5195 = shalt.err (!%p5192_p13)
}
  0xe0   : > { %s6991_s29 = smov 8   ;;  %s5512_s24 = smov [#allocation3]  }
  0xe1   : > { %4837 = dma.hbm_to_vmem [thread:$0]  (!%p5856_p8), %s5902_s8, 2048, %s5906_s15, %s5910_s14, %s6974_s28, %s6974_s28, %s6991_s29  }
  0xe2   : > { %s720_s1 = sshll.u32 %s5512_s24, 4  ;;  %s5513_s21 = smov [#allocation8]   ;;  %s721_s1 = int_to_ptr.vmem [resolvable:$true] %s720_s1 }
  0xe3   : > { %s761_s25 = sshll.u32 %s5513_s21, 4  ;;  %s6992_s20 = sld [smem:[#allocation41_spill]]  ;;  %s762_s25 = int_to_ptr.vmem [resolvable:$true] %s761_s25 }
  0xe4   : > { %p6993_p0 = scmp.ne.s32.totalorder %s6971_s4, 0 }
  0xe9   : > { %s5196_s23 = scalar_lea.hbm %s6992_s20, 256 }
  0xea   : > { %p5197_p2 = scmp.ne.s32.totalorder %s6992_s20, %s5196_s23  ;;  %p5203_p9 = scmp.lt.u32.totalorder %s5196_s23, %s6992_s20 }
  0xec   : > { %p5199_p4 = pnand %p5197_p2, %p6993_p0 }
  0xee   : > { %p5200_p6 = pneg %p5199_p4 }
  0xf0   : > { %p5205_p1 = pnand %p5203_p9, %p5200_p6 }
  0xf2   : > { %5208 = shalt.err (!%p5205_p1)
}
  0xf3   : > { %s5209_s15 = scalar_lea.vmem %s721_s1, 256  ;;  %p5217_p7 = scmp.lt.s32.totalorder %s721_s1, %s721_s1 }
  0xf4   : > { %p5210_p11 = scmp.ne.s32.totalorder %s721_s1, %s5209_s15  ;;  %p5218_p3 = scmp.lt.s32.totalorder %s5209_s15, %s5209_s15 }
  0xf6   : > { %p5212_p12 = pnand %p5210_p11, %p6993_p0  ;;  %p5219_p13 = por %p5218_p3, %p5217_p7 }
  0xf8   : > { %p5213_p5 = pneg %p5212_p12 }
  0xfa   : > { %p5220_p8 = pnand %p5219_p13, %p5213_p5 }
  0xfc   : > { %5223 = shalt.err (!%p5220_p8)
}
  0xfd   : > { %p6994_p2 = scmp.ne.s32.totalorder %s6969_s9, 0  ;;  %s6995_s8 = sld [smem:[#allocation44_spill]] }
  0xff   : > { %4803 = dma.hbm_to_vmem [thread:$0]  (!%p6994_p2), %s6992_s20, 256, %s721_s1, [#allocation4], %s6974_s28, %s6974_s28, %s6991_s29  }
 0x103   : > { %s5224_s24 = scalar_lea.hbm %s6995_s8, 256 }
 0x104   : > { %p5225_p4 = scmp.ne.s32.totalorder %s6995_s8, %s5224_s24  ;;  %p5231_p9 = scmp.lt.u32.totalorder %s5224_s24, %s6995_s8 }
 0x106   : > { %p5227_p8 = pnand %p5225_p4, %p6993_p0 }
 0x108   : > { %p5228_p6 = pneg %p5227_p8 }
 0x10a   : > { %p5233_p1 = pnand %p5231_p9, %p5228_p6 }
 0x10c   : > { %5236 = shalt.err (!%p5233_p1)
}
 0x10d   : > { %s5237_s15 = scalar_lea.vmem %s762_s25, 256  ;;  %p5245_p7 = scmp.lt.s32.totalorder %s762_s25, %s762_s25 }
 0x10e   : > { %p5238_p11 = scmp.ne.s32.totalorder %s762_s25, %s5237_s15  ;;  %p5246_p3 = scmp.lt.s32.totalorder %s5237_s15, %s5237_s15 }
 0x110   : > { %p5240_p12 = pnand %p5238_p11, %p6993_p0  ;;  %p5247_p13 = por %p5246_p3, %p5245_p7 }
 0x112   : > { %p5241_p5 = pneg %p5240_p12 }
 0x114   : > { %p5248_p10 = pnand %p5247_p13, %p5241_p5 }
 0x116   : > { %5251 = shalt.err (!%p5248_p10)
}
 0x117   : > { %4809 = dma.hbm_to_vmem [thread:$0]  (!%p6994_p2), %s6995_s8, 256, %s762_s25, [#allocation7], %s6974_s28, %s6974_s28, %s6991_s29  }
 0x118   : > { %s5514_s6 = smov [#allocation11]   ;;  %s5515_s5 = smov [#allocation14]  }
 0x119   : > { %s810_s3 = sshll.u32 %s5514_s6, 4  ;;  %s840_s24 = sshll.u32 %s5515_s5, 4  ;;  %s811_s3 = int_to_ptr.vmem [resolvable:$true] %s810_s3  ;;  %s841_s24 = int_to_ptr.vmem [resolvable:$true] %s840_s24 }
 0x11a   : > { %s6996_s12 = sld [smem:[#allocation49_spill]] }
 0x120   : > { %s5252_s23 = scalar_lea.hbm %s6996_s12, 512 }
 0x121   : > { %p5253_p10 = scmp.ne.s32.totalorder %s6996_s12, %s5252_s23  ;;  %p5259_p6 = scmp.lt.u32.totalorder %s5252_s23, %s6996_s12 }
 0x123   : > { %p5255_p4 = pnand %p5253_p10, %p6993_p0 }
 0x125   : > { %p5256_p8 = pneg %p5255_p4 }
 0x127   : > { %p5261_p9 = pnand %p5259_p6, %p5256_p8 }
 0x129   : > { %5264 = shalt.err (!%p5261_p9)
}
 0x12a   : > { %s5265_s25 = scalar_lea.vmem %s811_s3, 512  ;;  %p5273_p5 = scmp.lt.s32.totalorder %s811_s3, %s811_s3 }
 0x12b   : > { %p5266_p1 = scmp.ne.s32.totalorder %s811_s3, %s5265_s25  ;;  %p5274_p7 = scmp.lt.s32.totalorder %s5265_s25, %s5265_s25 }
 0x12d   : > { %p5268_p11 = pnand %p5266_p1, %p6993_p0  ;;  %p5275_p3 = por %p5274_p7, %p5273_p5 }
 0x12f   : > { %p5269_p12 = pneg %p5268_p11 }
 0x131   : > { %p5276_p13 = pnand %p5275_p3, %p5269_p12 }
 0x133   : > { %5279 = shalt.err (!%p5276_p13)
}
 0x134   : > { %4815 = dma.hbm_to_vmem [thread:$0]  (!%p6994_p2), %s6996_s12, 512, %s811_s3, [#allocation10], %s6974_s28, %s6974_s28, %s6991_s29  }
 0x135   : > { %s5280_s5 = scalar_lea.hbm %s6882_s11, 128 }
 0x136   : > { %p5281_p10 = scmp.ne.s32.totalorder %s6882_s11, %s5280_s5  ;;  %p5287_p6 = scmp.lt.u32.totalorder %s5280_s5, %s6882_s11 }
 0x138   : > { %p5283_p4 = pnand %p5281_p10, %p6993_p0 }
 0x13a   : > { %p5284_p8 = pneg %p5283_p4 }
 0x13c   : > { %p5289_p9 = pnand %p5287_p6, %p5284_p8 }
 0x13e   : > { %5292 = shalt.err (!%p5289_p9)
}
 0x13f   : > { %s5293_s1 = scalar_lea.vmem %s841_s24, 128  ;;  %p5301_p5 = scmp.lt.s32.totalorder %s841_s24, %s841_s24 }
 0x140   : > { %p5294_p1 = scmp.ne.s32.totalorder %s841_s24, %s5293_s1  ;;  %p5302_p7 = scmp.lt.s32.totalorder %s5293_s1, %s5293_s1 }
 0x142   : > { %p5296_p11 = pnand %p5294_p1, %p6993_p0  ;;  %p5303_p3 = por %p5302_p7, %p5301_p5 }
 0x144   : > { %p5297_p12 = pneg %p5296_p11 }
 0x146   : > { %p5304_p13 = pnand %p5303_p3, %p5297_p12 }
 0x148   : > { %5307 = shalt.err (!%p5304_p13)
}
 0x149   : > { %4821 = dma.hbm_to_vmem [thread:$0]  (!%p6994_p2), %s6882_s11, 128, %s841_s24, [#allocation13]  }
 0x14a   : > { %s5516_s2 = smov [#allocation17]   ;;  %s4214_s17 = sshll.u32 %s5842_s27, 1 }
 0x14b   : > { %s861_s20 = sshll.u32 %s5516_s2, 4  ;;  %s5308_s21 = scalar_lea.hbm %s6884_s13, 32  ;;  %s862_s20 = int_to_ptr.vmem [resolvable:$true] %s861_s20 }
 0x14c   : > { %p5309_p10 = scmp.ne.s32.totalorder %s6884_s13, %s5308_s21  ;;  %p5315_p6 = scmp.lt.u32.totalorder %s5308_s21, %s6884_s13 }
 0x14e   : > { %p5311_p4 = pnand %p5309_p10, %p6993_p0 }
 0x150   : > { %p5312_p8 = pneg %p5311_p4 }
 0x152   : > { %p5317_p9 = pnand %p5315_p6, %p5312_p8 }
 0x154   : > { %5320 = shalt.err (!%p5317_p9)
}
 0x155   : > { %s5321_s24 = scalar_lea.vmem %s862_s20, 32  ;;  %p5329_p5 = scmp.lt.s32.totalorder %s862_s20, %s862_s20 }
 0x156   : > { %p5322_p1 = scmp.ne.s32.totalorder %s862_s20, %s5321_s24  ;;  %p5330_p7 = scmp.lt.s32.totalorder %s5321_s24, %s5321_s24 }
 0x158   : > { %p5324_p11 = pnand %p5322_p1, %p6993_p0  ;;  %p5331_p3 = por %p5330_p7, %p5329_p5 }
 0x15a   : > { %p5325_p12 = pneg %p5324_p11 }
 0x15c   : > { %p5332_p13 = pnand %p5331_p3, %p5325_p12 }
 0x15e   : > { %5335 = shalt.err (!%p5332_p13)
}
 0x15f   : > { %4827 = dma.hbm_to_vmem [thread:$0]  (!%p6994_p2), %s6884_s13, 32, %s862_s20, [#allocation16], %s6987_s30, %s6987_s30, %s6986_s0  }
 0x160   : > { %s4305_s2 = sshll.u32 %s5496_s7, 5  ;;  %s908_s4 = scalar_lea.vmem [#allocation20], %s4214_s17 }
 0x161   : > { %s915_s6 = sshll.u32 %s908_s4, 4  ;;  %s6044_s18 = scalar_lea.hbm %s6887_s16, %s4305_s2  ;;  %s6046_s6 = int_to_ptr.vmem [resolvable:$true] %s915_s6 }
 0x162   : > { %s5336_s9 = scalar_lea.hbm %s6044_s18, 32  ;;  %p6997_p10 = scmp.ne.s32.totalorder %s6985_s22, 0 }
 0x163   : > { %p5337_p0 = scmp.ne.s32.totalorder %s6044_s18, %s5336_s9  ;;  %s5341_s17 = scalar_lea.hbm %s6887_s16, 64 }
 0x164   : > { %p5342_p2 = scmp.lt.u32.totalorder %s6044_s18, %s6887_s16  ;;  %p5343_p6 = scmp.lt.u32.totalorder %s5341_s17, %s5336_s9 }
 0x165   : > { %p5339_p4 = pnand %p5337_p0, %p6997_p10  ;;  %p5345_p1 = scmp.lt.u32.totalorder %s5336_s9, %s6044_s18 }
 0x166   : > { %p5344_p9 = por %p5343_p6, %p5342_p2 }
 0x167   : > { %p5340_p8 = pneg %p5339_p4 }
 0x168   : > { %p5346_p11 = por %p5345_p1, %p5344_p9 }
 0x16a   : > { %p5347_p12 = pnand %p5346_p11, %p5340_p8 }
 0x16c   : > { %5350 = shalt.err (!%p5347_p12)
}
 0x16d   : > { %s5351_s24 = scalar_lea.vmem %s6046_s6, 32  ;;  %s5517_s3 = smov [#allocation20]  }
 0x16e   : > { %p5352_p5 = scmp.ne.s32.totalorder %s6046_s6, %s5351_s24  ;;  %s5356_s25 = sshll.u32 %s5517_s3, 4  ;;  %s5357_s25 = int_to_ptr.vmem [resolvable:$false] %s5356_s25 }
 0x16f   : > { %s5358_s2 = scalar_lea.vmem %s5357_s25, 64  ;;  %p5359_p13 = scmp.lt.s32.totalorder %s6046_s6, %s5357_s25 }
 0x170   : > { %p5354_p7 = pnand %p5352_p5, %p6997_p10  ;;  %p5360_p0 = scmp.lt.s32.totalorder %s5358_s2, %s5351_s24 }
 0x172   : > { %p5355_p3 = pneg %p5354_p7  ;;  %p5361_p4 = por %p5360_p0, %p5359_p13 }
 0x174   : > { %p5362_p2 = pnand %p5361_p4, %p5355_p3 }
 0x176   : > { %5365 = shalt.err (!%p5362_p2)
}
 0x177   : > { %p6998_p8 = scmp.ne.s32.totalorder %s6983_s19, 0  ;;  %s4220_s4 = sshll.u32 %s5842_s27, 5 }
 0x178   : > { %s4307_s5 = sshll.u32 %s5496_s7, 9  ;;  %s6999_s20 = sld [smem:[#allocation58_spill]] }
 0x179   : > { %4834 = dma.hbm_to_vmem [thread:$0]  (!%p6998_p8), %s6044_s18, 32, %s6046_s6, %s5865_s10, %s6987_s30, %s6987_s30, %s6986_s0  }
 0x17a   : > { %s964_s17 = scalar_lea.vmem [#allocation23], %s4220_s4 }
 0x17b   : > { %s971_s15 = sshll.u32 %s964_s17, 4  ;;  %s6080_s15 = int_to_ptr.vmem [resolvable:$true] %s971_s15 }
 0x17e   : > { %s6078_s23 = scalar_lea.hbm %s6999_s20, %s4307_s5  ;;  %s5371_s0 = scalar_lea.hbm %s6999_s20, 1024 }
 0x17f   : > { %s5366_s1 = scalar_lea.hbm %s6078_s23, 512  ;;  %p5372_p11 = scmp.lt.u32.totalorder %s6078_s23, %s6999_s20 }
 0x180   : > { %p5367_p6 = scmp.ne.s32.totalorder %s6078_s23, %s5366_s1  ;;  %p5373_p12 = scmp.lt.u32.totalorder %s5371_s0, %s5366_s1 }
 0x181   : > { %p5375_p7 = scmp.lt.u32.totalorder %s5366_s1, %s6078_s23 }
 0x182   : > { %p5369_p9 = pnand %p5367_p6, %p6997_p10  ;;  %p5374_p5 = por %p5373_p12, %p5372_p11 }
 0x184   : > { %p5370_p1 = pneg %p5369_p9  ;;  %p5376_p3 = por %p5375_p7, %p5374_p5 }
 0x186   : > { %p5377_p13 = pnand %p5376_p3, %p5370_p1 }
 0x188   : > { %5380 = shalt.err (!%p5377_p13)
}
 0x189   : > { %s5381_s18 = scalar_lea.vmem %s6080_s15, 512  ;;  %s5518_s24 = smov [#allocation23]  }
 0x18a   : > { %p5382_p0 = scmp.ne.s32.totalorder %s6080_s15, %s5381_s18  ;;  %s5386_s3 = sshll.u32 %s5518_s24, 4  ;;  %s5387_s3 = int_to_ptr.vmem [resolvable:$false] %s5386_s3 }
 0x18b   : > { %s5388_s25 = scalar_lea.vmem %s5387_s3, 1024  ;;  %p5389_p6 = scmp.lt.s32.totalorder %s6080_s15, %s5387_s3 }
 0x18c   : > { %p5384_p4 = pnand %p5382_p0, %p6997_p10  ;;  %p5390_p9 = scmp.lt.s32.totalorder %s5388_s25, %s5381_s18 }
 0x18e   : > { %p5385_p2 = pneg %p5384_p4  ;;  %p5391_p11 = por %p5390_p9, %p5389_p6 }
 0x190   : > { %p5392_p12 = pnand %p5391_p11, %p5385_p2 }
 0x192   : > { %5395 = shalt.err (!%p5392_p12)
}
 0x193   : > { %4840 = dma.hbm_to_vmem [thread:$0]  (!%p6998_p8), %s6078_s23, 512, %s6080_s15, %s5910_s14, %s6974_s28, %s6974_s28, %s6991_s29  }
 0x194   : > { %s7000_s22 = sld [smem:[#allocation37_spill]] }
 0x19a   : > { %p7001_p10 = scmp.ne.s32.totalorder %s7000_s22, 0 }
 0x19b   : > { %p7002_p1 = scmp.eq.s32.totalorder (!%p7001_p10), %s5697_s26, 0 }
 0x19c   : > { %1010 = sbr.rel (%p7001_p10) target bundleno = 5675 (0x162b), region = 120 }
 0x1a3   : > { %5447 = dma.done.wait (%p7002_p1), [#allocation4], 256   ;;  %p7003_p5 = pmov %p7002_p1 }
 0x1a4   : > { %p7004_p7 = pmov %p7002_p1 }
 0x1a5   : > { %5449 = vsyncadd (%p7003_p5), [#allocation4], 4294967040 }
 0x1a6   : > { %5451 = dma.done.wait (%p7004_p7), [#allocation7], 512   ;;  %p7005_p3 = pmov %p7002_p1 }
 0x1a7   : > { %p7006_p13 = pmov %p7002_p1 }
 0x1a8   : > { %5453 = vsyncadd (%p7005_p3), [#allocation7], 4294966784 }
 0x1a9   : > { %5455 = dma.done.wait (%p7006_p13), [#allocation10], 544   ;;  %p7007_p8 = pmov %p7002_p1 }
 0x1aa   : > { %p7008_p0 = pmov %p7002_p1 }
 0x1ab   : > { %5457 = vsyncadd (%p7007_p8), [#allocation10], 4294966752 }
 0x1ac   : > { %5459 = dma.done.wait (%p7008_p0), [#allocation13], 512   ;;  %p7009_p4 = pmov %p7008_p0 }
 0x1ad   : > { %p7010_p2 = pmov %p7008_p0 }
 0x1ae   : > { %5461 = vsyncadd (%p7009_p4), [#allocation13], 4294966784 }
 0x1af   : > { %5463 = dma.done.wait (%p7010_p2), [#allocation16], 48   ;;  %p7011_p6 = pmov %p7008_p0 }
 0x1b0   : > { %s7012_s28 = sld [smem:[#allocation33_spill]]  ;;  %s7013_s14 = sld [smem:[#allocation39_spill]] }
 0x1b1   : > { %5465 = vsyncadd (%p7011_p6), [#allocation16], 4294967248  ;;  %s1048_s19 = sand.u32 1, %s5697_s26  }
 0x1b2   : > { %s1049_s4 = scalar_lea.sflag [#allocation19], %s1048_s19 }
 0x1b6   : > { %s6131_s29 = sand.u32 1, %s7012_s28   ;;  %p7014_p9 = scmp.ne.s32.totalorder %s7013_s14, 0 }
 0x1b7   : > { %s4233_s2 = sshll.u32 %s6131_s29, 2 }
 0x1b8   : > { %s6134_s5 = scalar_lea.vmem [#allocation18], %s4233_s2 }
 0x1b9   : > { %5467 = dma.done.wait (%p7014_p9), %s1049_s4, 96  }
 0x1ba   : > { %5469 = vsyncadd (%p7014_p9), %s1049_s4, 4294967200  ;;  %s4234_s21 = sshll.u32 %s6131_s29, 1  ;;  %s4235_s9 = sshll.u32 %s6131_s29, 7 }
 0x1bb   : > { %s6142_s23 = scalar_lea.vmem [#allocation20], %s4234_s21  ;;  %s1067_s17 = scalar_lea.sflag [#allocation22], %s1048_s19 }
 0x1bc   : > { %s6144_s15 = scalar_lea.vmem [#allocation21], %s4235_s9 }
 0x1bd   : > { %5471 = dma.done.wait (%p7014_p9), %s1067_s17, 2560  }
 0x1be   : > { %5473 = vsyncadd (%p7014_p9), %s1067_s17, 4294964736  ;;  %s7015_s1 = sld [smem:[#allocation35_spill]]  ;;  %s7017_s28 = sld [smem:[#allocation56_spill]]  ;;  %v6172_v0 = vld [vmem:[#allocation8] sm:$0xff]  ;;  %v6174_v1 = vld [vmem:[#allocation8 + $0x8] sm:$0xff]  ;;  %vm1370_vm0 = vcmask 1046528   ;;  %v1269_v20 = vlaneseq }
 0x1bf   : > { %s7016_s24 = sld [smem:[#allocation53_spill]]  ;;  %s7019_s8 = sld [smem:[#allocation48_spill]]  ;;  %v6211_v6 = vld [vmem:[#allocation11] sm:$0xff]  ;;  %v6213_v7 = vld [vmem:[#allocation11 + $0x8] sm:$0xff]  ;;  %v6215_v8 = vld [vmem:[#allocation11 + $0x10] sm:$0xff]  ;;  %vm1363_vm1 = vcmask 56320  }
 0x1c0   : > { %s7020_s18 = sld [smem:[#allocation57_spill]]  ;;  %s7023_s4 = sld [smem:[#allocation62_spill]]  ;;  %v6222_v9 = vld [vmem:[#allocation11 + $0x18] sm:$0xff]  ;;  %v6244_v14 = vld [vmem:[#allocation12] sm:$0xff]  ;;  %v6246_v15 = vld [vmem:[#allocation12 + $0x8] sm:$0xff]  ;;  %v1270_v21 = vshrl.u32 %v1269_v20, 7 }
 0x1c1   : > { %s7024_s17 = sld [smem:[#allocation50_spill]]  ;;  %v6248_v16 = vld [vmem:[#allocation12 + $0x10] sm:$0xf]  ;;  %v1355_v17 = vld [vmem:[#allocation14] sm:$0x7f]  ;;  %s7025_s21 = sld [smem:[#allocation43_spill]] }
 0x1c2   : > { %4415 = vmatprep.subr.msk.mxu0 %vm1370_vm0, %v1355_v17  ;;  %s7026_s25 = sld [smem:[#allocation45_spill]]  ;;  %v6261_v23 = vsub.s32 0, %v1270_v21  ;;  %v4244_v24 = vld [vmem:[#allocation9] ss:$0 sm:$0xff]  ;;  %s7027_s2 = sld [smem:[#allocation47_spill]]  ;;  %vm1455_vm2 = vcmask 261120  }
 0x1c3   : > { %4416 = vmatpush3.msk.msra.mxu0 %vm1370_vm0, %v1355_v17  ;;  %v4245_v28 = vld [vmem:[#allocation9 + $0x1] ss:$0 sm:$0xff]  ;;  %v4246_v31 = vld [vmem:[#allocation15] ss:$0 sm:$0xff]  ;;  %vm1459_vm3 = vcmask 254976   ;;  %s5524_s9 = smov 15  }
 0x1c4   : > { %p1219_p11 = scmp.lt.s32.totalorder %s7015_s1, 1  ;;  %vm1295_vm4 = vcmask 64512   ;;  %vm1298_vm5 = vcmask 130048   ;;  %vm1301_vm6 = vcmask 195584   ;;  %vm1342_vm7 = vcmask 39936   ;;  %s7029_s22 = sshll.u32 %s6131_s29, 5 }
 0x1c5   : > { %v6179_v2 = vld [vmem:[%s7019_s8] sm:$0xff]  ;;  %v6190_v3 = vld [vmem:[%s7019_s8 + $0x8] sm:$0xff]  ;;  %v6195_v4 = vld [vmem:[%s7019_s8 + $0x10] sm:$0xff]  ;;  %vm1345_vm8 = vcmask 80896   ;;  %vm1348_vm9 = vcmask 121856   ;;  %p4252_p12 = scmp.ne.s32.totalorder %s7015_s1, 0 }
 0x1c6   : > { %s6153_s27 = scalar_select %p1219_p11, %s7015_s1, 1  ;;  %v6200_v5 = vld [vmem:[%s7019_s8 + $0x18] sm:$0xff] }
 0x1c7   : > { %v6227_v10 = vld [vmem:[%s7024_s17] sm:$0xff]  ;;  %v6232_v11 = vld [vmem:[%s7024_s17 + $0x8] sm:$0xff]  ;;  %v6237_v12 = vld [vmem:[%s7024_s17 + $0x10] sm:$0xff] }
 0x1c8   : > { %s4308_s0 = sshll.u32 %s6153_s27, 7  ;;  %s4239_s30 = sshll.u32 %s6153_s27, 2  ;;  %v6242_v13 = vld [vmem:[%s7024_s17 + $0x18] sm:$0xff]  ;;  %v1353_v18 = vld [vmem:[%s7025_s21] sm:$0xff]  ;;  %v1354_v19 = vld [vmem:[%s7025_s21 + $0x8] sm:$0x3] }
 0x1c9   : > { %s6160_s3 = scalar_lea.vmem %s7016_s24, %s4308_s0  ;;  %s6165_s14 = scalar_lea.vmem %s7017_s28, %s4239_s30  ;;  %4417 = vmatprep.mubr.msk.f32.mxu0 %vm1363_vm1, %v1353_v18  ;;  %v1266_v22 = vld [vmem:[%s7026_s25 + $0x1] sm:$0x1]  ;;  %v1265_v38 = vld [vmem:[%s7026_s25] sm:$0x1] }
 0x1ca   : > { %s4240_s19 = sshll.u32 %s6153_s27, 1  ;;  %s4309_s30 = sshll.u32 %s6153_s27, 6  ;;  %4418 = vmatmul.mubr.msk.f32.vlgmr.msra.gmra.mrb[0].mxu0 %vm1363_vm1, %v1354_v19  ;;  %v1306_v25 = vld [vmem:[%s7027_s2] sm:$0x1f]  ;;  %v1276_v26 = vrot.slane %v1266_v22, %v6261_v23  ;;  %v1272_v39 = vrot.slane %v1265_v38, %v6261_v23 }
 0x1cb   : > { %s6184_s24 = scalar_lea.vmem %s7020_s18, %s4240_s19  ;;  %s7021_s0 = sld [smem:[#allocation60_spill]]  ;;  %v6268_v27 = vadd.f32 %v4244_v24, %v1306_v25 }
 0x1cc   : > { %s6220_s10 = scalar_lea.vmem %s7023_s4, %s4240_s19  ;;  %s7028_s4 = smov %s7027_s2 }
 0x1cd   : > { %v1307_v29 = vld [vmem:[%s7028_s4 + $0x8] sm:$0x1f]  ;;  %s5521_s18 = smov 16   ;;  %s5522_s19 = smov 10  }
 0x1ce   : > { %v6275_v30 = vadd.f32 %v4245_v28, %v1307_v29  ;;  %s5523_s28 = smov 24   ;;  %s6324_s2 = scalar_lea.vmem [#allocation23], %s7029_s22 }
 0x1d1   : > { %s6205_s6 = scalar_lea.vmem %s7021_s0, %s4309_s30  ;;  %s5519_s30 = smov 8  }
 0x1d2   : > { %1279 = vrot.lane.b32.xlu1 %v1276_v26, %s5519_s30  ;;  %s5520_s0 = smov 5  }
 0x1d6   : > { %1324 = vrot.lane.b32.xlu1 %v6268_v27, %s5520_s0 }
 0x1da   : > { %1326 = vrot.lane.b32.xlu1 %v6275_v30, %s5520_s0 }
 0x1de   : > { %1285 = vrot.lane.b32.xlu1 %v1276_v26, %s5521_s18 }
 0x1e2   : > { %1332 = vrot.lane.b32.xlu1 %v6275_v30, %s5522_s19 }
 0x1e6   : > { %1291 = vrot.lane.b32.xlu1 %v1276_v26, %s5523_s28 }
 0x244   : > { %v1280_v40 = vpop.permute.xlu1 %1279 }
 0x245   : > { %v1297_v44 = vsel %vm1295_vm4, %v1266_v22, %v1280_v40  ;;  %v4251_v40 = vld [vmem:[#allocation17 + $0x1] ss:$0 sm:$0xff] }
 0x248   : > { %v1325_v41 = vpop.permute.xlu1 %1324 }
 0x249   : > { %v1343_v17 = vsel %vm1342_vm7, %v6268_v27, %v1325_v41 }
 0x24c   : > { %v1327_v42 = vpop.permute.xlu1 %1326 }
 0x250   : > { %v1286_v43 = vpop.permute.xlu1 %1285 }
 0x251   : > { %v1300_v46 = vsel %vm1298_vm5, %v1297_v44, %v1286_v43  ;;  %v1451_v44 = vld [vmem:[#allocation6] sm:$0xff] }
 0x254   : > { %v1333_v45 = vpop.permute.xlu1 %1332 }
 0x258   : > { %v1292_v47 = vpop.permute.xlu1 %1291 }
 0x259   : > { %v6299_v48 = vsel %vm1301_vm6, %v1300_v46, %v1292_v47 }
 0x29d   : > { %v4419_v32 = vpop.f32.mrb[0].mxu0 }
 0x29e   : > { %v1440_v33 = vpop.f32.mrb[1].mxu0  ;;  %v1446_v35 = vadd.f32 %v4419_v32, %v4246_v31 }
 0x29f   : > { %v1441_v34 = vadd.f32 %v4246_v31, %v1440_v33 }
 0x2a0   : > { %v1460_v37 = vsel %vm1459_vm3, %v1446_v35, 0.0 }
 0x2a1   : > { %v1456_v36 = vsel %vm1455_vm2, %v1441_v34, 0.0 }
 0x2a2   : > { %1457 = vadd.xlane.f32.xlu0 %v1456_v36  ;;  %v4250_v36 = vld [vmem:[#allocation17] ss:$0 sm:$0xff] }
 0x2a6   : > { %1461 = vadd.xlane.f32.xlu0 %v1460_v37  ;;  %v1450_v37 = vld [vmem:[#allocation3 + $0x8] sm:$0x3] }
 0x2bc   : > { %1277 = vrot.lane.b32.xlu0 %v1272_v39, %s5519_s30 }
 0x2c0   : > { %1283 = vrot.lane.b32.xlu0 %v1272_v39, %s5521_s18 }
 0x2c4   : > { %1330 = vrot.lane.b32.xlu0 %v6268_v27, %s5522_s19 }
 0x2c8   : > { %1289 = vrot.lane.b32.xlu0 %v1272_v39, %s5523_s28 }
 0x2cc   : > { %1336 = vrot.lane.b32.xlu0 %v6268_v27, %s5524_s9  ;;  %v1344_v27 = vsel %vm1342_vm7, %v6275_v30, %v1327_v42  ;;  %v1449_v42 = vld [vmem:[#allocation3] sm:$0xff] }
 0x2cd   : > { %v1347_v32 = vsel %vm1345_vm8, %v1344_v27, %v1333_v45 }
 0x32f   : > { %v1458_v49 = vpop.xlane.xlu0 %1457 }
 0x330   : > { %v1464_v50 = vmul.f32 0.03125, %v1458_v49  ;;  %v1453_v49 = vadd.f32 %v1451_v44, %v1449_v42 }
 0x332   : > { %v1466_v53 = vsub.f32 %v1441_v34, %v1464_v50 }
 0x333   : > { %v1462_v51 = vpop.xlane.xlu0 %1461 }
 0x334   : > { %v1465_v52 = vmul.f32 0.03125, %v1462_v51  ;;  %v1468_v58 = vmul.f32 %v1466_v53, %v1466_v53 }
 0x336   : > { %v1467_v54 = vsub.f32 %v1446_v35, %v1465_v52  ;;  %v1470_v60 = vsel %vm1455_vm2, %v1468_v58, 0.0 }
 0x337   : > { %v1278_v55 = vpop.permute.xlu0 %1277 }
 0x338   : > { %v1469_v56 = vmul.f32 %v1467_v54, %v1467_v54  ;;  %v1296_v61 = vsel %vm1295_vm4, %v1265_v38, %v1278_v55  ;;  %v1452_v38 = vld [vmem:[#allocation6 + $0x8] sm:$0x3] }
 0x339   : > { %v1454_v41 = vadd.f32 %v1452_v38, %v1450_v37 }
 0x33a   : > { %v1473_v57 = vsel %vm1459_vm3, %v1469_v56, 0.0 }
 0x33b   : > { %1474 = vadd.xlane.f32.xlu1 %v1473_v57  ;;  %v1284_v59 = vpop.permute.xlu0 %1283 }
 0x33c   : > { %v1299_v63 = vsel %vm1298_vm5, %v1296_v61, %v1284_v59 }
 0x33f   : > { %1471 = vadd.xlane.f32.xlu1 %v1470_v60  ;;  %v1331_v62 = vpop.permute.xlu0 %1330 }
 0x340   : > { %v1346_v20 = vsel %vm1345_vm8, %v1343_v17, %v1331_v62 }
 0x343   : > { %v1290_v18 = vpop.permute.xlu0 %1289 }
 0x344   : > { %v6308_v19 = vsel %vm1301_vm6, %v1299_v63, %v1290_v18 }
 0x347   : > { %v1337_v21 = vpop.permute.xlu0 %1336 }
 0x348   : > { %v6312_v22 = vsel %vm1348_vm9, %v1346_v20, %v1337_v21 }
 0x350   : > { %1338 = vrot.lane.b32.xlu1 %v6275_v30, %s5524_s9 }
 0x3c8   : > { %v1475_v24 = vpop.xlane.xlu1 %1474 }
 0x3c9   : > { %v1477_v25 = vmul.f32 0.03125, %v1475_v24 }
 0x3cb   : > { %v1479_v26 = vadd.f32 1e-12, %v1477_v25 }
 0x3cc   : > { %v1472_v28 = vpop.xlane.xlu1 %1471 }
 0x3cd   : > { %4940 = vrsqrt.f32 %v1479_v26  ;;  %v1476_v29 = vmul.f32 0.03125, %v1472_v28 }
 0x3cf   : > { %v1478_v31 = vadd.f32 1e-12, %v1476_v29 }
 0x3d0   : > { %v1339_v33 = vpop.permute.xlu1 %1338 }
 0x3d1   : > { %4942 = vrsqrt.f32 %v1478_v31  ;;  %v6320_v34 = vsel %vm1348_vm9, %v1347_v32, %v1339_v33 }
 0x3d7   : > { %v4941_v35 = vpop.eup %4940 }
 0x3d8   : > { %v1483_v39 = vmul.f32 %v4941_v35, %v1467_v54 }
 0x3da   : > { %v1491_v43 = vmul.f32 %v4250_v36, %v1483_v39 }
 0x3db   : > { %v4943_v30 = vpop.eup %4942 }
 0x3dc   : > { %v1499_v46 = vadd.f32 %v4251_v40, %v1491_v43  ;;  %v1482_v47 = vmul.f32 %v4943_v30, %v1466_v53  ;;  %1505 = sbr.rel (%p4252_p12) target bundleno = 997 (0x3e5), region = 176 }
 0x3de   : > { %v1501_v45 = vadd.f32 %v1499_v46, %v1454_v41  ;;  %v1490_v50 = vmul.f32 %v4250_v36, %v1482_v47 }
 0x3e0   : > { %v1498_v51 = vadd.f32 %v4251_v40, %v1490_v50  ;;  %1507 = vst.msk [vmem:[#allocation2 + $0x8] sm:$0x3] (!%p4252_p12), %vm1459_vm3, %v1501_v45 }
 0x3e2   : > { %v1500_v52 = vadd.f32 %v1498_v51, %v1453_v49 }
 0x3e4   : > { %1506 = vst.msk [vmem:[#allocation2] sm:$0xff] %vm1455_vm2, %v1500_v52 }
 0x3e5 PF: > { %v1510_v53 = vld [vmem:[%s6160_s3] sm:$0xff]  ;;  %v1511_v54 = vld [vmem:[%s6160_s3 + $0x8] sm:$0xff]  ;;  %v1512_v55 = vld [vmem:[%s6160_s3 + $0x10] sm:$0xff]  ;;  %vm2187_vm10 = vcmask 1042432   ;;  %v5525_v30 = vmov 0.0|0.0   ;;  %vm5526_vm11 = vmmov 0  }
 0x3e6   : > { %v4622_v56 = vpack.c.bf16 %v1511_v54, %v1510_v53  ;;  %v1513_v57 = vld [vmem:[%s6160_s3 + $0x18] sm:$0xff]  ;;  %v1514_v60 = vld [vmem:[%s6160_s3 + $0x20] sm:$0xff]  ;;  %v1515_v61 = vld [vmem:[%s6160_s3 + $0x28] sm:$0xff]  ;;  %4646 = vmatprep.subr.bf16.mxu0 %v5525_v30  ;;  %v5527_v46 = vmov 0.0   ;;  %vm1986_vm12 = vcmask 192640   ;;  %vm1970_vm13 = vcmask 127040  }
 0x3e7   : > { %v4626_v59 = vpack.c.bf16 %v1513_v57, %v1512_v55  ;;  %v4630_v62 = vpack.c.bf16 %v1515_v61, %v1514_v60  ;;  %v1516_v63 = vld [vmem:[%s6160_s3 + $0x30] sm:$0xff]  ;;  %v1517_v17 = vld [vmem:[%s6160_s3 + $0x38] sm:$0xff]  ;;  %v4253_v21 = vld [vmem:[%s6134_s5] ss:$0 sm:$0xff]  ;;  %4461 = vmatprep.mubr.msk.f32.mxu0 %vm5526_vm11, %v5527_v46  ;;  %vm2002_vm14 = vcmask 258240   ;;  %vm1958_vm15 = vcmask 61440  }
 0x3e8   : > { %4623 = vmatprep.subr.bf16.mxu1 %v4622_v56  ;;  %v4634_v20 = vpack.c.bf16 %v1517_v17, %v1516_v63  ;;  %v4256_v31 = vld [vmem:[%s6134_s5 + $0x1] ss:$0 sm:$0xff]  ;;  %s5528_s29 = smov 112   ;;  %s5529_s1 = smov 120   ;;  %vm2404_vm1 = vcmask 1044480  }
 0x3e9   : > { %4625 = vmatpush3.bf16.msra.mxu1 %v4622_v56  ;;  %v6341_v18 = vld [vmem:[#allocation2 + $0x8] sm:$0x3] }
 0x3ea   : > { %4627 = vmatprep.subr.bf16.mxu1 %v4626_v59 }
 0x3eb   : > { %v6333_v58 = vld [vmem:[#allocation2] sm:$0xff] }
 0x3ec   : > { %4428 = vmatprep.mubr.msk.f32.mxu1 %vm1455_vm2, %v6333_v58 }
 0x3ed   : > { %4629 = vmatpush3.bf16.msra.mxu1 %v4626_v59 }
 0x3ee   : > { %4631 = vmatprep.subr.bf16.mxu1 %v4630_v62 }
 0x3f0   : > { %4429 = vmatmul.mubr.msk.f32.vlgmr.msra.gmra.mrb[0].mxu1 %vm1455_vm2, %v6341_v18 }
 0x3f1   : > { %4633 = vmatpush3.bf16.msra.mxu1 %v4630_v62  ;;  %4439 = vmatprep.mubr.msk.f32.mxu1 %vm1455_vm2, %v6172_v0 }
 0x3f2   : > { %4635 = vmatprep.subr.bf16.mxu1 %v4634_v20 }
 0x3f5   : > { %4637 = vmatpush3.bf16.msra.mxu1 %v4634_v20 }
 0x3f8   : > { %4440 = vmatmul.mubr.msk.f32.vlgmr.msra.gmra.mrb[2].mxu1 %vm1455_vm2, %v6174_v1 }
 0x3f9   : > { %4450 = vmatprep.mubr.msk.f32.mxu1 %vm1455_vm2, %v6172_v0 }
 0x4c3   : > { %v4430_v24 = vpop.f32.mrb[0].mxu1 }
 0x4c4   : > { %v1616_v25 = vadd.f32 %v4430_v24, %v4253_v21  ;;  %v1610_v26 = vpop.f32.mrb[1].mxu1 }
 0x4c5   : > { %v6352_v28 = vadd.f32 %v4253_v21, %v1610_v26 }
 0x4c6   : > { %v2189_v27 = vrot.slane %v1616_v25, 5 }
 0x4c7   : > { %v2188_v29 = vrot.slane %v6352_v28, 5 }
 0x4c9   : > { %v6357_v32 = vsel %vm2187_vm10, %v2188_v29, %v2189_v27 }
 0x4cb   : > { %v4441_v33 = vpop.f32.mrb[2].mxu1 }
 0x4cc   : > { %v1697_v35 = vpop.f32.mrb[3].mxu1  ;;  %v1703_v36 = vadd.f32 %v4441_v33, %v4256_v31 }
 0x4cd   : > { %v1698_v37 = vadd.f32 %v4256_v31, %v1697_v35 }
 0x4ce   : > { %2094 = vxpose.xlu0.b32.start.end [1/1] (short) (narrow) %v1703_v36, 32 }
 0x4db   : > { %1787 = vxpose.xlu0.b32.start.end [1/1] (short) (narrow) %v1698_v37, 32 }
 0x54e   : > { %v6359_v0 = vpop.trf.xlu0 }
 0x54f   : > { %2130 = vrot.lane.b32.xlu1 %v6359_v0, %s5519_s30 }
 0x552   : > { %v6363_v38 = vpop.trf.xlu0 }
 0x553   : > { %2142 = vrot.lane.b32.xlu1 %v6359_v0, %s5521_s18 }
 0x556   : > { %v6367_v39 = vpop.trf.xlu0 }
 0x557   : > { %2154 = vrot.lane.b32.xlu1 %v6359_v0, %s5523_s28 }
 0x55a   : > { %v6371_v40 = vpop.trf.xlu0 }
 0x55e   : > { %v1803_v41 = vpop.trf.xlu0 }
 0x55f   : > { %1823 = vrot.lane.b32.xlu1 %v1803_v41, %s5519_s30 }
 0x562   : > { %v1804_v43 = vpop.trf.xlu0 }
 0x563   : > { %1835 = vrot.lane.b32.xlu1 %v1803_v41, %s5521_s18  ;;  %1849 = vrot.lane.b32.xlu0 %v1804_v43, %s5523_s28 }
 0x566   : > { %v1805_v42 = vpop.trf.xlu0 }
 0x567   : > { %1847 = vrot.lane.b32.xlu1 %v1803_v41, %s5523_s28  ;;  %2136 = vrot.lane.b32.xlu0 %v6371_v40, %s5519_s30 }
 0x56a   : > { %v1806_v44 = vpop.trf.xlu0 }
 0x56b   : > { %2132 = vrot.lane.b32.xlu1 %v6363_v38, %s5519_s30  ;;  %2148 = vrot.lane.b32.xlu0 %v6371_v40, %s5521_s18 }
 0x56f   : > { %2144 = vrot.lane.b32.xlu1 %v6363_v38, %s5521_s18  ;;  %2160 = vrot.lane.b32.xlu0 %v6371_v40, %s5523_s28 }
 0x573   : > { %2156 = vrot.lane.b32.xlu1 %v6363_v38, %s5523_s28 }
 0x577   : > { %1825 = vrot.lane.b32.xlu1 %v1804_v43, %s5519_s30 }
 0x57b   : > { %1837 = vrot.lane.b32.xlu1 %v1804_v43, %s5521_s18 }
 0x57f   : > { %2134 = vrot.lane.b32.xlu1 %v6367_v39, %s5519_s30 }
 0x583   : > { %1827 = vrot.lane.b32.xlu1 %v1805_v42, %s5519_s30 }
 0x587   : > { %1839 = vrot.lane.b32.xlu1 %v1805_v42, %s5521_s18 }
 0x58b   : > { %1851 = vrot.lane.b32.xlu1 %v1805_v42, %s5523_s28 }
 0x58f   : > { %1829 = vrot.lane.b32.xlu1 %v1806_v44, %s5519_s30 }
 0x593   : > { %1841 = vrot.lane.b32.xlu1 %v1806_v44, %s5521_s18 }
 0x597   : > { %1853 = vrot.lane.b32.xlu1 %v1806_v44, %s5523_s28 }
 0x59b   : > { %2146 = vrot.lane.b32.xlu1 %v6367_v39, %s5521_s18  ;;  %s5530_s18 = smov 104  }
 0x59f   : > { %2158 = vrot.lane.b32.xlu1 %v6367_v39, %s5523_s28  ;;  %s7032_s28 = sld [smem:[#allocation61_spill]] }
 0x5c1   : > { %v2131_v47 = vpop.permute.xlu1 %2130 }
 0x5c5   : > { %v2143_v45 = vpop.permute.xlu1 %2142 }
 0x5c9   : > { %v2155_v49 = vpop.permute.xlu1 %2154 }
 0x5d1   : > { %v1824_v50 = vpop.permute.xlu1 %1823 }
 0x5d2   : > { %v1859_v57 = vsel %vm1295_vm4, %v1803_v41, %v1824_v50 }
 0x5d5   : > { %v1836_v51 = vpop.permute.xlu1 %1835  ;;  %v1850_v63 = vpop.permute.xlu0 %1849 }
 0x5d6   : > { %v1863_v59 = vsel %vm1298_vm5, %v1859_v57, %v1836_v51 }
 0x5d9   : > { %v1848_v52 = vpop.permute.xlu1 %1847  ;;  %v2137_v33 = vpop.permute.xlu0 %2136 }
 0x5da   : > { %v1867_v60 = vsel %vm1301_vm6, %v1863_v59, %v1848_v52 }
 0x5db   : > { %v1871_v21 = vmul.f32 %v1867_v60, %v6179_v2  ;;  %v2166_v60 = vsel %vm1295_vm4, %v6359_v0, %v2131_v47  ;;  %v2169_v0 = vsel %vm1295_vm4, %v6371_v40, %v2137_v33 }
 0x5dd   : > { %v2133_v53 = vpop.permute.xlu1 %2132  ;;  %v2149_v41 = vpop.permute.xlu0 %2148 }
 0x5de   : > { %v2167_v50 = vsel %vm1295_vm4, %v6363_v38, %v2133_v53 }
 0x5e1   : > { %v2145_v54 = vpop.permute.xlu1 %2144 }
 0x5e5   : > { %v2157_v55 = vpop.permute.xlu1 %2156 }
 0x5e9   : > { %v1826_v56 = vpop.permute.xlu1 %1825 }
 0x5ea   : > { %v1860_v61 = vsel %vm1295_vm4, %v1804_v43, %v1826_v56  ;;  %v2171_v56 = vsel %vm1298_vm5, %v2167_v50, %v2145_v54 }
 0x5ed   : > { %v1838_v62 = vpop.permute.xlu1 %1837 }
 0x5ee   : > { %v1864_v17 = vsel %vm1298_vm5, %v1860_v61, %v1838_v62  ;;  %v2170_v62 = vsel %vm1298_vm5, %v2166_v60, %v2143_v45 }
 0x5ef   : > { %v1868_v20 = vsel %vm1301_vm6, %v1864_v17, %v1850_v63  ;;  %v2161_v63 = vpop.permute.xlu0 %2160 }
 0x5f0   : > { %v1872_v24 = vmul.f32 %v1868_v20, %v6190_v3 }
 0x5f1   : > { %v2135_v25 = vpop.permute.xlu1 %2134 }
 0x5f2   : > { %v4647_v26 = vpack.c.bf16 %v1872_v24, %v1871_v21  ;;  %v2168_v21 = vsel %vm1295_vm4, %v6367_v39, %v2135_v25  ;;  %v1956_v25 = vrot.slane %v6308_v19, %v6261_v23 }
 0x5f4   : > { %4648 = vmatpush3.bf16.msra.mxu0 %v4647_v26 }
 0x5f5   : > { %v1828_v27 = vpop.permute.xlu1 %1827  ;;  %4649 = vmatprep.subr.bf16.mxu0 %v5525_v30 }
 0x5f6   : > { %v1861_v37 = vsel %vm1295_vm4, %v1805_v42, %v1828_v27  ;;  %v2175_v42 = vsel %vm1301_vm6, %v2171_v56, %v2157_v55  ;;  %v2173_v55 = vsel %vm1298_vm5, %v2169_v0, %v2149_v41  ;;  %v1520_v56 = vld [vmem:[%s6160_s3 + $0x50] sm:$0xff] }
 0x5f7   : > { %v2179_v54 = vmul.f32 %v2175_v42, %v6190_v3  ;;  %v2177_v45 = vsel %vm1301_vm6, %v2173_v55, %v2161_v63 }
 0x5f9   : > { %v1840_v29 = vpop.permute.xlu1 %1839 }
 0x5fa   : > { %v1865_v43 = vsel %vm1298_vm5, %v1861_v37, %v1840_v29 }
 0x5fd   : > { %v1852_v31 = vpop.permute.xlu1 %1851 }
 0x5fe   : > { %v1869_v51 = vsel %vm1301_vm6, %v1865_v43, %v1852_v31 }
 0x5ff   : > { %v1873_v38 = vmul.f32 %v1869_v51, %v6195_v4  ;;  %v1518_v51 = vld [vmem:[%s6160_s3 + $0x40] sm:$0xff] }
 0x601   : > { %v1830_v35 = vpop.permute.xlu1 %1829 }
 0x602   : > { %v1862_v52 = vsel %vm1295_vm4, %v1806_v44, %v1830_v35  ;;  %v2174_v44 = vsel %vm1301_vm6, %v2170_v62, %v2155_v49 }
 0x603   : > { %v2178_v47 = vmul.f32 %v2174_v44, %v6179_v2  ;;  %v2181_v2 = vmul.f32 %v2177_v45, %v6200_v5 }
 0x605   : > { %v1842_v36 = vpop.permute.xlu1 %1841  ;;  %v4659_v49 = vpack.c.bf16 %v2179_v54, %v2178_v47 }
 0x606   : > { %v1866_v57 = vsel %vm1298_vm5, %v1862_v52, %v1842_v36  ;;  %v1519_v52 = vld [vmem:[%s6160_s3 + $0x48] sm:$0xff] }
 0x609   : > { %v1854_v59 = vpop.permute.xlu1 %1853 }
 0x60a   : > { %v1870_v61 = vsel %vm1301_vm6, %v1866_v57, %v1854_v59  ;;  %v4638_v57 = vpack.c.bf16 %v1519_v52, %v1518_v51  ;;  %v1521_v59 = vld [vmem:[%s6160_s3 + $0x58] sm:$0xff] }
 0x60b   : > { %v1874_v53 = vmul.f32 %v1870_v61, %v6200_v5  ;;  %v4642_v60 = vpack.c.bf16 %v1521_v59, %v1520_v56 }
 0x60c   : > { %4639 = vmatprep.subr.bf16.mxu1 %v4638_v57 }
 0x60d   : > { %v4650_v17 = vpack.c.bf16 %v1874_v53, %v1873_v38  ;;  %v2147_v20 = vpop.permute.xlu1 %2146  ;;  %4641 = vmatpush3.bf16.msra.mxu1 %v4638_v57 }
 0x60e   : > { %v2172_v3 = vsel %vm1298_vm5, %v2168_v21, %v2147_v20  ;;  %4643 = vmatprep.subr.bf16.mxu1 %v4642_v60 }
 0x60f   : > { %4651 = vmatpush3.bf16.msra.mxu0 %v4650_v17 }
 0x610   : > { %4658 = vmatprep.subr.bf16.mxu0 %v5525_v30 }
 0x611   : > { %v2159_v24 = vpop.permute.xlu1 %2158  ;;  %4645 = vmatpush3.bf16.msra.mxu1 %v4642_v60 }
 0x612   : > { %v2176_v26 = vsel %vm1301_vm6, %v2172_v3, %v2159_v24  ;;  %4462 = vmatmul.mubr.msk.f32.vlgmr.msra.gmra.mrb[2].mxu0 %vm1455_vm2, %v6352_v28  ;;  %4652 = vmatprep.subr.bf16.mxu1 %v5525_v30 }
 0x613   : > { %v2180_v40 = vmul.f32 %v2176_v26, %v6195_v4  ;;  %4660 = vmatpush3.bf16.msra.mxu0 %v4659_v49  ;;  %4483 = vmatprep.mubr.msk.f32.mxu0 %vm5526_vm11, %v5527_v46 }
 0x614   : > { %4661 = vmatprep.subr.bf16.mxu0 %v5525_v30  ;;  %4451 = vmatmul.mubr.msk.f32.vlgmr.msra.gmra.mrb[4].mxu1 %vm1455_vm2, %v6174_v1 }
 0x615   : > { %v4662_v39 = vpack.c.bf16 %v2181_v2, %v2180_v40  ;;  %4472 = vmatprep.mubr.msk.f32.mxu1 %vm5526_vm11, %v5527_v46 }
 0x617   : > { %4663 = vmatpush3.bf16.msra.mxu0 %v4662_v39 }
 0x61a   : > { %4484 = vmatmul.mubr.msk.f32.vlgmr.msra.gmra.mrb[4].mxu0 %vm1455_vm2, %v6357_v32  ;;  %v2267_v32 = vrot.slane %v6299_v48, %v6261_v23 }
 0x6e5   : > { %v1948_v27 = vpop.f32.mrb[2].mxu0 }
 0x6e6   : > { %v1952_v28 = vmul.f32 0.35355338, %v1948_v27  ;;  %v4463_v29 = vpop.f32.mrb[3].mxu0 }
 0x6e8   : > { %v6453_v4 = vadd.f32 %v1956_v25, %v1952_v28 }
 0x6ea   : > { %v1987_v5 = vsel %vm1986_vm12, %v6453_v4, -inf  ;;  %v1971_v31 = vsel %vm1970_vm13, %v6453_v4, -inf  ;;  %v2003_v36 = vsel %vm2002_vm14, %v6453_v4, -inf  ;;  %v1959_v23 = vsel %vm1958_vm15, %v6453_v4, -inf }
 0x6eb   : > { %1988 = vmax.xlane.f32.xlu0 %v1987_v5  ;;  %1972 = vmax.xlane.f32.xlu1 %v1971_v31 }
 0x6ed   : > { %v2259_v33 = vpop.f32.mrb[4].mxu0 }
 0x6ee   : > { %v2263_v35 = vmul.f32 0.35355338, %v2259_v33  ;;  %v4485_v19 = vpop.f32.mrb[5].mxu0 }
 0x6ef   : > { %2004 = vmax.xlane.f32.xlu0 %v2003_v36  ;;  %v4452_v19 = vpop.f32.mrb[4].mxu1  ;;  %v4259_v36 = vld [vmem:[%s6134_s5 + $0x2] ss:$0 sm:$0xff] }
 0x6f0   : > { %v6460_v37 = vadd.f32 %v2267_v32, %v2263_v35 }
 0x6f2   : > { %v2295_v41 = vsel %vm1986_vm12, %v6460_v37, -inf  ;;  %v2280_v43 = vsel %vm1970_vm13, %v6460_v37, -inf  ;;  %v2310_v48 = vsel %vm2002_vm14, %v6460_v37, -inf  ;;  %v2269_v50 = vsel %vm1958_vm15, %v6460_v37, -inf }
 0x6f3   : > { %2296 = vmax.xlane.f32.xlu0 %v2295_v41  ;;  %2281 = vmax.xlane.f32.xlu1 %v2280_v43  ;;  %v6509_v41 = vadd.f32 %v4452_v19, %v4259_v36  ;;  %vm2984_vm12 = vcmask 36864   ;;  %vm3047_vm13 = vcmask 162816  }
 0x6f7   : > { %1960 = vmax.xlane.f32.xlu0 %v1959_v23  ;;  %2311 = vmax.xlane.f32.xlu1 %v2310_v48 }
 0x6fb   : > { %2270 = vmax.xlane.f32.xlu1 %v2269_v50 }
 0x778   : > { %v1989_v42 = vpop.xlane.xlu0 %1988  ;;  %v1973_v61 = vpop.xlane.xlu1 %1972 }
 0x779   : > { %v1990_v62 = vsub.f32 %v6453_v4, %v1989_v42  ;;  %v1974_v38 = vsub.f32 %v6453_v4, %v1973_v61 }
 0x77b   : > { %v1991_v53 = vmul.f32 1.442695, %v1990_v62  ;;  %v1975_v44 = vmul.f32 1.442695, %v1974_v38  ;;  %v1778_v62 = vpop.f32.mrb[5].mxu1 }
 0x77c   : > { %v2005_v63 = vpop.xlane.xlu0 %2004  ;;  %v1779_v38 = vadd.f32 %v4259_v36, %v1778_v62 }
 0x77d   : > { %4944 = vpow2.f32 %v1991_v53  ;;  %v2006_v54 = vsub.f32 %v6453_v4, %v2005_v63 }
 0x77e   : > { %4946 = vpow2.f32 %v1975_v44  ;;  %v1875_v53 = vmul.f32 %v1779_v38, %v6211_v6  ;;  %v1876_v44 = vmul.f32 %v1779_v38, %v6213_v7  ;;  %v1877_v63 = vmul.f32 %v1779_v38, %v6215_v8 }
 0x77f   : > { %v2007_v17 = vmul.f32 1.442695, %v2006_v54  ;;  %v1878_v54 = vmul.f32 %v1779_v38, %v6222_v9 }
 0x780   : > { %v2297_v20 = vpop.xlane.xlu0 %2296  ;;  %v2282_v0 = vpop.xlane.xlu1 %2281 }
 0x781   : > { %4948 = vpow2.f32 %v2007_v17  ;;  %v2298_v1 = vsub.f32 %v6460_v37, %v2297_v20  ;;  %v2283_v47 = vsub.f32 %v6460_v37, %v2282_v0  ;;  %v4653_v17 = vpack.c.bf16 %v1876_v44, %v1875_v53 }
 0x782   : > { %v4656_v20 = vpack.c.bf16 %v1878_v54, %v1877_v63  ;;  %v4266_v54 = vld [vmem:[%s6134_s5 + $0x3] ss:$0 sm:$0xff]  ;;  %s5531_s5 = smov 118  }
 0x783   : > { %v2299_v55 = vmul.f32 1.442695, %v2298_v1  ;;  %v2284_v45 = vmul.f32 1.442695, %v2283_v47  ;;  %4654 = vmatpush3.bf16.msra.mxu1 %v4653_v17 }
 0x784   : > { %v2312_v21 = vpop.xlane.xlu1 %2311  ;;  %v1961_v27 = vpop.xlane.xlu0 %1960  ;;  %4655 = vmatprep.subr.bf16.mxu1 %v5525_v30 }
 0x785   : > { %4950 = vpow2.f32 %v2299_v55  ;;  %v2313_v49 = vsub.f32 %v6460_v37, %v2312_v21  ;;  %v1962_v28 = vsub.f32 %v6453_v4, %v1961_v27 }
 0x786   : > { %4952 = vpow2.f32 %v2284_v45 }
 0x787   : > { %v6484_v3 = vpop.eup %4944  ;;  %v2314_v24 = vmul.f32 1.442695, %v2313_v49  ;;  %v1963_v29 = vmul.f32 1.442695, %v1962_v28  ;;  %4657 = vmatpush3.bf16.msra.mxu1 %v4656_v20 }
 0x788   : > { %v6486_v26 = vpop.eup %4946  ;;  %1994 = vrot.lane.b32.xlu1 %v6484_v3, %s5528_s29  ;;  %v2271_v32 = vpop.xlane.xlu1 %2270  ;;  %4664 = vmatprep.subr.bf16.mxu1 %v5525_v30 }
 0x789   : > { %1978 = vrot.lane.b32.xlu0 %v6486_v26, %s5529_s1  ;;  %4954 = vpow2.f32 %v2314_v24  ;;  %v2272_v33 = vsub.f32 %v6460_v37, %v2271_v32 }
 0x78a   : > { %4956 = vpow2.f32 %v1963_v29 }
 0x78b   : > { %v6490_v2 = vpop.eup %4948  ;;  %v2273_v35 = vmul.f32 1.442695, %v2272_v33  ;;  %v2182_v33 = vmul.f32 %v6509_v41, %v6211_v6  ;;  %v2185_v6 = vmul.f32 %v6509_v41, %v6222_v9 }
 0x78c   : > { %2010 = vrot.lane.b32.xlu1 %v6490_v2, %s5530_s18 }
 0x78d   : > { %4958 = vpow2.f32 %v2273_v35  ;;  %v2183_v35 = vmul.f32 %v6509_v41, %v6213_v7 }
 0x78f   : > { %v6493_v40 = vpop.eup %4950  ;;  %v4665_v7 = vpack.c.bf16 %v2183_v35, %v2182_v33  ;;  %v2536_v35 = vld [vmem:[%s6144_s15] sm:$0xff] }
 0x790   : > { %v6495_v39 = vpop.eup %4952  ;;  %2302 = vrot.lane.b32.xlu1 %v6493_v40, %s5528_s29 }
 0x791   : > { %2287 = vrot.lane.b32.xlu0 %v6495_v39, %s5529_s1 }
 0x793   : > { %v6499_v25 = vpop.eup %4954 }
 0x794   : > { %v6503_v5 = vpop.eup %4956 }
 0x795   : > { %2317 = vrot.lane.b32.xlu0 %v6499_v25, %s5530_s18  ;;  %v1965_v31 = vsel %vm1958_vm15, %v6503_v5, 0.0 }
 0x797   : > { %v4959_v52 = vpop.eup %4958 }
 0x798   : > { %v2275_v56 = vsel %vm1958_vm15, %v4959_v52, 0.0 }
 0x7b4   : > { %1966 = vadd.xlane.f32.xlu1 %v1965_v31 }
 0x7fa   : > { %v1995_v43 = vpop.permute.xlu1 %1994 }
 0x7fb   : > { %v1979_v23 = vpop.permute.xlu0 %1978  ;;  %v1997_v51 = vsel %vm1958_vm15, %v1995_v43, 0.0 }
 0x7fc   : > { %v1981_v4 = vsel %vm1958_vm15, %v1979_v23, 0.0 }
 0x7fd   : > { %1982 = vadd.xlane.f32.xlu0 %v1981_v4 }
 0x7fe   : > { %v2011_v48 = vpop.permute.xlu1 %2010 }
 0x7ff   : > { %v2013_v50 = vsel %vm1958_vm15, %v2011_v48, 0.0  ;;  %v2184_v48 = vmul.f32 %v6509_v41, %v6215_v8 }
 0x800   : > { %2014 = vadd.xlane.f32.xlu1 %v2013_v50 }
 0x801   : > { %1998 = vadd.xlane.f32.xlu0 %v1997_v51  ;;  %v4668_v9 = vpack.c.bf16 %v2185_v6, %v2184_v48 }
 0x802   : > { %v2303_v59 = vpop.permute.xlu1 %2302 }
 0x803   : > { %v2288_v37 = vpop.permute.xlu0 %2287  ;;  %v2305_v61 = vsel %vm1958_vm15, %v2303_v59, 0.0  ;;  %v1523_v59 = vld [vmem:[%s6160_s3 + $0x68] sm:$0xff] }
 0x804   : > { %v2290_v57 = vsel %vm1958_vm15, %v2288_v37, 0.0 }
 0x805   : > { %2276 = vadd.xlane.f32.xlu0 %v2275_v56  ;;  %2291 = vadd.xlane.f32.xlu1 %v2290_v57 }
 0x807   : > { %v2318_v60 = vpop.permute.xlu0 %2317 }
 0x808   : > { %v2320_v42 = vsel %vm1958_vm15, %v2318_v60, 0.0 }
 0x809   : > { %2321 = vadd.xlane.f32.xlu1 %v2320_v42  ;;  %2306 = vadd.xlane.f32.xlu0 %v2305_v61  ;;  %v1524_v42 = vld [vmem:[%s6160_s3 + $0x70] sm:$0xff]  ;;  %v1525_v61 = vld [vmem:[%s6160_s3 + $0x78] sm:$0xff] }
 0x841   : > { %v1967_v0 = vpop.xlane.xlu1 %1966 }
 0x88a   : > { %v1983_v1 = vpop.xlane.xlu0 %1982 }
 0x88b   : > { %4960 = vrcp.f32 %v1983_v1 }
 0x88c   : > { %4962 = vrcp.f32 %v1967_v0 }
 0x88d   : > { %v2015_v47 = vpop.xlane.xlu1 %2014 }
 0x88e   : > { %v1999_v55 = vpop.xlane.xlu0 %1998  ;;  %4964 = vrcp.f32 %v2015_v47 }
 0x88f   : > { %4966 = vrcp.f32 %v1999_v55 }
 0x892   : > { %v2277_v45 = vpop.xlane.xlu0 %2276  ;;  %v2292_v21 = vpop.xlane.xlu1 %2291 }
 0x893   : > { %4968 = vrcp.f32 %v2277_v45 }
 0x894   : > { %4970 = vrcp.f32 %v2292_v21 }
 0x895   : > { %v4961_v49 = vpop.eup %4960 }
 0x896   : > { %v4963_v24 = vpop.eup %4962  ;;  %v2307_v27 = vpop.xlane.xlu0 %2306  ;;  %v1985_v29 = vmul.f32 %v4961_v49, %v6486_v26 }
 0x897   : > { %v2322_v28 = vpop.xlane.xlu1 %2321  ;;  %4972 = vrcp.f32 %v2307_v27  ;;  %v1969_v19 = vmul.f32 %v4963_v24, %v6503_v5 }
 0x898   : > { %v4965_v31 = vpop.eup %4964  ;;  %4974 = vrcp.f32 %v2322_v28 }
 0x899   : > { %v4967_v32 = vpop.eup %4966  ;;  %v2017_v36 = vmul.f32 %v4965_v31, %v6490_v2  ;;  %v2018_v23 = vsel %vm1295_vm4, %v1969_v19, %v1985_v29  ;;  %v2537_v19 = vld [vmem:[%s6144_s15 + $0x8] sm:$0xff] }
 0x89a   : > { %v2001_v43 = vmul.f32 %v4967_v32, %v6484_v3 }
 0x89c   : > { %v2019_v4 = vsel %vm1298_vm5, %v2018_v23, %v2001_v43  ;;  %v4678_v43 = vpack.c.bf16 %v2537_v19, %v2536_v35  ;;  %v2541_v23 = vld [vmem:[%s6144_s15 + $0x28] sm:$0xff] }
 0x89d   : > { %v4969_v26 = vpop.eup %4968  ;;  %v2020_v50 = vsel %vm1301_vm6, %v2019_v4, %v2017_v36  ;;  %v2540_v36 = vld [vmem:[%s6144_s15 + $0x20] sm:$0xff]  ;;  %v2538_v4 = vld [vmem:[%s6144_s15 + $0x10] sm:$0xff] }
 0x89e   : > { %v4971_v51 = vpop.eup %4970  ;;  %4473 = vmatmul.mubr.msk.f32.vlgmr.msra.gmra.mrb[6].mxu1 %vm1455_vm2, %v2020_v50  ;;  %v2279_v3 = vmul.f32 %v4969_v26, %v4959_v52  ;;  %v2539_v26 = vld [vmem:[%s6144_s15 + $0x18] sm:$0xff]  ;;  %v4686_v48 = vpack.c.bf16 %v2541_v23, %v2540_v36  ;;  %v2542_v50 = vld [vmem:[%s6144_s15 + $0x30] sm:$0xff] }
 0x89f   : > { %4666 = vmatpush3.bf16.msra.mxu1 %v4665_v7  ;;  %4494 = vmatprep.mubr.msk.f32.mxu1 %vm5526_vm11, %v5527_v46  ;;  %v2294_v2 = vmul.f32 %v4971_v51, %v6495_v39  ;;  %v1522_v39 = vld [vmem:[%s6160_s3 + $0x60] sm:$0xff]  ;;  %v4682_v6 = vpack.c.bf16 %v2539_v26, %v2538_v4  ;;  %v2543_v7 = vld [vmem:[%s6144_s15 + $0x38] sm:$0xff]  ;;  %s5533_s3 = smov 113  }
 0x8a0   : > { %4667 = vmatprep.subr.bf16.mxu1 %v5525_v30  ;;  %v4670_v60 = vpack.c.bf16 %v1523_v59, %v1522_v39  ;;  %v4690_v51 = vpack.c.bf16 %v2543_v7, %v2542_v50  ;;  %v4269_v39 = vld [vmem:[%s6142_s23] ss:$0 sm:$0xff] }
 0x8a1   : > { %v4973_v8 = vpop.eup %4972  ;;  %v2325_v56 = vsel %vm1295_vm4, %v2279_v3, %v2294_v2  ;;  %v2544_v3 = vld [vmem:[%s6144_s15 + $0x40] sm:$0xff]  ;;  %v2545_v2 = vld [vmem:[%s6144_s15 + $0x48] sm:$0xff]  ;;  %vm2903_vm4 = vcmask 1041408  }
 0x8a2   : > { %v4975_v5 = vpop.eup %4974  ;;  %v2309_v41 = vmul.f32 %v4973_v8, %v6493_v40  ;;  %4671 = vmatprep.subr.bf16.mxu0 %v4670_v60  ;;  %v4674_v40 = vpack.c.bf16 %v1525_v61, %v1524_v42  ;;  %v4694_v8 = vpack.c.bf16 %v2545_v2, %v2544_v3  ;;  %v4270_v61 = vld [vmem:[%s6142_s23 + $0x1] ss:$0 sm:$0xff]  ;;  %s5532_s23 = smov 123  }
 0x8a3   : > { %4669 = vmatpush3.bf16.msra.mxu1 %v4668_v9  ;;  %v2324_v37 = vmul.f32 %v4975_v5, %v6499_v25  ;;  %4673 = vmatpush3.bf16.msra.mxu0 %v4670_v60 }
 0x8a4   : > { %v2326_v57 = vsel %vm1298_vm5, %v2325_v56, %v2309_v41  ;;  %4675 = vmatprep.subr.bf16.mxu0 %v4674_v40  ;;  %4679 = vmatprep.subr.bf16.mxu1 %v4678_v43  ;;  %vm3051_vm5 = vcmask 1043456  }
 0x8a5   : > { %v2327_v52 = vsel %vm1301_vm6, %v2326_v57, %v2324_v37  ;;  %vm2996_vm6 = vcmask 77864  }
 0x8a6   : > { %4495 = vmatmul.mubr.msk.f32.vlgmr.msra.gmra.mrb[8].mxu1 %vm1455_vm2, %v2327_v52 }
 0x8a7   : > { %4677 = vmatpush3.bf16.msra.mxu0 %v4674_v40  ;;  %4681 = vmatpush3.bf16.msra.mxu1 %v4678_v43 }
 0x8a8   : > { %4687 = vmatprep.subr.bf16.mxu0 %v4686_v48  ;;  %4683 = vmatprep.subr.bf16.mxu1 %v4682_v6 }
 0x8ab   : > { %4685 = vmatpush3.bf16.msra.mxu1 %v4682_v6 }
 0x8ac   : > { %4695 = vmatprep.subr.bf16.mxu1 %v4694_v8 }
 0x971   : > { %v2090_v25 = vpop.f32.mrb[6].mxu1 }
 0x972   : > { %v4474_v62 = vpop.f32.mrb[7].mxu1 }
 0x973   : > { %v2546_v62 = vld [vmem:[%s6144_s15 + $0x50] sm:$0xff] }
 0x979   : > { %v2397_v38 = vpop.f32.mrb[8].mxu1 }
 0x97a   : > { %v2402_v53 = vrot.slane %v2397_v38, 3  ;;  %v4496_v44 = vpop.f32.mrb[9].mxu1  ;;  %v2547_v38 = vld [vmem:[%s6144_s15 + $0x58] sm:$0xff] }
 0x97c   : > { %v2405_v63 = vsel %vm2404_vm1, %v2090_v25, %v2402_v53 }
 0x97d   : > { %4505 = vmatprep.mubr.msk.f32.mxu0 %vm1455_vm2, %v2405_v63  ;;  %v4698_v63 = vpack.c.bf16 %v2547_v38, %v2546_v62 }
 0x97e   : > { %4506 = vmatmul.mubr.msk.f32.vlgmr.msra.gmra.mrb[6].mxu0 %vm1455_vm2, %v2402_v53 }
 0x97f   : > { %4689 = vmatpush3.bf16.msra.mxu0 %v4686_v48 }
 0x980   : > { %4691 = vmatprep.subr.bf16.mxu0 %v4690_v51 }
 0x983   : > { %4693 = vmatpush3.bf16.msra.mxu0 %v4690_v51 }
 0x984   : > { %4702 = vmatprep.subr.bf16.mxu0 %v5525_v30 }
 0xa51   : > { %v4507_v17 = vpop.f32.mrb[6].mxu0 }
 0xa52   : > { %v2489_v20 = vadd.f32 %v4507_v17, %v4266_v54  ;;  %v2483_v0 = vpop.f32.mrb[7].mxu0  ;;  %v4274_v17 = vld [vmem:[%s6165_s14 + $0x1] ss:$0 sm:$0xff] }
 0xa53   : > { %v2484_v1 = vadd.f32 %v4266_v54, %v2483_v0  ;;  %v4271_v54 = vld [vmem:[%s6165_s14] ss:$0 sm:$0xff] }
 0xa54   : > { %v2493_v47 = vadd.f32 %v2489_v20, %v6341_v18 }
 0xa55   : > { %v2492_v55 = vadd.f32 %v2484_v1, %v6333_v58 }
 0xa56   : > { %v2497_v45 = vsel %vm1459_vm3, %v2493_v47, 0.0 }
 0xa57   : > { %2498 = vadd.xlane.f32.xlu1 %v2497_v45  ;;  %v2494_v21 = vsel %vm1455_vm2, %v2492_v55, 0.0 }
 0xa58   : > { %2495 = vadd.xlane.f32.xlu0 %v2494_v21 }
 0xae4   : > { %v2499_v49 = vpop.xlane.xlu1 %2498 }
 0xae5   : > { %v2501_v24 = vmul.f32 0.03125, %v2499_v49  ;;  %v2496_v27 = vpop.xlane.xlu0 %2495 }
 0xae6   : > { %v2500_v28 = vmul.f32 0.03125, %v2496_v27 }
 0xae7   : > { %v2503_v29 = vsub.f32 %v2493_v47, %v2501_v24 }
 0xae8   : > { %v2502_v18 = vsub.f32 %v2492_v55, %v2500_v28 }
 0xae9   : > { %v2505_v58 = vmul.f32 %v2503_v29, %v2503_v29 }
 0xaea   : > { %v2504_v31 = vmul.f32 %v2502_v18, %v2502_v18 }
 0xaeb   : > { %v2509_v32 = vsel %vm1459_vm3, %v2505_v58, 0.0  ;;  %v4277_v58 = vld [vmem:[%s6165_s14 + $0x2] ss:$0 sm:$0xff] }
 0xaec   : > { %2510 = vadd.xlane.f32.xlu1 %v2509_v32  ;;  %v2506_v33 = vsel %vm1455_vm2, %v2504_v31, 0.0 }
 0xaed   : > { %2507 = vadd.xlane.f32.xlu0 %v2506_v33 }
 0xb79   : > { %v2511_v9 = vpop.xlane.xlu1 %2510 }
 0xb7a   : > { %v2513_v5 = vmul.f32 0.03125, %v2511_v9  ;;  %v2508_v41 = vpop.xlane.xlu0 %2507 }
 0xb7b   : > { %v2512_v37 = vmul.f32 0.03125, %v2508_v41 }
 0xb7c   : > { %v2515_v56 = vadd.f32 1e-12, %v2513_v5 }
 0xb7d   : > { %v2514_v57 = vadd.f32 1e-12, %v2512_v37 }
 0xb7e   : > { %4976 = vrsqrt.f32 %v2515_v56 }
 0xb7f   : > { %4978 = vrsqrt.f32 %v2514_v57 }
 0xb88   : > { %v4977_v52 = vpop.eup %4976 }
 0xb89   : > { %v4979_v59 = vpop.eup %4978  ;;  %v2519_v60 = vmul.f32 %v4977_v52, %v2503_v29 }
 0xb8a   : > { %v2518_v42 = vmul.f32 %v4979_v59, %v2502_v18 }
 0xb8b   : > { %v2527_v40 = vmul.f32 %v4269_v39, %v2519_v60 }
 0xb8c   : > { %v2526_v25 = vmul.f32 %v4269_v39, %v2518_v42 }
 0xb8d   : > { %v6581_v44 = vadd.f32 %v4270_v61, %v2527_v40 }
 0xb8e   : > { %v6579_v53 = vadd.f32 %v4270_v61, %v2526_v25 }
 0xb90   : > { %4516 = vmatprep.mubr.msk.f32.mxu1 %vm1455_vm2, %v6579_v53  ;;  %4527 = vmatprep.mubr.msk.f32.mxu0 %vm1455_vm2, %v6579_v53 }
 0xb91   : > { %4517 = vmatmul.mubr.msk.f32.vlgmr.msra.gmra.mrb[10].mxu1 %vm1455_vm2, %v6581_v44  ;;  %4528 = vmatmul.mubr.msk.f32.vlgmr.msra.gmra.mrb[8].mxu0 %vm1455_vm2, %v6581_v44 }
 0xb92   : > { %4697 = vmatpush3.bf16.msra.mxu1 %v4694_v8  ;;  %4538 = vmatprep.mubr.msk.f32.mxu1 %vm1455_vm2, %v6579_v53 }
 0xb93   : > { %4699 = vmatprep.subr.bf16.mxu1 %v4698_v63  ;;  %4549 = vmatprep.mubr.msk.f32.mxu0 %vm5526_vm11, %v5527_v46 }
 0xb96   : > { %4701 = vmatpush3.bf16.msra.mxu1 %v4698_v63 }
 0xb97   : > { %4708 = vmatprep.subr.bf16.mxu1 %v5525_v30 }
 0xb99   : > { %4539 = vmatmul.mubr.msk.f32.vlgmr.msra.gmra.mrb[12].mxu1 %vm1455_vm2, %v6581_v44 }
 0xb9a   : > { %4558 = vmatprep.mubr.msk.f32.mxu1 %vm5526_vm11, %v5527_v46 }
 0xc64   : > { %v4518_v20 = vpop.f32.mrb[10].mxu1  ;;  %v4529_v0 = vpop.f32.mrb[8].mxu0 }
 0xc65   : > { %v2642_v1 = vadd.f32 %v4518_v20, %v4271_v54  ;;  %v2723_v47 = vadd.f32 %v4529_v0, %v4274_v17  ;;  %v2636_v55 = vpop.f32.mrb[11].mxu1  ;;  %v2717_v45 = vpop.f32.mrb[9].mxu0 }
 0xc66   : > { %v6602_v21 = vadd.f32 %v4271_v54, %v2636_v55  ;;  %v2718_v49 = vadd.f32 %v4274_v17, %v2717_v45 }
 0xc67   : > { %v3238_v24 = vrot.slane %v2642_v1, 5  ;;  %v3128_v27 = vrot.slane %v2723_v47, 5 }
 0xc68   : > { %v3237_v28 = vrot.slane %v6602_v21, 5  ;;  %v3127_v29 = vrot.slane %v2718_v49, 5  ;;  %2807 = vxpose.xlu0.b32.start.end [1/1] (short) (narrow) %v2718_v49, 32 }
 0xc6a   : > { %v3129_v18 = vsel %vm2187_vm10, %v3127_v29, %v3128_v27  ;;  %v6608_v31 = vsel %vm2187_vm10, %v3237_v28, %v3238_v24 }
 0xc6b   : > { %3131 = vxpose.xlu1.b32.start.end [1/1] (short) (narrow) %v3129_v18, 32 }
 0xc6c   : > { %v4540_v32 = vpop.f32.mrb[12].mxu1 }
 0xc6d   : > { %v2804_v33 = vadd.f32 %v4540_v32, %v4277_v58  ;;  %v2798_v35 = vpop.f32.mrb[13].mxu1 }
 0xc6e   : > { %v2799_v19 = vadd.f32 %v4277_v58, %v2798_v35 }
 0xc6f   : > { %v3221_v36 = vrot.slane %v2804_v33, 5  ;;  %v3224_v43 = vrot.slane %v2804_v33, 3  ;;  %v3227_v23 = vrot.slane %v2804_v33, 6 }
 0xc70   : > { %v2896_v4 = vrot.slane %v2799_v19, 3  ;;  %v2898_v26 = vrot.slane %v2799_v19, 6  ;;  %v2900_v48 = vrot.slane %v2799_v19, 1  ;;  %v3220_v6 = vrot.slane %v2799_v19, 5 }
 0xc72   : > { %v2902_v50 = vsel %vm2404_vm1, %v2799_v19, %v2896_v4  ;;  %v2904_v7 = vsel %vm2903_vm4, %v2896_v4, %v2898_v26  ;;  %v3222_v51 = vsel %vm2187_vm10, %v3220_v6, %v3221_v36  ;;  %v3225_v8 = vsel %vm2404_vm1, %v2896_v4, %v3224_v43 }
 0xc73   : > { %v2905_v3 = vsel %vm1370_vm0, %v2904_v7, %v2900_v48  ;;  %v2906_v2 = vmul.f32 %v2902_v50, %v6244_v14  ;;  %v3230_v9 = vsel %vm2404_vm1, %v3222_v51, %v2799_v19  ;;  %v3231_v41 = vsel %vm2903_vm4, %v2804_v33, %v3225_v8 }
 0xc74   : > { %v2907_v5 = vmul.f32 %v2905_v3, %v6246_v15  ;;  %v6618_v37 = vmul.f32 %v3230_v9, %v6244_v14  ;;  %v6620_v56 = vsel %vm2903_vm4, %v2898_v26, %v3227_v23  ;;  %v3232_v57 = vsel %vm1370_vm0, %v3231_v41, %v2898_v26 }
 0xc75   : > { %v6624_v39 = vmul.f32 %v3232_v57, %v6246_v15  ;;  %v2908_v60 = vmul.f32 %v2900_v48, %v6248_v16  ;;  %vm3012_vm0 = vcmask 118864   ;;  %vm3028_vm10 = vcmask 159864  }
 0xc76   : > { %v4709_v52 = vpack.c.bf16 %v2907_v5, %v2906_v2 }
 0xc77   : > { %v4718_v59 = vpack.c.bf16 %v6624_v39, %v6618_v37 }
 0xc78   : > { %4710 = vmatpush3.bf16.msra.mxu1 %v4709_v52 }
 0xc79   : > { %4556 = vmatprep.subr.mxu1 %v5527_v46 }
 0xc7c   : > { %4557 = vmatpush3.msk.msra.mxu1 %vm3051_vm5, %v2908_v60 }
 0xc7d   : > { %4717 = vmatprep.subr.bf16.mxu1 %v5525_v30 }
 0xce8   : > { %v2823_v14 = vpop.trf.xlu0 }
 0xce9   : > { %2843 = vrot.lane.b32.xlu0 %v2823_v14, %s5520_s0  ;;  %2855 = vrot.lane.b32.xlu1 %v2823_v14, %s5522_s19 }
 0xceb   : > { %v6634_v42 = vpop.trf.xlu1 }
 0xcec   : > { %v2824_v15 = vpop.trf.xlu0 }
 0xced   : > { %2857 = vrot.lane.b32.xlu0 %v2824_v15, %s5522_s19  ;;  %2867 = vrot.lane.b32.xlu1 %v2823_v14, %s5524_s9 }
 0xcef   : > { %v3148_v61 = vpop.trf.xlu1 }
 0xcf0   : > { %v2825_v40 = vpop.trf.xlu0 }
 0xcf1   : > { %2869 = vrot.lane.b32.xlu0 %v2824_v15, %s5524_s9  ;;  %3167 = vrot.lane.b32.xlu1 %v6634_v42, %s5520_s0 }
 0xcf3   : > { %v6651_v62 = vpop.trf.xlu1 }
 0xcf4   : > { %v2826_v25 = vpop.trf.xlu0 }
 0xcf5   : > { %3179 = vrot.lane.b32.xlu1 %v6634_v42, %s5522_s19  ;;  %3169 = vrot.lane.b32.xlu0 %v3148_v61, %s5520_s0 }
 0xcf7   : > { %v6657_v38 = vpop.trf.xlu1 }
 0xcf9   : > { %3191 = vrot.lane.b32.xlu1 %v6634_v42, %s5524_s9  ;;  %3181 = vrot.lane.b32.xlu0 %v3148_v61, %s5522_s19 }
 0xcfd   : > { %2845 = vrot.lane.b32.xlu1 %v2824_v15, %s5520_s0  ;;  %3193 = vrot.lane.b32.xlu0 %v3148_v61, %s5524_s9 }
 0xd01   : > { %2847 = vrot.lane.b32.xlu1 %v2825_v40, %s5520_s0  ;;  %2849 = vrot.lane.b32.xlu0 %v2826_v25, %s5520_s0 }
 0xd05   : > { %2859 = vrot.lane.b32.xlu1 %v2825_v40, %s5522_s19  ;;  %2861 = vrot.lane.b32.xlu0 %v2826_v25, %s5522_s19 }
 0xd09   : > { %2871 = vrot.lane.b32.xlu1 %v2825_v40, %s5524_s9  ;;  %2873 = vrot.lane.b32.xlu0 %v2826_v25, %s5524_s9 }
 0xd0d   : > { %3171 = vrot.lane.b32.xlu1 %v6651_v62, %s5520_s0  ;;  %3173 = vrot.lane.b32.xlu0 %v6657_v38, %s5520_s0 }
 0xd11   : > { %3183 = vrot.lane.b32.xlu1 %v6651_v62, %s5522_s19  ;;  %3185 = vrot.lane.b32.xlu0 %v6657_v38, %s5522_s19 }
 0xd15   : > { %3195 = vrot.lane.b32.xlu1 %v6651_v62, %s5524_s9  ;;  %3197 = vrot.lane.b32.xlu0 %v6657_v38, %s5524_s9  ;;  %s7033_s9 = scalar_lea.vmem %s7032_s28, %s6153_s27 }
 0xd5b   : > { %v2844_v63 = vpop.permute.xlu0 %2843  ;;  %v2856_v54 = vpop.permute.xlu1 %2855 }
 0xd5c   : > { %v2879_v24 = vsel %vm1342_vm7, %v2823_v14, %v2844_v63 }
 0xd5d   : > { %v2883_v27 = vsel %vm1345_vm8, %v2879_v24, %v2856_v54 }
 0xd5f   : > { %v2858_v17 = vpop.permute.xlu0 %2857  ;;  %v2868_v20 = vpop.permute.xlu1 %2867 }
 0xd60   : > { %v2887_v18 = vsel %vm1348_vm9, %v2883_v27, %v2868_v20 }
 0xd61   : > { %v2891_v35 = vmul.f32 %v2887_v18, %v6227_v10 }
 0xd63   : > { %v2870_v0 = vpop.permute.xlu0 %2869  ;;  %v3168_v1 = vpop.permute.xlu1 %3167 }
 0xd64   : > { %v3203_v9 = vsel %vm1342_vm7, %v6634_v42, %v3168_v1 }
 0xd67   : > { %v3170_v47 = vpop.permute.xlu0 %3169  ;;  %v3180_v55 = vpop.permute.xlu1 %3179 }
 0xd68   : > { %v3204_v48 = vsel %vm1342_vm7, %v3148_v61, %v3170_v47  ;;  %v3207_v52 = vsel %vm1345_vm8, %v3203_v9, %v3180_v55 }
 0xd6b   : > { %v3182_v45 = vpop.permute.xlu0 %3181  ;;  %v3192_v49 = vpop.permute.xlu1 %3191 }
 0xd6c   : > { %v3208_v7 = vsel %vm1345_vm8, %v3204_v48, %v3182_v45 }
 0xd6f   : > { %v3194_v28 = vpop.permute.xlu0 %3193  ;;  %v2846_v29 = vpop.permute.xlu1 %2845 }
 0xd70   : > { %v2880_v58 = vsel %vm1342_vm7, %v2824_v15, %v2846_v29  ;;  %v3212_v5 = vsel %vm1348_vm9, %v3208_v7, %v3194_v28  ;;  %v3211_v15 = vsel %vm1348_vm9, %v3207_v52, %v3192_v49 }
 0xd71   : > { %v2884_v32 = vsel %vm1345_vm8, %v2880_v58, %v2858_v17  ;;  %v3216_v61 = vmul.f32 %v3212_v5, %v6232_v11  ;;  %v3215_v42 = vmul.f32 %v3211_v15, %v6227_v10 }
 0xd72   : > { %v2888_v33 = vsel %vm1348_vm9, %v2884_v32, %v2870_v0 }
 0xd73   : > { %v2892_v19 = vmul.f32 %v2888_v33, %v6232_v11  ;;  %v2850_v36 = vpop.permute.xlu0 %2849  ;;  %v2848_v43 = vpop.permute.xlu1 %2847  ;;  %v4712_v54 = vpack.c.bf16 %v3216_v61, %v3215_v42 }
 0xd74   : > { %v2882_v6 = vsel %vm1342_vm7, %v2826_v25, %v2850_v36  ;;  %v2881_v50 = vsel %vm1342_vm7, %v2825_v40, %v2848_v43 }
 0xd75   : > { %v4703_v23 = vpack.c.bf16 %v2892_v19, %v2891_v35 }
 0xd77   : > { %v2862_v4 = vpop.permute.xlu0 %2861  ;;  %4704 = vmatpush3.bf16.msra.mxu0 %v4703_v23  ;;  %v2860_v26 = vpop.permute.xlu1 %2859 }
 0xd78   : > { %4705 = vmatprep.subr.bf16.mxu0 %v5525_v30  ;;  %v2886_v51 = vsel %vm1345_vm8, %v2882_v6, %v2862_v4  ;;  %v2885_v3 = vsel %vm1345_vm8, %v2881_v50, %v2860_v26 }
 0xd7b   : > { %v2874_v2 = vpop.permute.xlu0 %2873  ;;  %v2872_v8 = vpop.permute.xlu1 %2871 }
 0xd7c   : > { %v2890_v41 = vsel %vm1348_vm9, %v2886_v51, %v2874_v2  ;;  %v2889_v57 = vsel %vm1348_vm9, %v2885_v3, %v2872_v8 }
 0xd7d   : > { %v2894_v60 = vmul.f32 %v2890_v41, %v6242_v13  ;;  %v2893_v14 = vmul.f32 %v2889_v57, %v6237_v12 }
 0xd7f   : > { %v4706_v40 = vpack.c.bf16 %v2894_v60, %v2893_v14  ;;  %v3174_v25 = vpop.permute.xlu0 %3173  ;;  %v3172_v63 = vpop.permute.xlu1 %3171 }
 0xd80   : > { %v3206_v11 = vsel %vm1342_vm7, %v6657_v38, %v3174_v25  ;;  %v3205_v0 = vsel %vm1342_vm7, %v6651_v62, %v3172_v63 }
 0xd81   : > { %4707 = vmatpush3.bf16.msra.mxu0 %v4706_v40 }
 0xd82   : > { %4711 = vmatprep.subr.bf16.mxu0 %v5525_v30 }
 0xd83   : > { %v3186_v17 = vpop.permute.xlu0 %3185  ;;  %v3184_v20 = vpop.permute.xlu1 %3183 }
 0xd84   : > { %4550 = vmatmul.mubr.msk.f32.vlgmr.msra.gmra.mrb[10].mxu0 %vm1455_vm2, %v6602_v21  ;;  %v3210_v10 = vsel %vm1345_vm8, %v3206_v11, %v3186_v17  ;;  %v3209_v1 = vsel %vm1345_vm8, %v3205_v0, %v3184_v20 }
 0xd85   : > { %4713 = vmatpush3.bf16.msra.mxu0 %v4712_v54  ;;  %4569 = vmatprep.mubr.msk.f32.mxu0 %vm5526_vm11, %v5527_v46 }
 0xd86   : > { %4714 = vmatprep.subr.bf16.mxu0 %v5525_v30 }
 0xd87   : > { %v3198_v47 = vpop.permute.xlu0 %3197  ;;  %v3196_v55 = vpop.permute.xlu1 %3195 }
 0xd88   : > { %v3214_v21 = vsel %vm1348_vm9, %v3210_v10, %v3198_v47  ;;  %v3213_v45 = vsel %vm1348_vm9, %v3209_v1, %v3196_v55 }
 0xd89   : > { %v3218_v49 = vmul.f32 %v3214_v21, %v6242_v13  ;;  %v3217_v24 = vmul.f32 %v3213_v45, %v6237_v12 }
 0xd8b   : > { %v4715_v38 = vpack.c.bf16 %v3218_v49, %v3217_v24 }
 0xd8d   : > { %4716 = vmatpush3.bf16.msra.mxu0 %v4715_v38 }
 0xd90   : > { %4570 = vmatmul.mubr.msk.f32.vlgmr.msra.gmra.mrb[12].mxu0 %vm1455_vm2, %v6608_v31 }
 0xe57   : > { %v2978_v30 = vpop.f32.mrb[10].mxu0 }
 0xe58   : > { %v2982_v62 = vmul.f32 0.35355338, %v2978_v30  ;;  %v4551_v27 = vpop.f32.mrb[11].mxu0 }
 0xe5a   : > { %v6716_v28 = vadd.f32 %v2982_v62, %v6312_v22 }
 0xe5c   : > { %v3013_v29 = vsel %vm3012_vm0, %v6716_v28, -inf  ;;  %v2997_v18 = vsel %vm2996_vm6, %v6716_v28, -inf  ;;  %v3029_v12 = vsel %vm3028_vm10, %v6716_v28, -inf  ;;  %v2985_v22 = vsel %vm2984_vm12, %v6716_v28, -inf }
 0xe5d   : > { %3014 = vmax.xlane.f32.xlu0 %v3013_v29  ;;  %2998 = vmax.xlane.f32.xlu1 %v2997_v18 }
 0xe61   : > { %3030 = vmax.xlane.f32.xlu0 %v3029_v12 }
 0xe63   : > { %v3308_v13 = vpop.f32.mrb[12].mxu0 }
 0xe64   : > { %v3312_v31 = vmul.f32 0.35355338, %v3308_v13  ;;  %v4571_v58 = vpop.f32.mrb[13].mxu0 }
 0xe66   : > { %v3313_v32 = vadd.f32 %v3312_v31, %v6320_v34 }
 0xe68   : > { %v3340_v33 = vsel %vm3012_vm0, %v3313_v32, -inf  ;;  %v3325_v35 = vsel %vm2996_vm6, %v3313_v32, -inf  ;;  %v3355_v19 = vsel %vm3028_vm10, %v3313_v32, -inf  ;;  %v3314_v36 = vsel %vm2984_vm12, %v3313_v32, -inf }
 0xe69   : > { %3341 = vmax.xlane.f32.xlu0 %v3340_v33  ;;  %3326 = vmax.xlane.f32.xlu1 %v3325_v35 }
 0xe6d   : > { %2986 = vmax.xlane.f32.xlu0 %v2985_v22  ;;  %3356 = vmax.xlane.f32.xlu1 %v3355_v19 }
 0xe71   : > { %3315 = vmax.xlane.f32.xlu1 %v3314_v36 }
 0xeea   : > { %v3015_v43 = vpop.xlane.xlu0 %3014  ;;  %v2999_v23 = vpop.xlane.xlu1 %2998 }
 0xeeb   : > { %v3016_v4 = vsub.f32 %v6716_v28, %v3015_v43  ;;  %v3000_v34 = vsub.f32 %v6716_v28, %v2999_v23 }
 0xeed   : > { %v3017_v26 = vmul.f32 1.442695, %v3016_v4  ;;  %v3001_v48 = vmul.f32 1.442695, %v3000_v34 }
 0xeee   : > { %v3031_v6 = vpop.xlane.xlu0 %3030 }
 0xeef   : > { %4980 = vpow2.f32 %v3017_v26  ;;  %v3032_v50 = vsub.f32 %v6716_v28, %v3031_v6 }
 0xef0   : > { %4982 = vpow2.f32 %v3001_v48 }
 0xef1   : > { %v3033_v7 = vmul.f32 1.442695, %v3032_v50 }
 0xef3   : > { %4984 = vpow2.f32 %v3033_v7 }
 0xef6   : > { %v3342_v51 = vpop.xlane.xlu0 %3341  ;;  %v3327_v3 = vpop.xlane.xlu1 %3326 }
 0xef7   : > { %v3343_v2 = vsub.f32 %v3313_v32, %v3342_v51  ;;  %v3328_v8 = vsub.f32 %v3313_v32, %v3327_v3 }
 0xef9   : > { %v6728_v9 = vpop.eup %4980  ;;  %v3344_v5 = vmul.f32 1.442695, %v3343_v2  ;;  %v3329_v41 = vmul.f32 1.442695, %v3328_v8  ;;  %v3235_v2 = vmul.f32 %v6620_v56, %v6248_v16  ;;  %v2548_v16 = vld [vmem:[%s6144_s15 + $0x60] sm:$0xff]  ;;  %v2549_v56 = vld [vmem:[%s6144_s15 + $0x68] sm:$0xff] }
 0xefa   : > { %v6730_v57 = vpop.eup %4982  ;;  %v3357_v52 = vpop.xlane.xlu1 %3356  ;;  %3020 = vrot.lane.b32.xlu1 %v6728_v9, %s5531_s5 }
 0xefb   : > { %4986 = vpow2.f32 %v3344_v5  ;;  %3004 = vrot.lane.b32.xlu0 %v6730_v57, %s5532_s23  ;;  %v3358_v60 = vsub.f32 %v3313_v32, %v3357_v52  ;;  %v2987_v63 = vpop.xlane.xlu0 %2986  ;;  %v4720_v52 = vpack.c.bf16 %v2549_v56, %v2548_v16 }
 0xefc   : > { %4988 = vpow2.f32 %v3329_v41  ;;  %v2988_v42 = vsub.f32 %v6716_v28, %v2987_v63 }
 0xefd   : > { %v6734_v14 = vpop.eup %4984  ;;  %v3359_v15 = vmul.f32 1.442695, %v3358_v60  ;;  %4721 = vmatprep.subr.bf16.mxu0 %v4720_v52  ;;  %v2550_v60 = vld [vmem:[%s6144_s15 + $0x70] sm:$0xff] }
 0xefe   : > { %3036 = vrot.lane.b32.xlu1 %v6734_v14, %s5533_s3  ;;  %v2989_v54 = vmul.f32 1.442695, %v2988_v42  ;;  %v3316_v11 = vpop.xlane.xlu1 %3315  ;;  %4723 = vmatpush3.bf16.msra.mxu0 %v4720_v52 }
 0xeff   : > { %4990 = vpow2.f32 %v3359_v15  ;;  %v3317_v0 = vsub.f32 %v3313_v32, %v3316_v11 }
 0xf00   : > { %4992 = vpow2.f32 %v2989_v54 }
 0xf01   : > { %v3318_v10 = vmul.f32 1.442695, %v3317_v0 }
 0xf03   : > { %4994 = vpow2.f32 %v3318_v10 }
 0xf05   : > { %v6737_v61 = vpop.eup %4986 }
 0xf06   : > { %v6739_v40 = vpop.eup %4988  ;;  %3347 = vrot.lane.b32.xlu1 %v6737_v61, %s5531_s5 }
 0xf07   : > { %3332 = vrot.lane.b32.xlu0 %v6739_v40, %s5532_s23 }
 0xf09   : > { %v6743_v25 = vpop.eup %4990 }
 0xf0a   : > { %v4993_v17 = vpop.eup %4992 }
 0xf0b   : > { %3362 = vrot.lane.b32.xlu0 %v6743_v25, %s5533_s3  ;;  %v2991_v20 = vsel %vm2984_vm12, %v4993_v17, 0.0 }
 0xf0d   : > { %v4995_v24 = vpop.eup %4994 }
 0xf0e   : > { %v3320_v38 = vsel %vm2984_vm12, %v4995_v24, 0.0 }
 0xf2a   : > { %2992 = vadd.xlane.f32.xlu1 %v2991_v20 }
 0xf6c   : > { %v3021_v1 = vpop.permute.xlu1 %3020 }
 0xf6d   : > { %v3005_v47 = vpop.permute.xlu0 %3004  ;;  %v3023_v49 = vsel %vm2984_vm12, %v3021_v1, 0.0 }
 0xf6e   : > { %v3007_v55 = vsel %vm2984_vm12, %v3005_v47, 0.0 }
 0xf6f   : > { %3008 = vadd.xlane.f32.xlu0 %v3007_v55 }
 0xf70   : > { %v3037_v21 = vpop.permute.xlu1 %3036 }
 0xf71   : > { %v3039_v45 = vsel %vm2984_vm12, %v3037_v21, 0.0 }
 0xf72   : > { %3040 = vadd.xlane.f32.xlu1 %v3039_v45 }
 0xf73   : > { %3024 = vadd.xlane.f32.xlu0 %v3023_v49 }
 0xf77   : > { %3321 = vadd.xlane.f32.xlu0 %v3320_v38 }
 0xf78   : > { %v3348_v30 = vpop.permute.xlu1 %3347 }
 0xf79   : > { %v3333_v62 = vpop.permute.xlu0 %3332  ;;  %v3350_v27 = vsel %vm2984_vm12, %v3348_v30, 0.0 }
 0xf7a   : > { %v3335_v28 = vsel %vm2984_vm12, %v3333_v62, 0.0 }
 0xf7b   : > { %3336 = vadd.xlane.f32.xlu1 %v3335_v28  ;;  %3351 = vadd.xlane.f32.xlu0 %v3350_v27 }
 0xf7d   : > { %v3363_v29 = vpop.permute.xlu0 %3362 }
 0xf7e   : > { %v3365_v18 = vsel %vm2984_vm12, %v3363_v29, 0.0  ;;  %v3583_v29 = vld [vmem:[%s6324_s2] sm:$0xff] }
 0xf7f   : > { %3366 = vadd.xlane.f32.xlu1 %v3365_v18  ;;  %v3584_v18 = vld [vmem:[%s6324_s2 + $0x8] sm:$0xff] }
 0xfb7   : > { %v2993_v12 = vpop.xlane.xlu1 %2992 }
 0xffc   : > { %v3009_v13 = vpop.xlane.xlu0 %3008 }
 0xffd   : > { %4996 = vrcp.f32 %v3009_v13  ;;  %v4728_v13 = vpack.c.bf16 %v3584_v18, %v3583_v29 }
 0xffe   : > { %4998 = vrcp.f32 %v2993_v12  ;;  %v3585_v12 = vld [vmem:[%s6324_s2 + $0x10] sm:$0xff] }
 0xfff   : > { %v3041_v31 = vpop.xlane.xlu1 %3040 }
0x1000   : > { %v3025_v58 = vpop.xlane.xlu0 %3024  ;;  %5000 = vrcp.f32 %v3041_v31  ;;  %v3586_v31 = vld [vmem:[%s6324_s2 + $0x18] sm:$0xff] }
0x1001   : > { %5002 = vrcp.f32 %v3025_v58  ;;  %v4732_v58 = vpack.c.bf16 %v3586_v31, %v3585_v12 }
0x1004   : > { %v3322_v32 = vpop.xlane.xlu0 %3321 }
0x1005   : > { %5004 = vrcp.f32 %v3322_v32 }
0x1007   : > { %v4997_v33 = vpop.eup %4996 }
0x1008   : > { %v4999_v35 = vpop.eup %4998  ;;  %v3352_v22 = vpop.xlane.xlu0 %3351  ;;  %v3011_v36 = vmul.f32 %v4997_v33, %v6730_v57 }
0x1009   : > { %v3337_v19 = vpop.xlane.xlu1 %3336  ;;  %5006 = vrcp.f32 %v3352_v22  ;;  %v2995_v4 = vmul.f32 %v4999_v35, %v4993_v17  ;;  %v4286_v17 = vld [vmem:[%s6165_s14 + $0x3] ss:$0 sm:$0xff] }
0x100a   : > { %v5001_v43 = vpop.eup %5000  ;;  %5008 = vrcp.f32 %v3337_v19 }
0x100b   : > { %v5003_v23 = vpop.eup %5002  ;;  %v3043_v34 = vmul.f32 %v5001_v43, %v6734_v14  ;;  %v3044_v6 = vsel %vm1342_vm7, %v2995_v4, %v3011_v36  ;;  %v2551_v14 = vld [vmem:[%s6144_s15 + $0x78] sm:$0xff] }
0x100c   : > { %v3027_v48 = vmul.f32 %v5003_v23, %v6728_v9  ;;  %v4724_v15 = vpack.c.bf16 %v2551_v14, %v2550_v60  ;;  %v4289_v23 = vld [vmem:[%s6184_s24] ss:$0 sm:$0xff] }
0x100d   : > { %v3367_v26 = vpop.xlane.xlu1 %3366 }
0x100e   : > { %5010 = vrcp.f32 %v3367_v26  ;;  %v3045_v50 = vsel %vm1345_vm8, %v3044_v6, %v3027_v48  ;;  %4725 = vmatprep.subr.bf16.mxu0 %v4724_v15  ;;  %v4290_v48 = vld [vmem:[%s6184_s24 + $0x1] ss:$0 sm:$0xff]  ;;  %s7030_s24 = sld [smem:[#allocation59_spill]] }
0x100f   : > { %v3046_v7 = vsel %vm1348_vm9, %v3045_v50, %v3043_v34  ;;  %v5005_v51 = vpop.eup %5004  ;;  %4727 = vmatpush3.bf16.msra.mxu0 %v4724_v15 }
0x1010   : > { %4559 = vmatmul.mubr.msk.f32.vlgmr.msra.gmra.mrb[14].mxu1 %vm3047_vm13, %v3046_v7  ;;  %v3324_v9 = vmul.f32 %v5005_v51, %v4995_v24 }
0x1011   : > { %4719 = vmatpush3.bf16.msra.mxu1 %v4718_v59  ;;  %4578 = vmatprep.mubr.msk.f32.mxu1 %vm5526_vm11, %v5527_v46 }
0x1012   : > { %4576 = vmatprep.subr.mxu1 %v5527_v46 }
0x1013   : > { %v5007_v3 = vpop.eup %5006 }
0x1014   : > { %v5009_v8 = vpop.eup %5008  ;;  %v3354_v39 = vmul.f32 %v5007_v3, %v6737_v61  ;;  %v3693_v3 = vld [vmem:[%s6205_s6] sm:$0xff]  ;;  %s7031_s0 = scalar_lea.vmem %s7030_s24, %s6153_s27  ;;  %s7034_s27 = sld [smem:[#allocation35_spill]] }
0x1015   : > { %4577 = vmatpush3.msk.msra.mxu1 %vm3051_vm5, %v3235_v2  ;;  %v3339_v37 = vmul.f32 %v5009_v8, %v6739_v40  ;;  %v3694_v2 = vld [vmem:[%s6205_s6 + $0x8] sm:$0xff]  ;;  %v3695_v8 = vld [vmem:[%s6205_s6 + $0x10] sm:$0xff]  ;;  %v4291_v56 = vld [vmem:[%s7031_s0] ss:$0 sm:$0xff] }
0x1016   : > { %4729 = vmatprep.subr.bf16.mxu1 %v4728_v13 }
0x1017   : > { %v3370_v5 = vsel %vm1342_vm7, %v3324_v9, %v3339_v37  ;;  %v4736_v9 = vpack.c.bf16 %v3694_v2, %v3693_v3  ;;  %v3696_v37 = vld [vmem:[%s6205_s6 + $0x18] sm:$0xff]  ;;  %vm3708_vm7 = vcmask 523264   ;;  %v4298_v3 = vld [vmem:[%s6220_s10 + $0x1] ss:$0 sm:$0xff] }
0x1018   : > { %v5011_v59 = vpop.eup %5010  ;;  %v3371_v46 = vsel %vm1345_vm8, %v3370_v5, %v3354_v39  ;;  %v4740_v39 = vpack.c.bf16 %v3696_v37, %v3695_v8  ;;  %v3698_v5 = vld [vmem:[%s6205_s6 + $0x28] sm:$0xff] }
0x1019   : > { %v3369_v41 = vmul.f32 %v5011_v59, %v6743_v25  ;;  %v3697_v59 = vld [vmem:[%s6205_s6 + $0x20] sm:$0xff]  ;;  %4737 = vmatprep.subr.bf16.mxu0 %v4736_v9 }
0x101a   : > { %p4299_p10 = scmp.ne.s32.totalorder %s7034_s27, 1 }
0x101b   : > { %v3372_v57 = vsel %vm1348_vm9, %v3371_v46, %v3369_v41  ;;  %v4744_v41 = vpack.c.bf16 %v3698_v5, %v3697_v59  ;;  %v3699_v46 = vld [vmem:[%s6205_s6 + $0x30] sm:$0xff] }
0x101c   : > { %4579 = vmatmul.mubr.msk.f32.vlgmr.msra.gmra.mrb[16].mxu1 %vm3047_vm13, %v3372_v57  ;;  %v3700_v57 = vld [vmem:[%s6205_s6 + $0x38] sm:$0xff] }
0x101d   : > { %4731 = vmatpush3.bf16.msra.mxu1 %v4728_v13  ;;  %v4748_v16 = vpack.c.bf16 %v3700_v57, %v3699_v46 }
0x101e   : > { %4733 = vmatprep.subr.bf16.mxu1 %v4732_v58 }
0x1021   : > { %4735 = vmatpush3.bf16.msra.mxu1 %v4732_v58 }
0x10e3   : > { %v3121_v61 = vpop.f32.mrb[14].mxu1 }
0x10e4   : > { %v4560_v40 = vpop.f32.mrb[15].mxu1 }
0x10ef   : > { %v3445_v25 = vpop.f32.mrb[16].mxu1 }
0x10f0   : > { %v3450_v63 = vrot.slane %v3445_v25, 3  ;;  %v4580_v42 = vpop.f32.mrb[17].mxu1 }
0x10f2   : > { %v3452_v54 = vsel %vm2404_vm1, %v3121_v61, %v3450_v63 }
0x10f3   : > { %4589 = vmatprep.mubr.msk.f32.mxu0 %vm1455_vm2, %v3452_v54 }
0x10f4   : > { %4590 = vmatmul.mubr.msk.f32.vlgmr.msra.gmra.mrb[14].mxu0 %vm1455_vm2, %v3450_v63 }
0x10f5   : > { %4739 = vmatpush3.bf16.msra.mxu0 %v4736_v9 }
0x10f6   : > { %4741 = vmatprep.subr.bf16.mxu0 %v4740_v39 }
0x10f9   : > { %4743 = vmatpush3.bf16.msra.mxu0 %v4740_v39 }
0x10fa   : > { %4745 = vmatprep.subr.bf16.mxu0 %v4744_v41 }
0x10fd   : > { %4747 = vmatpush3.bf16.msra.mxu0 %v4744_v41 }
0x10fe   : > { %4749 = vmatprep.subr.bf16.mxu0 %v4748_v16 }
0x1101   : > { %4751 = vmatpush3.bf16.msra.mxu0 %v4748_v16 }
0x11c7   : > { %v4591_v20 = vpop.f32.mrb[14].mxu0 }
0x11c8   : > { %v3536_v11 = vadd.f32 %v4591_v20, %v4286_v17  ;;  %v3530_v0 = vpop.f32.mrb[15].mxu0 }
0x11c9   : > { %v3531_v10 = vadd.f32 %v4286_v17, %v3530_v0 }
0x11ca   : > { %v3540_v1 = vadd.f32 %v3536_v11, %v6581_v44 }
0x11cb   : > { %v3539_v47 = vadd.f32 %v3531_v10, %v6579_v53 }
0x11cc   : > { %v3544_v55 = vsel %vm1459_vm3, %v3540_v1, 0.0 }
0x11cd   : > { %3545 = vadd.xlane.f32.xlu1 %v3544_v55  ;;  %v3541_v21 = vsel %vm1455_vm2, %v3539_v47, 0.0 }
0x11ce   : > { %3542 = vadd.xlane.f32.xlu0 %v3541_v21 }
0x125a   : > { %v3546_v45 = vpop.xlane.xlu1 %3545 }
0x125b   : > { %v3548_v49 = vmul.f32 0.03125, %v3546_v45  ;;  %v3543_v24 = vpop.xlane.xlu0 %3542 }
0x125c   : > { %v3547_v38 = vmul.f32 0.03125, %v3543_v24 }
0x125d   : > { %v3550_v30 = vsub.f32 %v3540_v1, %v3548_v49 }
0x125e   : > { %v3549_v62 = vsub.f32 %v3539_v47, %v3547_v38  ;;  %v4294_v38 = vld [vmem:[%s7033_s9] ss:$0 sm:$0xff] }
0x125f   : > { %v3552_v27 = vmul.f32 %v3550_v30, %v3550_v30 }
0x1260   : > { %v3551_v44 = vmul.f32 %v3549_v62, %v3549_v62 }
0x1261   : > { %v3556_v53 = vsel %vm1459_vm3, %v3552_v27, 0.0 }
0x1262   : > { %3557 = vadd.xlane.f32.xlu1 %v3556_v53  ;;  %v3553_v28 = vsel %vm1455_vm2, %v3551_v44, 0.0 }
0x1263   : > { %3554 = vadd.xlane.f32.xlu0 %v3553_v28 }
0x12ef   : > { %v3558_v32 = vpop.xlane.xlu1 %3557 }
0x12f0   : > { %v3560_v33 = vmul.f32 0.03125, %v3558_v32  ;;  %v3555_v35 = vpop.xlane.xlu0 %3554 }
0x12f1   : > { %v3559_v22 = vmul.f32 0.03125, %v3555_v35 }
0x12f2   : > { %v3562_v19 = vadd.f32 1e-12, %v3560_v33 }
0x12f3   : > { %v3561_v36 = vadd.f32 1e-12, %v3559_v22 }
0x12f4   : > { %5012 = vrsqrt.f32 %v3562_v19 }
0x12f5   : > { %5014 = vrsqrt.f32 %v3561_v36 }
0x12fe   : > { %v5013_v43 = vpop.eup %5012 }
0x12ff   : > { %v5015_v4 = vpop.eup %5014  ;;  %v3566_v34 = vmul.f32 %v5013_v43, %v3550_v30 }
0x1300   : > { %v3565_v26 = vmul.f32 %v5015_v4, %v3549_v62 }
0x1301   : > { %v3574_v6 = vmul.f32 %v4289_v23, %v3566_v34 }
0x1302   : > { %v3573_v50 = vmul.f32 %v4289_v23, %v3565_v26 }
0x1303   : > { %v3582_v51 = vadd.f32 %v4290_v48, %v3574_v6 }
0x1304   : > { %v3581_v7 = vadd.f32 %v4290_v48, %v3573_v50  ;;  %v4297_v50 = vld [vmem:[%s6220_s10] ss:$0 sm:$0xff] }
0x1306   : > { %4600 = vmatprep.mubr.msk.f32.mxu1 %vm1455_vm2, %v3581_v7 }
0x1307   : > { %4601 = vmatmul.mubr.msk.f32.vlgmr.msra.gmra.mrb[18].mxu1 %vm1455_vm2, %v3582_v51 }
0x13da   : > { %v4602_v52 = vpop.f32.mrb[18].mxu1 }
0x13db   : > { %v3672_v60 = vadd.f32 %v4602_v52, %v4291_v56  ;;  %v3666_v14 = vpop.f32.mrb[19].mxu1 }
0x13dc   : > { %v3667_v15 = vadd.f32 %v4291_v56, %v3666_v14 }
0x13dd   : > { %v3678_v61 = vmul.f32 0.044715, %v3672_v60  ;;  %v3676_v45 = vmul.f32 0.5, %v3672_v60 }
0x13de   : > { %v3677_v40 = vmul.f32 0.044715, %v3667_v15  ;;  %v3675_v55 = vmul.f32 0.5, %v3667_v15 }
0x13df   : > { %v3680_v25 = vmul.f32 %v3678_v61, %v3672_v60 }
0x13e0   : > { %v3679_v63 = vmul.f32 %v3677_v40, %v3667_v15 }
0x13e1   : > { %v3682_v42 = vmul.f32 %v3680_v25, %v3672_v60 }
0x13e2   : > { %v3681_v54 = vmul.f32 %v3679_v63, %v3667_v15 }
0x13e3   : > { %v3684_v17 = vadd.f32 %v3682_v42, %v3672_v60 }
0x13e4   : > { %v3683_v20 = vadd.f32 %v3681_v54, %v3667_v15 }
0x13e5   : > { %v3686_v11 = vmul.f32 0.7978846, %v3684_v17 }
0x13e6   : > { %v3685_v0 = vmul.f32 0.7978846, %v3683_v20 }
0x13e7   : > { %5016 = vtanh.f32 %v3686_v11 }
0x13e8   : > { %5018 = vtanh.f32 %v3685_v0 }
0x13f1   : > { %v5017_v10 = vpop.eup %5016 }
0x13f2   : > { %v5019_v1 = vpop.eup %5018  ;;  %v3690_v47 = vadd.f32 1.0, %v5017_v10 }
0x13f3   : > { %v3689_v21 = vadd.f32 1.0, %v5019_v1 }
0x13f4   : > { %v3692_v24 = vmul.f32 %v3690_v47, %v3676_v45 }
0x13f5   : > { %v3691_v49 = vmul.f32 %v3689_v21, %v3675_v55 }
0x13f7   : > { %4619 = vmatprep.mubr.msk.f32.mxu0 %vm3708_vm7, %v3691_v49 }
0x13f8   : > { %4620 = vmatmul.mubr.msk.f32.vlgmr.msra.gmra.mrb[16].mxu0 %vm3708_vm7, %v3692_v24 }
0x14cb   : > { %v4621_v30 = vpop.f32.mrb[16].mxu0 }
0x14cc   : > { %v3787_v62 = vadd.f32 %v4621_v30, %v4294_v38  ;;  %v3781_v27 = vpop.f32.mrb[17].mxu0 }
0x14cd   : > { %v3782_v44 = vadd.f32 %v4294_v38, %v3781_v27 }
0x14ce   : > { %v3793_v53 = vadd.f32 %v3787_v62, %v3582_v51 }
0x14cf   : > { %v3792_v28 = vadd.f32 %v3782_v44, %v3581_v7 }
0x14d0   : > { %v3797_v29 = vsel %vm1459_vm3, %v3793_v53, 0.0 }
0x14d1   : > { %3798 = vadd.xlane.f32.xlu1 %v3797_v29  ;;  %v3794_v18 = vsel %vm1455_vm2, %v3792_v28, 0.0 }
0x14d2   : > { %3795 = vadd.xlane.f32.xlu0 %v3794_v18 }
0x155e   : > { %v3799_v12 = vpop.xlane.xlu1 %3798 }
0x155f   : > { %v3801_v13 = vmul.f32 0.03125, %v3799_v12  ;;  %v3796_v31 = vpop.xlane.xlu0 %3795 }
0x1560   : > { %v3800_v58 = vmul.f32 0.03125, %v3796_v31 }
0x1561   : > { %v3803_v32 = vsub.f32 %v3793_v53, %v3801_v13 }
0x1562   : > { %v3802_v33 = vsub.f32 %v3792_v28, %v3800_v58 }
0x1563   : > { %v3805_v35 = vmul.f32 %v3803_v32, %v3803_v32 }
0x1564   : > { %v3804_v22 = vmul.f32 %v3802_v33, %v3802_v33 }
0x1565   : > { %v3809_v19 = vsel %vm1459_vm3, %v3805_v35, 0.0 }
0x1566   : > { %3810 = vadd.xlane.f32.xlu1 %v3809_v19  ;;  %v3806_v36 = vsel %vm1455_vm2, %v3804_v22, 0.0 }
0x1567   : > { %3807 = vadd.xlane.f32.xlu0 %v3806_v36 }
0x15f3   : > { %v3811_v43 = vpop.xlane.xlu1 %3810 }
0x15f4   : > { %v3813_v23 = vmul.f32 0.03125, %v3811_v43  ;;  %v3808_v4 = vpop.xlane.xlu0 %3807 }
0x15f5   : > { %v3812_v34 = vmul.f32 0.03125, %v3808_v4 }
0x15f6   : > { %v3815_v26 = vadd.f32 1e-12, %v3813_v23 }
0x15f7   : > { %v3814_v48 = vadd.f32 1e-12, %v3812_v34 }
0x15f8   : > { %5020 = vrsqrt.f32 %v3815_v26 }
0x15f9   : > { %5022 = vrsqrt.f32 %v3814_v48 }
0x1602   : > { %v5021_v6 = vpop.eup %5020 }
0x1603   : > { %v5023_v7 = vpop.eup %5022  ;;  %v3819_v51 = vmul.f32 %v5021_v6, %v3803_v32 }
0x1604   : > { %v3818_v2 = vmul.f32 %v5023_v7, %v3802_v33  ;;  %3841 = sbr.rel (%p4299_p10) target bundleno = 5643 (0x160b), region = 180 }
0x1605   : > { %v3827_v8 = vmul.f32 %v4297_v50, %v3819_v51 }
0x1606   : > { %v3826_v9 = vmul.f32 %v4297_v50, %v3818_v2 }
0x1607   : > { %v3835_v37 = vadd.f32 %v4298_v3, %v3827_v8 }
0x1608   : > { %v3834_v39 = vadd.f32 %v4298_v3, %v3826_v9 }
0x1609   : > { %3837 = vst.msk [vmem:[#allocation2 + $0x8] sm:$0x3] %vm1459_vm3, %v3835_v37  ;;  %3843 = vst.msk [vmem:[#allocation24 + $0x8] sm:$0x3] (!%p4299_p10), %vm1459_vm3, %v3835_v37 }
0x160a   : > { %3836 = vst.msk [vmem:[#allocation2] sm:$0xff] %vm1455_vm2, %v3834_v39  ;;  %3842 = vst.msk [vmem:[#allocation24] sm:$0xff] (!%p4299_p10), %vm1455_vm2, %v3834_v39 }
0x160b PF: > { %p4860_p1 = scmp.eq.s32.totalorder %s5697_s26, 1  ;;  %s5534_s10 = smov [#allocation24]  }
0x160c   : > { %s3853_s22 = sshll.u32 %s5534_s10, 4  ;;  %s3854_s22 = int_to_ptr.vmem [resolvable:$true] %s3853_s22 }
0x160d   : > { %s5396_s2 = scalar_lea.vmem %s3854_s22, 256  ;;  %p5403_p13 = scmp.lt.s32.totalorder %s3854_s22, %s3854_s22 }
0x160e   : > { %p5397_p5 = scmp.ne.s32.totalorder %s3854_s22, %s5396_s2  ;;  %p5404_p8 = scmp.lt.s32.totalorder %s5396_s2, %s5396_s2 }
0x1610   : > { %p5398_p7 = pnand %p5397_p5, %p4860_p1  ;;  %p5405_p0 = por %p5404_p8, %p5403_p13 }
0x1612   : > { %p5399_p3 = pneg %p5398_p7 }
0x1614   : > { %p5406_p4 = pnand %p5405_p0, %p5399_p3 }
0x1616   : > { %5409 = shalt.err (!%p5406_p4)
}
0x1617   : > { %s7035_s18 = sld [smem:[#allocation63_spill]] }
0x161d   : > { %s5410_s5 = scalar_lea.hbm %s7035_s18, 256 }
0x161e   : > { %p5411_p2 = scmp.ne.s32.totalorder %s7035_s18, %s5410_s5  ;;  %p5416_p11 = scmp.lt.u32.totalorder %s5410_s5, %s7035_s18 }
0x1620   : > { %p5412_p6 = pnand %p5411_p2, %p4860_p1 }
0x1622   : > { %p5413_p9 = pneg %p5412_p6 }
0x1624   : > { %p5418_p12 = pnand %p5416_p11, %p5413_p9 }
0x1626   : > { %5421 = shalt.err (!%p5418_p12)
}
0x1627   : > { %s5535_s24 = smov 128  }
0x1628   : > { %4797 = dma.vmem_to_hbm [thread:$0]  (%p4860_p1), %s3854_s22, 256, %s7035_s18, [#allocation5], %s5535_s24, %s5535_s24, %s5519_s30  }
0x1629   : > { %5475 = dma.done.wait (%p4860_p1), [#allocation5], 256  }
0x162a   : > { %5477 = vsyncadd (%p4860_p1), [#allocation5], 4294967040 }
0x162b PF: > { %s7036_s19 = sld [smem:[#allocation36_spill]]  ;;  %s7037_s29 = sld [smem:[#allocation33_spill]] }
0x162c   : > { %s7038_s2 = sld [smem:[#allocation34_spill]]  ;;  %s7039_s6 = sld [smem:[#allocation40_spill]] }
0x162d   : > { %s7040_s28 = sld [smem:[#allocation38_spill]]  ;;  %s7041_s30 = smov %s5496_s7 }
0x1631   : > { %s47_s3 = sadd.s32 1, %s7036_s19  }
0x1632   : > { %p44_p10 = scmp.ge.s32.totalorder %s47_s3, 4  }
0x1633   : > { %s7042_s7 = smov %s7040_s28 }
0x1634   :  { %46 = sbr.rel (!%p44_p10) target bundleno = 36 (0x24), region = 272 }
0x163b   :  { %3869 = vsyncpa [#allocation4], 1 }
0x163c   :  { %3871 = vsyncpa [#allocation4 + $0x1], 1 }
0x163d   :  { %3872 = vsyncpa [#allocation7], 1 }
0x163e   :  { %3873 = vsyncpa [#allocation10], 1 }
0x163f   :  { %3874 = vsyncpa [#allocation13], 1 }
0x1640   :  { %3875 = vsyncpa [#allocation16], 1 }
0x1641   :  { %3876 = vsyncpa [#allocation19], 1 }
0x1642   :  { %3878 = vsyncpa [#allocation19 + $0x1], 1 }
0x1643   :  { %3879 = vsyncpa [#allocation22], 1 }
0x1644   :  { %3881 = vsyncpa [#allocation22 + $0x1], 1 }
0x1645   :  { %3882 = vsyncpa [#allocation5], 1 }
0x1646   :  { %3884 = vsyncpa [#allocation5 + $0x1], 1 }

</bundles_post_ra>
